<compile_context>
chip_gen: v7x
topology: tpu7x:2x2x1
jax: 0.10.0
libtpu: 0.0.40
codegen_flags: <defaults>
</compile_context>

<pallas_src>
import functools

import jax
import jax.numpy as jnp
from jax.experimental import pallas as pl
from jax.experimental.pallas import tpu as pltpu

_VMEM_LIMIT = 32 * 1024 * 1024   # fits scoped-VMEM defaults on v5e/v6e/v7x


# --------------------------------------------------------------------------
# Fused Conv3x3(pad=1) + MaxPool2x2 + bias + ReLU kernel (implicit GEMM).
#
# The padded image is row-flattened to (Hp*Wp, C_in) in the wrapper.  Inside the
# kernel, stencil tap (ky, kx) is a matmul of the statically shifted slab
# x_flat[shift : shift + H*Wp] (shift = ky*Wp + kx) with its (C_in, C_out) tap
# weight, accumulated in f32.  Flat position q = h*Wp + w then holds conv(h, w)
# (columns w >= W hold junk and are never selected).  The 2x2 max-pool is
# max(acc[q], acc[q+1], acc[q+Wp], acc[q+Wp+1]); the stride-2 selection of pooled
# positions is a one-hot matmul on the MXU.  Bias + ReLU run last, on the small
# (Ho*Wo, Cout) pooled result only (they commute with max / one-hot gather).
# --------------------------------------------------------------------------
def _conv_block_kernel(x_ref, w_ref, b_ref, p_ref, o_ref, acc_ref, *, M, Wp):
    # implicit-GEMM accumulation over the 9 taps (bf16 x bf16 -> f32 acc)
    for t in range(9):
        ky, kx = divmod(t, 3)
        shift = ky * Wp + kx
        xs = x_ref[0, shift:shift + M, :].astype(jnp.bfloat16)
        contrib = jnp.dot(xs, w_ref[t], preferred_element_type=jnp.float32)
        if t == 0:
            acc_ref[...] = contrib
        else:
            acc_ref[...] = acc_ref[...] + contrib

    # 2x2/2 max pool on the raw conv accumulator (bias/ReLU applied after -- they
    # commute with max and with the one-hot selection below).
    mv = M - Wp - 1
    pooled4 = jnp.maximum(
        jnp.maximum(acc_ref[0:mv, :], acc_ref[1:mv + 1, :]),
        jnp.maximum(acc_ref[Wp:mv + Wp, :], acc_ref[Wp + 1:M, :]))

    # Gather the stride-2 pooled positions via a 0/1 selection matmul, then the
    # bias + ReLU epilogue on the small (Ho*Wo, Cout) block only.
    gathered = jnp.dot(p_ref[...], pooled4, preferred_element_type=jnp.float32)
    o_ref[0] = jnp.maximum(gathered + b_ref[...], 0.0).astype(o_ref.dtype)


def conv3x3_relu_maxpool2x2(x_nhwc, w, b):
    """x_nhwc: (N,H,W,Cin); w: (3,3,Cin,Cout); b: (Cout,).  Returns (N,H/2,W/2,Cout).

    Note: real PyTorch Conv2d weights (Cout,Cin,kH,kW) must be transposed to
    (kH,kW,Cin,Cout) before use here.
    """
    N, H, W, C = x_nhwc.shape
    assert H % 2 == 0 and W % 2 == 0, "MaxPool2d(2,2) path expects even H, W"
    Cout = w.shape[-1]
    Ho, Wo = H // 2, W // 2
    Hp, Wp = H + 2, W + 2
    M = H * Wp                       # conv rows computed in the flat layout
    Mv = M - Wp - 1                  # rows of the 4-way max slab
    TAIL = 8                         # >=2 extra zero rows so shifted slabs stay in bounds

    xf = jnp.pad(x_nhwc, ((0, 0), (1, 1), (1, 1), (0, 0))).reshape(N, Hp * Wp, C)
    xf = jnp.pad(xf, ((0, 0), (0, TAIL), (0, 0))).astype(jnp.float32)
    wf = w.reshape(9, C, Cout).astype(jnp.bfloat16)
    bf = b.reshape(1, Cout).astype(jnp.float32)

    # 0/1 selection matrix gathering pooled positions q = 2*hp*Wp + 2*wp.
    rows = jnp.arange(Ho * Wo, dtype=jnp.int32)
    sel = 2 * (rows // Wo) * Wp + 2 * (rows % Wo)
    P = (sel[:, None] == jnp.arange(Mv, dtype=jnp.int32)[None, :]).astype(jnp.float32)

    flops = N * (2 * M * C * Cout * 9 + 2 * Ho * Wo * Mv * Cout)
    bytes_accessed = (xf.size * 4 + wf.size * 2 + bf.size * 4 + P.size * 4
                      + N * Ho * Wo * Cout * 4)

    out = pl.pallas_call(
        functools.partial(_conv_block_kernel, M=M, Wp=Wp),
        out_shape=jax.ShapeDtypeStruct((N, Ho * Wo, Cout), jnp.float32),
        grid=(N,),
        in_specs=[
            pl.BlockSpec((1, Hp * Wp + TAIL, C), lambda n: (n, 0, 0)),
            pl.BlockSpec((9, C, Cout), lambda n: (0, 0, 0)),
            pl.BlockSpec((1, Cout), lambda n: (0, 0)),
            pl.BlockSpec((Ho * Wo, Mv), lambda n: (0, 0)),
        ],
        out_specs=pl.BlockSpec((1, Ho * Wo, Cout), lambda n: (n, 0, 0)),
        scratch_shapes=[pltpu.VMEM((M, Cout), jnp.float32)],
        compiler_params=pltpu.CompilerParams(
            dimension_semantics=("parallel",),
            vmem_limit_bytes=_VMEM_LIMIT),
        cost_estimate=pl.CostEstimate(flops=flops, transcendentals=0,
                                      bytes_accessed=bytes_accessed),
    )(xf, wf, bf, P)
    # TODO(synk): for large images also tile the image-row axis (2nd grid axis) so the
    # per-step block stays inside v7x's 64 MiB VMEM.
    return out.reshape(N, Ho, Wo, Cout)


# --------------------------------------------------------------------------
# Fused MLP head: all Linear(+ReLU) layers in one Pallas kernel.
# --------------------------------------------------------------------------
def _mlp_kernel(*refs, n_layers):
    x_ref, o_ref = refs[0], refs[-1]
    h = x_ref[...].astype(jnp.bfloat16)
    y = None
    for i in range(n_layers):
        w_ref, b_ref = refs[1 + 2 * i], refs[2 + 2 * i]
        y = jnp.dot(h, w_ref[...], preferred_element_type=jnp.float32) + b_ref[...]
        if i < n_layers - 1:
            # ReLU; nn.Dropout is identity in eval mode.
            h = jnp.maximum(y, 0.0).astype(jnp.bfloat16)
    o_ref[...] = y.astype(o_ref.dtype)


def mlp_head(x, fc_params):
    B = x.shape[0]
    L = len(fc_params)
    args = [x]
    flops = 0
    bytes_accessed = x.size * 4
    for (w, b) in fc_params:
        args.append(w.astype(jnp.bfloat16))
        args.append(b.reshape(1, -1).astype(jnp.float32))
        flops += 2 * B * w.shape[0] * w.shape[1]
        bytes_accessed += w.size * 2 + b.size * 4
    out_dim = fc_params[-1][0].shape[1]
    bytes_accessed += B * out_dim * 4
    # TODO(synk): at realistic hidden/flat sizes, tile M/N/K with a gridded f32
    # accumulator instead of this single fused block.
    return pl.pallas_call(
        functools.partial(_mlp_kernel, n_layers=L),
        out_shape=jax.ShapeDtypeStruct((B, out_dim), jnp.float32),
        in_specs=[pl.BlockSpec(memory_space=pltpu.MemorySpace.VMEM)] * len(args),
        out_specs=pl.BlockSpec(memory_space=pltpu.MemorySpace.VMEM),
        compiler_params=pltpu.CompilerParams(vmem_limit_bytes=_VMEM_LIMIT),
        cost_estimate=pl.CostEstimate(flops=flops, transcendentals=0,
                                      bytes_accessed=bytes_accessed),
    )(*args)


# --------------------------------------------------------------------------
# Parameter init (deterministic, synthetic) + forward pass.
# --------------------------------------------------------------------------
def init_params(key, input_channels, num_cnn_layers, hidden_dim, num_classes,
                num_layers, init_channels, in_hw):
    params = {"conv": [], "fc": []}
    H = W = in_hw
    in_ch, out_ch = input_channels, init_channels
    for _ in range(num_cnn_layers):
        key, kw = jax.random.split(key)
        scale = (2.0 / (9 * in_ch)) ** 0.5
        w = jax.random.normal(kw, (3, 3, in_ch, out_ch), jnp.float32) * scale
        b = jnp.zeros((out_ch,), jnp.float32)
        params["conv"].append((w, b))
        in_ch = out_ch
        out_ch *= 2
        H //= 2
        W //= 2
    flat = in_ch * H * W
    # ANN: LazyLinear(flat->hidden), (num_layers-1) x Linear(hidden->hidden),
    # Linear(hidden->num_classes)
    dims = [flat] + [hidden_dim] * num_layers + [num_classes]
    fcs = []
    for i in range(len(dims) - 1):
        key, kw = jax.random.split(key)
        scale = (2.0 / dims[i]) ** 0.5
        w = jax.random.normal(kw, (dims[i], dims[i + 1]), jnp.float32) * scale
        b = jnp.zeros((dims[i + 1],), jnp.float32)
        fcs.append((w, b))
    # Fold torch.flatten's NCHW ordering into the first FC weight so the conv stack
    # can flatten NHWC directly (removes a full-activation transpose at runtime).
    w0, b0 = fcs[0]
    perm = jnp.arange(flat).reshape(in_ch, H, W).transpose(1, 2, 0).reshape(-1)
    fcs[0] = (w0[perm, :], b0)
    params["fc"] = fcs
    return params


def cnn_forward(params, x_nchw):
    x = jnp.transpose(x_nchw, (0, 2, 3, 1))        # NCHW -> NHWC once (lane dim = channels)
    for (w, b) in params["conv"]:
        x = conv3x3_relu_maxpool2x2(x, w, b)
    # NCHW flatten ordering already folded into params["fc"][0]: flatten straight from NHWC.
    x = x.reshape(x.shape[0], -1)
    return mlp_head(x, params["fc"])


# Pure-JAX f32 reference (same math as the torch module; same NHWC-flatten + folded-perm
# convention as the kernel path, which is analytically equivalent to NCHW flatten with
# the original first-FC weight).
def cnn_forward_ref(params, x_nchw):
    x = jnp.transpose(x_nchw, (0, 2, 3, 1))
    for (w, b) in params["conv"]:
        y = jax.lax.conv_general_dilated(
            x, w, window_strides=(1, 1), padding="SAME",
            dimension_numbers=("NHWC", "HWIO", "NHWC"))
        y = jnp.maximum(y + b, 0.0)
        x = jax.lax.reduce_window(y, -jnp.inf, jax.lax.max,
                                  (1, 2, 2, 1), (1, 2, 2, 1), "VALID")
    x = x.reshape(x.shape[0], -1)
    n_fc = len(params["fc"])
    for i, (w, b) in enumerate(params["fc"]):
        x = x @ w + b
        if i < n_fc - 1:
            x = jnp.maximum(x, 0.0)
    return x


if __name__ == "__main__":
    key = jax.random.PRNGKey(0)
    kx, kp = jax.random.split(key)

    # small shapes: batch=2, input_channels=3, spatial=16x16
    N, C, HW = 2, 3, 16
    num_cnn_layers, hidden_dim, num_classes, num_layers = 2, 32, 10, 3
    init_channels = 8

    x = jax.random.normal(kx, (N, C, HW, HW), jnp.float32)
    params = init_params(kp, input_channels=C, num_cnn_layers=num_cnn_layers,
                         hidden_dim=hidden_dim, num_classes=num_classes,
                         num_layers=num_layers, init_channels=init_channels,
                         in_hw=HW)

    out = jax.jit(cnn_forward)(params, x)
    jax.block_until_ready(out)
    assert out.shape == (N, num_classes), out.shape
    assert bool(jnp.all(jnp.isfinite(out)))

    # correctness vs. pure-JAX f32 reference (bf16 MXU matmuls -> loose relative-L2 bound)
    ref = jax.jit(cnn_forward_ref)(params, x)
    jax.block_until_ready(ref)
    rel_err = float(jnp.linalg.norm(out - ref) / (jnp.linalg.norm(ref) + 1e-12))
    assert rel_err < 5e-2, f"relative L2 error too large: {rel_err}"

    print("KERNEL_OK")
</pallas_src>

<mosaic_0001>
module attributes {stable_mosaic.version = 11 : i64} {
  func.func @_conv_block_kernel(%arg0: i32, %arg1: memref<1x332x3xf32, #tpu.memory_space<vmem>>, %arg2: memref<9x3x8xbf16, #tpu.memory_space<vmem>>, %arg3: memref<1x8xf32, #tpu.memory_space<vmem>>, %arg4: memref<64x269xf32, #tpu.memory_space<vmem>>, %arg5: memref<1x64x8xf32, #tpu.memory_space<vmem>>, %arg6: memref<288x8xf32, #tpu.memory_space<vmem>>) attributes {dimension_semantics = [#tpu.dimension_semantics<parallel>], iteration_bounds = array<i64: 2>, scalar_prefetch = 0 : i64, scratch_operands = 1 : i64, tpu.core_type = #tpu.core_type<tc>, window_params = [{transform_indices = @transform_0, window_bounds = array<i64: 1, 332, 3>}, {pipeline_mode = #tpu.pipeline_mode<synchronous>, transform_indices = @transform_1, window_bounds = array<i64: 9, 3, 8>}, {pipeline_mode = #tpu.pipeline_mode<synchronous>, transform_indices = @transform_2, window_bounds = array<i64: 1, 8>}, {pipeline_mode = #tpu.pipeline_mode<synchronous>, transform_indices = @transform_3, window_bounds = array<i64: 64, 269>}, {transform_indices = @transform_4, window_bounds = array<i64: 1, 64, 8>}]} {
    %c0 = arith.constant 0 : index
    %c0_0 = arith.constant 0 : index
    %c0_1 = arith.constant 0 : index
    %0 = vector.load %arg1[%c0, %c0_0, %c0_1] : memref<1x332x3xf32, #tpu.memory_space<vmem>>, vector<1x288x3xf32>
    %1 = vector.shape_cast %0 : vector<1x288x3xf32> to vector<288x3xf32>
    %2 = arith.truncf %1 : vector<288x3xf32> to vector<288x3xbf16>
    %c0_2 = arith.constant 0 : index
    %c0_3 = arith.constant 0 : index
    %c0_4 = arith.constant 0 : index
    %3 = vector.load %arg2[%c0_2, %c0_3, %c0_4] : memref<9x3x8xbf16, #tpu.memory_space<vmem>>, vector<1x3x8xbf16>
    %4 = vector.shape_cast %3 : vector<1x3x8xbf16> to vector<3x8xbf16>
    %cst = arith.constant dense<0.000000e+00> : vector<288x8xf32>
    %5 = tpu.matmul %2, %4, %cst {dimension_numbers = #tpu.dot_dimension_numbers<[1], [0], [0], [1], [0, 0, 1, 1], [], []>} : vector<288x3xbf16>, vector<3x8xbf16>, vector<288x8xf32> -> vector<288x8xf32>
    %c0_5 = arith.constant 0 : index
    %c0_6 = arith.constant 0 : index
    %6 = vector.load %arg6[%c0_5, %c0_6] : memref<288x8xf32, #tpu.memory_space<vmem>>, vector<288x8xf32>
    tpu.vector_store %arg6[%c0_5, %c0_6], %5 {strides = array<i32>} : memref<288x8xf32, #tpu.memory_space<vmem>>, vector<288x8xf32>,
    %c0_7 = arith.constant 0 : index
    %c1 = arith.constant 1 : index
    %c0_8 = arith.constant 0 : index
    %7 = vector.load %arg1[%c0_7, %c1, %c0_8] : memref<1x332x3xf32, #tpu.memory_space<vmem>>, vector<1x288x3xf32>
    %8 = vector.shape_cast %7 : vector<1x288x3xf32> to vector<288x3xf32>
    %9 = arith.truncf %8 : vector<288x3xf32> to vector<288x3xbf16>
    %c1_9 = arith.constant 1 : index
    %c0_10 = arith.constant 0 : index
    %c0_11 = arith.constant 0 : index
    %10 = vector.load %arg2[%c1_9, %c0_10, %c0_11] : memref<9x3x8xbf16, #tpu.memory_space<vmem>>, vector<1x3x8xbf16>
    %11 = vector.shape_cast %10 : vector<1x3x8xbf16> to vector<3x8xbf16>
    %cst_12 = arith.constant dense<0.000000e+00> : vector<288x8xf32>
    %12 = tpu.matmul %9, %11, %cst_12 {dimension_numbers = #tpu.dot_dimension_numbers<[1], [0], [0], [1], [0, 0, 1, 1], [], []>} : vector<288x3xbf16>, vector<3x8xbf16>, vector<288x8xf32> -> vector<288x8xf32>
    %c0_13 = arith.constant 0 : index
    %c0_14 = arith.constant 0 : index
    %13 = vector.load %arg6[%c0_13, %c0_14] : memref<288x8xf32, #tpu.memory_space<vmem>>, vector<288x8xf32>
    %14 = arith.addf %13, %12 : vector<288x8xf32>
    %c0_15 = arith.constant 0 : index
    %c0_16 = arith.constant 0 : index
    %15 = vector.load %arg6[%c0_15, %c0_16] : memref<288x8xf32, #tpu.memory_space<vmem>>, vector<288x8xf32>
    tpu.vector_store %arg6[%c0_15, %c0_16], %14 {strides = array<i32>} : memref<288x8xf32, #tpu.memory_space<vmem>>, vector<288x8xf32>,
    %c0_17 = arith.constant 0 : index
    %c2 = arith.constant 2 : index
    %c0_18 = arith.constant 0 : index
    %16 = vector.load %arg1[%c0_17, %c2, %c0_18] : memref<1x332x3xf32, #tpu.memory_space<vmem>>, vector<1x288x3xf32>
    %17 = vector.shape_cast %16 : vector<1x288x3xf32> to vector<288x3xf32>
    %18 = arith.truncf %17 : vector<288x3xf32> to vector<288x3xbf16>
    %c2_19 = arith.constant 2 : index
    %c0_20 = arith.constant 0 : index
    %c0_21 = arith.constant 0 : index
    %19 = vector.load %arg2[%c2_19, %c0_20, %c0_21] : memref<9x3x8xbf16, #tpu.memory_space<vmem>>, vector<1x3x8xbf16>
    %20 = vector.shape_cast %19 : vector<1x3x8xbf16> to vector<3x8xbf16>
    %cst_22 = arith.constant dense<0.000000e+00> : vector<288x8xf32>
    %21 = tpu.matmul %18, %20, %cst_22 {dimension_numbers = #tpu.dot_dimension_numbers<[1], [0], [0], [1], [0, 0, 1, 1], [], []>} : vector<288x3xbf16>, vector<3x8xbf16>, vector<288x8xf32> -> vector<288x8xf32>
    %c0_23 = arith.constant 0 : index
    %c0_24 = arith.constant 0 : index
    %22 = vector.load %arg6[%c0_23, %c0_24] : memref<288x8xf32, #tpu.memory_space<vmem>>, vector<288x8xf32>
    %23 = arith.addf %22, %21 : vector<288x8xf32>
    %c0_25 = arith.constant 0 : index
    %c0_26 = arith.constant 0 : index
    %24 = vector.load %arg6[%c0_25, %c0_26] : memref<288x8xf32, #tpu.memory_space<vmem>>, vector<288x8xf32>
    tpu.vector_store %arg6[%c0_25, %c0_26], %23 {strides = array<i32>} : memref<288x8xf32, #tpu.memory_space<vmem>>, vector<288x8xf32>,
    %c0_27 = arith.constant 0 : index
    %c18 = arith.constant 18 : index
    %c0_28 = arith.constant 0 : index
    %25 = vector.load %arg1[%c0_27, %c18, %c0_28] : memref<1x332x3xf32, #tpu.memory_space<vmem>>, vector<1x288x3xf32>
    %26 = vector.shape_cast %25 : vector<1x288x3xf32> to vector<288x3xf32>
    %27 = arith.truncf %26 : vector<288x3xf32> to vector<288x3xbf16>
    %c3 = arith.constant 3 : index
    %c0_29 = arith.constant 0 : index
    %c0_30 = arith.constant 0 : index
    %28 = vector.load %arg2[%c3, %c0_29, %c0_30] : memref<9x3x8xbf16, #tpu.memory_space<vmem>>, vector<1x3x8xbf16>
    %29 = vector.shape_cast %28 : vector<1x3x8xbf16> to vector<3x8xbf16>
    %cst_31 = arith.constant dense<0.000000e+00> : vector<288x8xf32>
    %30 = tpu.matmul %27, %29, %cst_31 {dimension_numbers = #tpu.dot_dimension_numbers<[1], [0], [0], [1], [0, 0, 1, 1], [], []>} : vector<288x3xbf16>, vector<3x8xbf16>, vector<288x8xf32> -> vector<288x8xf32>
    %c0_32 = arith.constant 0 : index
    %c0_33 = arith.constant 0 : index
    %31 = vector.load %arg6[%c0_32, %c0_33] : memref<288x8xf32, #tpu.memory_space<vmem>>, vector<288x8xf32>
    %32 = arith.addf %31, %30 : vector<288x8xf32>
    %c0_34 = arith.constant 0 : index
    %c0_35 = arith.constant 0 : index
    %33 = vector.load %arg6[%c0_34, %c0_35] : memref<288x8xf32, #tpu.memory_space<vmem>>, vector<288x8xf32>
    tpu.vector_store %arg6[%c0_34, %c0_35], %32 {strides = array<i32>} : memref<288x8xf32, #tpu.memory_space<vmem>>, vector<288x8xf32>,
    %c0_36 = arith.constant 0 : index
    %c19 = arith.constant 19 : index
    %c0_37 = arith.constant 0 : index
    %34 = vector.load %arg1[%c0_36, %c19, %c0_37] : memref<1x332x3xf32, #tpu.memory_space<vmem>>, vector<1x288x3xf32>
    %35 = vector.shape_cast %34 : vector<1x288x3xf32> to vector<288x3xf32>
    %36 = arith.truncf %35 : vector<288x3xf32> to vector<288x3xbf16>
    %c4 = arith.constant 4 : index
    %c0_38 = arith.constant 0 : index
    %c0_39 = arith.constant 0 : index
    %37 = vector.load %arg2[%c4, %c0_38, %c0_39] : memref<9x3x8xbf16, #tpu.memory_space<vmem>>, vector<1x3x8xbf16>
    %38 = vector.shape_cast %37 : vector<1x3x8xbf16> to vector<3x8xbf16>
    %cst_40 = arith.constant dense<0.000000e+00> : vector<288x8xf32>
    %39 = tpu.matmul %36, %38, %cst_40 {dimension_numbers = #tpu.dot_dimension_numbers<[1], [0], [0], [1], [0, 0, 1, 1], [], []>} : vector<288x3xbf16>, vector<3x8xbf16>, vector<288x8xf32> -> vector<288x8xf32>
    %c0_41 = arith.constant 0 : index
    %c0_42 = arith.constant 0 : index
    %40 = vector.load %arg6[%c0_41, %c0_42] : memref<288x8xf32, #tpu.memory_space<vmem>>, vector<288x8xf32>
    %41 = arith.addf %40, %39 : vector<288x8xf32>
    %c0_43 = arith.constant 0 : index
    %c0_44 = arith.constant 0 : index
    %42 = vector.load %arg6[%c0_43, %c0_44] : memref<288x8xf32, #tpu.memory_space<vmem>>, vector<288x8xf32>
    tpu.vector_store %arg6[%c0_43, %c0_44], %41 {strides = array<i32>} : memref<288x8xf32, #tpu.memory_space<vmem>>, vector<288x8xf32>,
    %c0_45 = arith.constant 0 : index
    %c20 = arith.constant 20 : index
    %c0_46 = arith.constant 0 : index
    %43 = vector.load %arg1[%c0_45, %c20, %c0_46] : memref<1x332x3xf32, #tpu.memory_space<vmem>>, vector<1x288x3xf32>
    %44 = vector.shape_cast %43 : vector<1x288x3xf32> to vector<288x3xf32>
    %45 = arith.truncf %44 : vector<288x3xf32> to vector<288x3xbf16>
    %c5 = arith.constant 5 : index
    %c0_47 = arith.constant 0 : index
    %c0_48 = arith.constant 0 : index
    %46 = vector.load %arg2[%c5, %c0_47, %c0_48] : memref<9x3x8xbf16, #tpu.memory_space<vmem>>, vector<1x3x8xbf16>
    %47 = vector.shape_cast %46 : vector<1x3x8xbf16> to vector<3x8xbf16>
    %cst_49 = arith.constant dense<0.000000e+00> : vector<288x8xf32>
    %48 = tpu.matmul %45, %47, %cst_49 {dimension_numbers = #tpu.dot_dimension_numbers<[1], [0], [0], [1], [0, 0, 1, 1], [], []>} : vector<288x3xbf16>, vector<3x8xbf16>, vector<288x8xf32> -> vector<288x8xf32>
    %c0_50 = arith.constant 0 : index
    %c0_51 = arith.constant 0 : index
    %49 = vector.load %arg6[%c0_50, %c0_51] : memref<288x8xf32, #tpu.memory_space<vmem>>, vector<288x8xf32>
    %50 = arith.addf %49, %48 : vector<288x8xf32>
    %c0_52 = arith.constant 0 : index
    %c0_53 = arith.constant 0 : index
    %51 = vector.load %arg6[%c0_52, %c0_53] : memref<288x8xf32, #tpu.memory_space<vmem>>, vector<288x8xf32>
    tpu.vector_store %arg6[%c0_52, %c0_53], %50 {strides = array<i32>} : memref<288x8xf32, #tpu.memory_space<vmem>>, vector<288x8xf32>,
    %c0_54 = arith.constant 0 : index
    %c36 = arith.constant 36 : index
    %c0_55 = arith.constant 0 : index
    %52 = vector.load %arg1[%c0_54, %c36, %c0_55] : memref<1x332x3xf32, #tpu.memory_space<vmem>>, vector<1x288x3xf32>
    %53 = vector.shape_cast %52 : vector<1x288x3xf32> to vector<288x3xf32>
    %54 = arith.truncf %53 : vector<288x3xf32> to vector<288x3xbf16>
    %c6 = arith.constant 6 : index
    %c0_56 = arith.constant 0 : index
    %c0_57 = arith.constant 0 : index
    %55 = vector.load %arg2[%c6, %c0_56, %c0_57] : memref<9x3x8xbf16, #tpu.memory_space<vmem>>, vector<1x3x8xbf16>
    %56 = vector.shape_cast %55 : vector<1x3x8xbf16> to vector<3x8xbf16>
    %cst_58 = arith.constant dense<0.000000e+00> : vector<288x8xf32>
    %57 = tpu.matmul %54, %56, %cst_58 {dimension_numbers = #tpu.dot_dimension_numbers<[1], [0], [0], [1], [0, 0, 1, 1], [], []>} : vector<288x3xbf16>, vector<3x8xbf16>, vector<288x8xf32> -> vector<288x8xf32>
    %c0_59 = arith.constant 0 : index
    %c0_60 = arith.constant 0 : index
    %58 = vector.load %arg6[%c0_59, %c0_60] : memref<288x8xf32, #tpu.memory_space<vmem>>, vector<288x8xf32>
    %59 = arith.addf %58, %57 : vector<288x8xf32>
    %c0_61 = arith.constant 0 : index
    %c0_62 = arith.constant 0 : index
    %60 = vector.load %arg6[%c0_61, %c0_62] : memref<288x8xf32, #tpu.memory_space<vmem>>, vector<288x8xf32>
    tpu.vector_store %arg6[%c0_61, %c0_62], %59 {strides = array<i32>} : memref<288x8xf32, #tpu.memory_space<vmem>>, vector<288x8xf32>,
    %c0_63 = arith.constant 0 : index
    %c37 = arith.constant 37 : index
    %c0_64 = arith.constant 0 : index
    %61 = vector.load %arg1[%c0_63, %c37, %c0_64] : memref<1x332x3xf32, #tpu.memory_space<vmem>>, vector<1x288x3xf32>
    %62 = vector.shape_cast %61 : vector<1x288x3xf32> to vector<288x3xf32>
    %63 = arith.truncf %62 : vector<288x3xf32> to vector<288x3xbf16>
    %c7 = arith.constant 7 : index
    %c0_65 = arith.constant 0 : index
    %c0_66 = arith.constant 0 : index
    %64 = vector.load %arg2[%c7, %c0_65, %c0_66] : memref<9x3x8xbf16, #tpu.memory_space<vmem>>, vector<1x3x8xbf16>
    %65 = vector.shape_cast %64 : vector<1x3x8xbf16> to vector<3x8xbf16>
    %cst_67 = arith.constant dense<0.000000e+00> : vector<288x8xf32>
    %66 = tpu.matmul %63, %65, %cst_67 {dimension_numbers = #tpu.dot_dimension_numbers<[1], [0], [0], [1], [0, 0, 1, 1], [], []>} : vector<288x3xbf16>, vector<3x8xbf16>, vector<288x8xf32> -> vector<288x8xf32>
    %c0_68 = arith.constant 0 : index
    %c0_69 = arith.constant 0 : index
    %67 = vector.load %arg6[%c0_68, %c0_69] : memref<288x8xf32, #tpu.memory_space<vmem>>, vector<288x8xf32>
    %68 = arith.addf %67, %66 : vector<288x8xf32>
    %c0_70 = arith.constant 0 : index
    %c0_71 = arith.constant 0 : index
    %69 = vector.load %arg6[%c0_70, %c0_71] : memref<288x8xf32, #tpu.memory_space<vmem>>, vector<288x8xf32>
    tpu.vector_store %arg6[%c0_70, %c0_71], %68 {strides = array<i32>} : memref<288x8xf32, #tpu.memory_space<vmem>>, vector<288x8xf32>,
    %c0_72 = arith.constant 0 : index
    %c38 = arith.constant 38 : index
    %c0_73 = arith.constant 0 : index
    %70 = vector.load %arg1[%c0_72, %c38, %c0_73] : memref<1x332x3xf32, #tpu.memory_space<vmem>>, vector<1x288x3xf32>
    %71 = vector.shape_cast %70 : vector<1x288x3xf32> to vector<288x3xf32>
    %72 = arith.truncf %71 : vector<288x3xf32> to vector<288x3xbf16>
    %c8 = arith.constant 8 : index
    %c0_74 = arith.constant 0 : index
    %c0_75 = arith.constant 0 : index
    %73 = vector.load %arg2[%c8, %c0_74, %c0_75] : memref<9x3x8xbf16, #tpu.memory_space<vmem>>, vector<1x3x8xbf16>
    %74 = vector.shape_cast %73 : vector<1x3x8xbf16> to vector<3x8xbf16>
    %cst_76 = arith.constant dense<0.000000e+00> : vector<288x8xf32>
    %75 = tpu.matmul %72, %74, %cst_76 {dimension_numbers = #tpu.dot_dimension_numbers<[1], [0], [0], [1], [0, 0, 1, 1], [], []>} : vector<288x3xbf16>, vector<3x8xbf16>, vector<288x8xf32> -> vector<288x8xf32>
    %c0_77 = arith.constant 0 : index
    %c0_78 = arith.constant 0 : index
    %76 = vector.load %arg6[%c0_77, %c0_78] : memref<288x8xf32, #tpu.memory_space<vmem>>, vector<288x8xf32>
    %77 = arith.addf %76, %75 : vector<288x8xf32>
    %c0_79 = arith.constant 0 : index
    %c0_80 = arith.constant 0 : index
    %78 = vector.load %arg6[%c0_79, %c0_80] : memref<288x8xf32, #tpu.memory_space<vmem>>, vector<288x8xf32>
    tpu.vector_store %arg6[%c0_79, %c0_80], %77 {strides = array<i32>} : memref<288x8xf32, #tpu.memory_space<vmem>>, vector<288x8xf32>,
    %c0_81 = arith.constant 0 : index
    %c0_82 = arith.constant 0 : index
    %79 = vector.load %arg6[%c0_81, %c0_82] : memref<288x8xf32, #tpu.memory_space<vmem>>, vector<269x8xf32>
    %c1_83 = arith.constant 1 : index
    %c0_84 = arith.constant 0 : index
    %80 = vector.load %arg6[%c1_83, %c0_84] : memref<288x8xf32, #tpu.memory_space<vmem>>, vector<269x8xf32>
    %81 = arith.maximumf %79, %80 : vector<269x8xf32>
    %c18_85 = arith.constant 18 : index
    %c0_86 = arith.constant 0 : index
    %82 = vector.load %arg6[%c18_85, %c0_86] : memref<288x8xf32, #tpu.memory_space<vmem>>, vector<269x8xf32>
    %c19_87 = arith.constant 19 : index
    %c0_88 = arith.constant 0 : index
    %83 = vector.load %arg6[%c19_87, %c0_88] : memref<288x8xf32, #tpu.memory_space<vmem>>, vector<269x8xf32>
    %84 = arith.maximumf %82, %83 : vector<269x8xf32>
    %85 = arith.maximumf %81, %84 : vector<269x8xf32>
    %c0_89 = arith.constant 0 : index
    %c0_90 = arith.constant 0 : index
    %86 = vector.load %arg4[%c0_89, %c0_90] : memref<64x269xf32, #tpu.memory_space<vmem>>, vector<64x269xf32>
    %cst_91 = arith.constant dense<0.000000e+00> : vector<64x8xf32>
    %87 = tpu.matmul %86, %85, %cst_91 {dimension_numbers = #tpu.dot_dimension_numbers<[1], [0], [0], [1], [0, 0, 1, 1], [], []>} : vector<64x269xf32>, vector<269x8xf32>, vector<64x8xf32> -> vector<64x8xf32>
    %c0_92 = arith.constant 0 : index
    %c0_93 = arith.constant 0 : index
    %88 = vector.load %arg3[%c0_92, %c0_93] : memref<1x8xf32, #tpu.memory_space<vmem>>, vector<1x8xf32>
    %89 = vector.broadcast %88 : vector<1x8xf32> to vector<64x8xf32>
    %90 = arith.addf %87, %89 : vector<64x8xf32>
    %cst_94 = arith.constant 0.000000e+00 : f32
    %91 = vector.broadcast %cst_94 : f32 to vector<64x8xf32>
    %92 = arith.maximumf %90, %91 : vector<64x8xf32>
    %c0_95 = arith.constant 0 : index
    %c0_96 = arith.constant 0 : index
    %c0_97 = arith.constant 0 : index
    %93 = vector.load %arg5[%c0_95, %c0_96, %c0_97] : memref<1x64x8xf32, #tpu.memory_space<vmem>>, vector<1x64x8xf32>
    %94 = vector.shape_cast %93 : vector<1x64x8xf32> to vector<64x8xf32>
    %95 = vector.shape_cast %92 : vector<64x8xf32> to vector<1x64x8xf32>
    tpu.vector_store %arg5[%c0_95, %c0_96, %c0_97], %95 {strides = array<i32>} : memref<1x64x8xf32, #tpu.memory_space<vmem>>, vector<1x64x8xf32>,
    return
  }
  func.func @transform_0(%arg0: i32) -> (i32, i32, i32) {
    %c0_i32 = arith.constant 0 : i32
    %c0_i32_0 = arith.constant 0 : i32
    %c0_i32_1 = arith.constant 0 : i32
    return %arg0, %c0_i32, %c0_i32_0 : i32, i32, i32
  }
  func.func @transform_1(%arg0: i32) -> (i32, i32, i32) {
    %c0_i32 = arith.constant 0 : i32
    %c0_i32_0 = arith.constant 0 : i32
    %c0_i32_1 = arith.constant 0 : i32
    %c0_i32_2 = arith.constant 0 : i32
    return %c0_i32, %c0_i32_0, %c0_i32_1 : i32, i32, i32
  }
  func.func @transform_2(%arg0: i32) -> (i32, i32) {
    %c0_i32 = arith.constant 0 : i32
    %c0_i32_0 = arith.constant 0 : i32
    %c0_i32_1 = arith.constant 0 : i32
    return %c0_i32, %c0_i32_0 : i32, i32
  }
  func.func @transform_3(%arg0: i32) -> (i32, i32) {
    %c0_i32 = arith.constant 0 : i32
    %c0_i32_0 = arith.constant 0 : i32
    %c0_i32_1 = arith.constant 0 : i32
    return %c0_i32, %c0_i32_0 : i32, i32
  }
  func.func @transform_4(%arg0: i32) -> (i32, i32, i32) {
    %c0_i32 = arith.constant 0 : i32
    %c0_i32_0 = arith.constant 0 : i32
    %c0_i32_1 = arith.constant 0 : i32
    return %arg0, %c0_i32, %c0_i32_0 : i32, i32, i32
  }
}

module attributes {stable_mosaic.version = 11 : i64} {
  func.func @_conv_block_kernel(%arg0: i32, %arg1: memref<1x108x8xf32, #tpu.memory_space<vmem>>, %arg2: memref<9x8x16xbf16, #tpu.memory_space<vmem>>, %arg3: memref<1x16xf32, #tpu.memory_space<vmem>>, %arg4: memref<16x69xf32, #tpu.memory_space<vmem>>, %arg5: memref<1x16x16xf32, #tpu.memory_space<vmem>>, %arg6: memref<80x16xf32, #tpu.memory_space<vmem>>) attributes {dimension_semantics = [#tpu.dimension_semantics<parallel>], iteration_bounds = array<i64: 2>, scalar_prefetch = 0 : i64, scratch_operands = 1 : i64, tpu.core_type = #tpu.core_type<tc>, window_params = [{transform_indices = @transform_0, window_bounds = array<i64: 1, 108, 8>}, {pipeline_mode = #tpu.pipeline_mode<synchronous>, transform_indices = @transform_1, window_bounds = array<i64: 9, 8, 16>}, {pipeline_mode = #tpu.pipeline_mode<synchronous>, transform_indices = @transform_2, window_bounds = array<i64: 1, 16>}, {pipeline_mode = #tpu.pipeline_mode<synchronous>, transform_indices = @transform_3, window_bounds = array<i64: 16, 69>}, {transform_indices = @transform_4, window_bounds = array<i64: 1, 16, 16>}]} {
    %c0 = arith.constant 0 : index
    %c0_0 = arith.constant 0 : index
    %c0_1 = arith.constant 0 : index
    %0 = vector.load %arg1[%c0, %c0_0, %c0_1] : memref<1x108x8xf32, #tpu.memory_space<vmem>>, vector<1x80x8xf32>
    %1 = vector.shape_cast %0 : vector<1x80x8xf32> to vector<80x8xf32>
    %2 = arith.truncf %1 : vector<80x8xf32> to vector<80x8xbf16>
    %c0_2 = arith.constant 0 : index
    %c0_3 = arith.constant 0 : index
    %c0_4 = arith.constant 0 : index
    %3 = vector.load %arg2[%c0_2, %c0_3, %c0_4] : memref<9x8x16xbf16, #tpu.memory_space<vmem>>, vector<1x8x16xbf16>
    %4 = vector.shape_cast %3 : vector<1x8x16xbf16> to vector<8x16xbf16>
    %cst = arith.constant dense<0.000000e+00> : vector<80x16xf32>
    %5 = tpu.matmul %2, %4, %cst {dimension_numbers = #tpu.dot_dimension_numbers<[1], [0], [0], [1], [0, 0, 1, 1], [], []>} : vector<80x8xbf16>, vector<8x16xbf16>, vector<80x16xf32> -> vector<80x16xf32>
    %c0_5 = arith.constant 0 : index
    %c0_6 = arith.constant 0 : index
    %6 = vector.load %arg6[%c0_5, %c0_6] : memref<80x16xf32, #tpu.memory_space<vmem>>, vector<80x16xf32>
    tpu.vector_store %arg6[%c0_5, %c0_6], %5 {strides = array<i32>} : memref<80x16xf32, #tpu.memory_space<vmem>>, vector<80x16xf32>,
    %c0_7 = arith.constant 0 : index
    %c1 = arith.constant 1 : index
    %c0_8 = arith.constant 0 : index
    %7 = vector.load %arg1[%c0_7, %c1, %c0_8] : memref<1x108x8xf32, #tpu.memory_space<vmem>>, vector<1x80x8xf32>
    %8 = vector.shape_cast %7 : vector<1x80x8xf32> to vector<80x8xf32>
    %9 = arith.truncf %8 : vector<80x8xf32> to vector<80x8xbf16>
    %c1_9 = arith.constant 1 : index
    %c0_10 = arith.constant 0 : index
    %c0_11 = arith.constant 0 : index
    %10 = vector.load %arg2[%c1_9, %c0_10, %c0_11] : memref<9x8x16xbf16, #tpu.memory_space<vmem>>, vector<1x8x16xbf16>
    %11 = vector.shape_cast %10 : vector<1x8x16xbf16> to vector<8x16xbf16>
    %cst_12 = arith.constant dense<0.000000e+00> : vector<80x16xf32>
    %12 = tpu.matmul %9, %11, %cst_12 {dimension_numbers = #tpu.dot_dimension_numbers<[1], [0], [0], [1], [0, 0, 1, 1], [], []>} : vector<80x8xbf16>, vector<8x16xbf16>, vector<80x16xf32> -> vector<80x16xf32>
    %c0_13 = arith.constant 0 : index
    %c0_14 = arith.constant 0 : index
    %13 = vector.load %arg6[%c0_13, %c0_14] : memref<80x16xf32, #tpu.memory_space<vmem>>, vector<80x16xf32>
    %14 = arith.addf %13, %12 : vector<80x16xf32>
    %c0_15 = arith.constant 0 : index
    %c0_16 = arith.constant 0 : index
    %15 = vector.load %arg6[%c0_15, %c0_16] : memref<80x16xf32, #tpu.memory_space<vmem>>, vector<80x16xf32>
    tpu.vector_store %arg6[%c0_15, %c0_16], %14 {strides = array<i32>} : memref<80x16xf32, #tpu.memory_space<vmem>>, vector<80x16xf32>,
    %c0_17 = arith.constant 0 : index
    %c2 = arith.constant 2 : index
    %c0_18 = arith.constant 0 : index
    %16 = vector.load %arg1[%c0_17, %c2, %c0_18] : memref<1x108x8xf32, #tpu.memory_space<vmem>>, vector<1x80x8xf32>
    %17 = vector.shape_cast %16 : vector<1x80x8xf32> to vector<80x8xf32>
    %18 = arith.truncf %17 : vector<80x8xf32> to vector<80x8xbf16>
    %c2_19 = arith.constant 2 : index
    %c0_20 = arith.constant 0 : index
    %c0_21 = arith.constant 0 : index
    %19 = vector.load %arg2[%c2_19, %c0_20, %c0_21] : memref<9x8x16xbf16, #tpu.memory_space<vmem>>, vector<1x8x16xbf16>
    %20 = vector.shape_cast %19 : vector<1x8x16xbf16> to vector<8x16xbf16>
    %cst_22 = arith.constant dense<0.000000e+00> : vector<80x16xf32>
    %21 = tpu.matmul %18, %20, %cst_22 {dimension_numbers = #tpu.dot_dimension_numbers<[1], [0], [0], [1], [0, 0, 1, 1], [], []>} : vector<80x8xbf16>, vector<8x16xbf16>, vector<80x16xf32> -> vector<80x16xf32>
    %c0_23 = arith.constant 0 : index
    %c0_24 = arith.constant 0 : index
    %22 = vector.load %arg6[%c0_23, %c0_24] : memref<80x16xf32, #tpu.memory_space<vmem>>, vector<80x16xf32>
    %23 = arith.addf %22, %21 : vector<80x16xf32>
    %c0_25 = arith.constant 0 : index
    %c0_26 = arith.constant 0 : index
    %24 = vector.load %arg6[%c0_25, %c0_26] : memref<80x16xf32, #tpu.memory_space<vmem>>, vector<80x16xf32>
    tpu.vector_store %arg6[%c0_25, %c0_26], %23 {strides = array<i32>} : memref<80x16xf32, #tpu.memory_space<vmem>>, vector<80x16xf32>,
    %c0_27 = arith.constant 0 : index
    %c10 = arith.constant 10 : index
    %c0_28 = arith.constant 0 : index
    %25 = vector.load %arg1[%c0_27, %c10, %c0_28] : memref<1x108x8xf32, #tpu.memory_space<vmem>>, vector<1x80x8xf32>
    %26 = vector.shape_cast %25 : vector<1x80x8xf32> to vector<80x8xf32>
    %27 = arith.truncf %26 : vector<80x8xf32> to vector<80x8xbf16>
    %c3 = arith.constant 3 : index
    %c0_29 = arith.constant 0 : index
    %c0_30 = arith.constant 0 : index
    %28 = vector.load %arg2[%c3, %c0_29, %c0_30] : memref<9x8x16xbf16, #tpu.memory_space<vmem>>, vector<1x8x16xbf16>
    %29 = vector.shape_cast %28 : vector<1x8x16xbf16> to vector<8x16xbf16>
    %cst_31 = arith.constant dense<0.000000e+00> : vector<80x16xf32>
    %30 = tpu.matmul %27, %29, %cst_31 {dimension_numbers = #tpu.dot_dimension_numbers<[1], [0], [0], [1], [0, 0, 1, 1], [], []>} : vector<80x8xbf16>, vector<8x16xbf16>, vector<80x16xf32> -> vector<80x16xf32>
    %c0_32 = arith.constant 0 : index
    %c0_33 = arith.constant 0 : index
    %31 = vector.load %arg6[%c0_32, %c0_33] : memref<80x16xf32, #tpu.memory_space<vmem>>, vector<80x16xf32>
    %32 = arith.addf %31, %30 : vector<80x16xf32>
    %c0_34 = arith.constant 0 : index
    %c0_35 = arith.constant 0 : index
    %33 = vector.load %arg6[%c0_34, %c0_35] : memref<80x16xf32, #tpu.memory_space<vmem>>, vector<80x16xf32>
    tpu.vector_store %arg6[%c0_34, %c0_35], %32 {strides = array<i32>} : memref<80x16xf32, #tpu.memory_space<vmem>>, vector<80x16xf32>,
    %c0_36 = arith.constant 0 : index
    %c11 = arith.constant 11 : index
    %c0_37 = arith.constant 0 : index
    %34 = vector.load %arg1[%c0_36, %c11, %c0_37] : memref<1x108x8xf32, #tpu.memory_space<vmem>>, vector<1x80x8xf32>
    %35 = vector.shape_cast %34 : vector<1x80x8xf32> to vector<80x8xf32>
    %36 = arith.truncf %35 : vector<80x8xf32> to vector<80x8xbf16>
    %c4 = arith.constant 4 : index
    %c0_38 = arith.constant 0 : index
    %c0_39 = arith.constant 0 : index
    %37 = vector.load %arg2[%c4, %c0_38, %c0_39] : memref<9x8x16xbf16, #tpu.memory_space<vmem>>, vector<1x8x16xbf16>
    %38 = vector.shape_cast %37 : vector<1x8x16xbf16> to vector<8x16xbf16>
    %cst_40 = arith.constant dense<0.000000e+00> : vector<80x16xf32>
    %39 = tpu.matmul %36, %38, %cst_40 {dimension_numbers = #tpu.dot_dimension_numbers<[1], [0], [0], [1], [0, 0, 1, 1], [], []>} : vector<80x8xbf16>, vector<8x16xbf16>, vector<80x16xf32> -> vector<80x16xf32>
    %c0_41 = arith.constant 0 : index
    %c0_42 = arith.constant 0 : index
    %40 = vector.load %arg6[%c0_41, %c0_42] : memref<80x16xf32, #tpu.memory_space<vmem>>, vector<80x16xf32>
    %41 = arith.addf %40, %39 : vector<80x16xf32>
    %c0_43 = arith.constant 0 : index
    %c0_44 = arith.constant 0 : index
    %42 = vector.load %arg6[%c0_43, %c0_44] : memref<80x16xf32, #tpu.memory_space<vmem>>, vector<80x16xf32>
    tpu.vector_store %arg6[%c0_43, %c0_44], %41 {strides = array<i32>} : memref<80x16xf32, #tpu.memory_space<vmem>>, vector<80x16xf32>,
    %c0_45 = arith.constant 0 : index
    %c12 = arith.constant 12 : index
    %c0_46 = arith.constant 0 : index
    %43 = vector.load %arg1[%c0_45, %c12, %c0_46] : memref<1x108x8xf32, #tpu.memory_space<vmem>>, vector<1x80x8xf32>
    %44 = vector.shape_cast %43 : vector<1x80x8xf32> to vector<80x8xf32>
    %45 = arith.truncf %44 : vector<80x8xf32> to vector<80x8xbf16>
    %c5 = arith.constant 5 : index
    %c0_47 = arith.constant 0 : index
    %c0_48 = arith.constant 0 : index
    %46 = vector.load %arg2[%c5, %c0_47, %c0_48] : memref<9x8x16xbf16, #tpu.memory_space<vmem>>, vector<1x8x16xbf16>
    %47 = vector.shape_cast %46 : vector<1x8x16xbf16> to vector<8x16xbf16>
    %cst_49 = arith.constant dense<0.000000e+00> : vector<80x16xf32>
    %48 = tpu.matmul %45, %47, %cst_49 {dimension_numbers = #tpu.dot_dimension_numbers<[1], [0], [0], [1], [0, 0, 1, 1], [], []>} : vector<80x8xbf16>, vector<8x16xbf16>, vector<80x16xf32> -> vector<80x16xf32>
    %c0_50 = arith.constant 0 : index
    %c0_51 = arith.constant 0 : index
    %49 = vector.load %arg6[%c0_50, %c0_51] : memref<80x16xf32, #tpu.memory_space<vmem>>, vector<80x16xf32>
    %50 = arith.addf %49, %48 : vector<80x16xf32>
    %c0_52 = arith.constant 0 : index
    %c0_53 = arith.constant 0 : index
    %51 = vector.load %arg6[%c0_52, %c0_53] : memref<80x16xf32, #tpu.memory_space<vmem>>, vector<80x16xf32>
    tpu.vector_store %arg6[%c0_52, %c0_53], %50 {strides = array<i32>} : memref<80x16xf32, #tpu.memory_space<vmem>>, vector<80x16xf32>,
    %c0_54 = arith.constant 0 : index
    %c20 = arith.constant 20 : index
    %c0_55 = arith.constant 0 : index
    %52 = vector.load %arg1[%c0_54, %c20, %c0_55] : memref<1x108x8xf32, #tpu.memory_space<vmem>>, vector<1x80x8xf32>
    %53 = vector.shape_cast %52 : vector<1x80x8xf32> to vector<80x8xf32>
    %54 = arith.truncf %53 : vector<80x8xf32> to vector<80x8xbf16>
    %c6 = arith.constant 6 : index
    %c0_56 = arith.constant 0 : index
    %c0_57 = arith.constant 0 : index
    %55 = vector.load %arg2[%c6, %c0_56, %c0_57] : memref<9x8x16xbf16, #tpu.memory_space<vmem>>, vector<1x8x16xbf16>
    %56 = vector.shape_cast %55 : vector<1x8x16xbf16> to vector<8x16xbf16>
    %cst_58 = arith.constant dense<0.000000e+00> : vector<80x16xf32>
    %57 = tpu.matmul %54, %56, %cst_58 {dimension_numbers = #tpu.dot_dimension_numbers<[1], [0], [0], [1], [0, 0, 1, 1], [], []>} : vector<80x8xbf16>, vector<8x16xbf16>, vector<80x16xf32> -> vector<80x16xf32>
    %c0_59 = arith.constant 0 : index
    %c0_60 = arith.constant 0 : index
    %58 = vector.load %arg6[%c0_59, %c0_60] : memref<80x16xf32, #tpu.memory_space<vmem>>, vector<80x16xf32>
    %59 = arith.addf %58, %57 : vector<80x16xf32>
    %c0_61 = arith.constant 0 : index
    %c0_62 = arith.constant 0 : index
    %60 = vector.load %arg6[%c0_61, %c0_62] : memref<80x16xf32, #tpu.memory_space<vmem>>, vector<80x16xf32>
    tpu.vector_store %arg6[%c0_61, %c0_62], %59 {strides = array<i32>} : memref<80x16xf32, #tpu.memory_space<vmem>>, vector<80x16xf32>,
    %c0_63 = arith.constant 0 : index
    %c21 = arith.constant 21 : index
    %c0_64 = arith.constant 0 : index
    %61 = vector.load %arg1[%c0_63, %c21, %c0_64] : memref<1x108x8xf32, #tpu.memory_space<vmem>>, vector<1x80x8xf32>
    %62 = vector.shape_cast %61 : vector<1x80x8xf32> to vector<80x8xf32>
    %63 = arith.truncf %62 : vector<80x8xf32> to vector<80x8xbf16>
    %c7 = arith.constant 7 : index
    %c0_65 = arith.constant 0 : index
    %c0_66 = arith.constant 0 : index
    %64 = vector.load %arg2[%c7, %c0_65, %c0_66] : memref<9x8x16xbf16, #tpu.memory_space<vmem>>, vector<1x8x16xbf16>
    %65 = vector.shape_cast %64 : vector<1x8x16xbf16> to vector<8x16xbf16>
    %cst_67 = arith.constant dense<0.000000e+00> : vector<80x16xf32>
    %66 = tpu.matmul %63, %65, %cst_67 {dimension_numbers = #tpu.dot_dimension_numbers<[1], [0], [0], [1], [0, 0, 1, 1], [], []>} : vector<80x8xbf16>, vector<8x16xbf16>, vector<80x16xf32> -> vector<80x16xf32>
    %c0_68 = arith.constant 0 : index
    %c0_69 = arith.constant 0 : index
    %67 = vector.load %arg6[%c0_68, %c0_69] : memref<80x16xf32, #tpu.memory_space<vmem>>, vector<80x16xf32>
    %68 = arith.addf %67, %66 : vector<80x16xf32>
    %c0_70 = arith.constant 0 : index
    %c0_71 = arith.constant 0 : index
    %69 = vector.load %arg6[%c0_70, %c0_71] : memref<80x16xf32, #tpu.memory_space<vmem>>, vector<80x16xf32>
    tpu.vector_store %arg6[%c0_70, %c0_71], %68 {strides = array<i32>} : memref<80x16xf32, #tpu.memory_space<vmem>>, vector<80x16xf32>,
    %c0_72 = arith.constant 0 : index
    %c22 = arith.constant 22 : index
    %c0_73 = arith.constant 0 : index
    %70 = vector.load %arg1[%c0_72, %c22, %c0_73] : memref<1x108x8xf32, #tpu.memory_space<vmem>>, vector<1x80x8xf32>
    %71 = vector.shape_cast %70 : vector<1x80x8xf32> to vector<80x8xf32>
    %72 = arith.truncf %71 : vector<80x8xf32> to vector<80x8xbf16>
    %c8 = arith.constant 8 : index
    %c0_74 = arith.constant 0 : index
    %c0_75 = arith.constant 0 : index
    %73 = vector.load %arg2[%c8, %c0_74, %c0_75] : memref<9x8x16xbf16, #tpu.memory_space<vmem>>, vector<1x8x16xbf16>
    %74 = vector.shape_cast %73 : vector<1x8x16xbf16> to vector<8x16xbf16>
    %cst_76 = arith.constant dense<0.000000e+00> : vector<80x16xf32>
    %75 = tpu.matmul %72, %74, %cst_76 {dimension_numbers = #tpu.dot_dimension_numbers<[1], [0], [0], [1], [0, 0, 1, 1], [], []>} : vector<80x8xbf16>, vector<8x16xbf16>, vector<80x16xf32> -> vector<80x16xf32>
    %c0_77 = arith.constant 0 : index
    %c0_78 = arith.constant 0 : index
    %76 = vector.load %arg6[%c0_77, %c0_78] : memref<80x16xf32, #tpu.memory_space<vmem>>, vector<80x16xf32>
    %77 = arith.addf %76, %75 : vector<80x16xf32>
    %c0_79 = arith.constant 0 : index
    %c0_80 = arith.constant 0 : index
    %78 = vector.load %arg6[%c0_79, %c0_80] : memref<80x16xf32, #tpu.memory_space<vmem>>, vector<80x16xf32>
    tpu.vector_store %arg6[%c0_79, %c0_80], %77 {strides = array<i32>} : memref<80x16xf32, #tpu.memory_space<vmem>>, vector<80x16xf32>,
    %c0_81 = arith.constant 0 : index
    %c0_82 = arith.constant 0 : index
    %79 = vector.load %arg6[%c0_81, %c0_82] : memref<80x16xf32, #tpu.memory_space<vmem>>, vector<69x16xf32>
    %c1_83 = arith.constant 1 : index
    %c0_84 = arith.constant 0 : index
    %80 = vector.load %arg6[%c1_83, %c0_84] : memref<80x16xf32, #tpu.memory_space<vmem>>, vector<69x16xf32>
    %81 = arith.maximumf %79, %80 : vector<69x16xf32>
    %c10_85 = arith.constant 10 : index
    %c0_86 = arith.constant 0 : index
    %82 = vector.load %arg6[%c10_85, %c0_86] : memref<80x16xf32, #tpu.memory_space<vmem>>, vector<69x16xf32>
    %c11_87 = arith.constant 11 : index
    %c0_88 = arith.constant 0 : index
    %83 = vector.load %arg6[%c11_87, %c0_88] : memref<80x16xf32, #tpu.memory_space<vmem>>, vector<69x16xf32>
    %84 = arith.maximumf %82, %83 : vector<69x16xf32>
    %85 = arith.maximumf %81, %84 : vector<69x16xf32>
    %c0_89 = arith.constant 0 : index
    %c0_90 = arith.constant 0 : index
    %86 = vector.load %arg4[%c0_89, %c0_90] : memref<16x69xf32, #tpu.memory_space<vmem>>, vector<16x69xf32>
    %cst_91 = arith.constant dense<0.000000e+00> : vector<16x16xf32>
    %87 = tpu.matmul %86, %85, %cst_91 {dimension_numbers = #tpu.dot_dimension_numbers<[1], [0], [0], [1], [0, 0, 1, 1], [], []>} : vector<16x69xf32>, vector<69x16xf32>, vector<16x16xf32> -> vector<16x16xf32>
    %c0_92 = arith.constant 0 : index
    %c0_93 = arith.constant 0 : index
    %88 = vector.load %arg3[%c0_92, %c0_93] : memref<1x16xf32, #tpu.memory_space<vmem>>, vector<1x16xf32>
    %89 = vector.broadcast %88 : vector<1x16xf32> to vector<16x16xf32>
    %90 = arith.addf %87, %89 : vector<16x16xf32>
    %cst_94 = arith.constant 0.000000e+00 : f32
    %91 = vector.broadcast %cst_94 : f32 to vector<16x16xf32>
    %92 = arith.maximumf %90, %91 : vector<16x16xf32>
    %c0_95 = arith.constant 0 : index
    %c0_96 = arith.constant 0 : index
    %c0_97 = arith.constant 0 : index
    %93 = vector.load %arg5[%c0_95, %c0_96, %c0_97] : memref<1x16x16xf32, #tpu.memory_space<vmem>>, vector<1x16x16xf32>
    %94 = vector.shape_cast %93 : vector<1x16x16xf32> to vector<16x16xf32>
    %95 = vector.shape_cast %92 : vector<16x16xf32> to vector<1x16x16xf32>
    tpu.vector_store %arg5[%c0_95, %c0_96, %c0_97], %95 {strides = array<i32>} : memref<1x16x16xf32, #tpu.memory_space<vmem>>, vector<1x16x16xf32>,
    return
  }
  func.func @transform_0(%arg0: i32) -> (i32, i32, i32) {
    %c0_i32 = arith.constant 0 : i32
    %c0_i32_0 = arith.constant 0 : i32
    %c0_i32_1 = arith.constant 0 : i32
    return %arg0, %c0_i32, %c0_i32_0 : i32, i32, i32
  }
  func.func @transform_1(%arg0: i32) -> (i32, i32, i32) {
    %c0_i32 = arith.constant 0 : i32
    %c0_i32_0 = arith.constant 0 : i32
    %c0_i32_1 = arith.constant 0 : i32
    %c0_i32_2 = arith.constant 0 : i32
    return %c0_i32, %c0_i32_0, %c0_i32_1 : i32, i32, i32
  }
  func.func @transform_2(%arg0: i32) -> (i32, i32) {
    %c0_i32 = arith.constant 0 : i32
    %c0_i32_0 = arith.constant 0 : i32
    %c0_i32_1 = arith.constant 0 : i32
    return %c0_i32, %c0_i32_0 : i32, i32
  }
  func.func @transform_3(%arg0: i32) -> (i32, i32) {
    %c0_i32 = arith.constant 0 : i32
    %c0_i32_0 = arith.constant 0 : i32
    %c0_i32_1 = arith.constant 0 : i32
    return %c0_i32, %c0_i32_0 : i32, i32
  }
  func.func @transform_4(%arg0: i32) -> (i32, i32, i32) {
    %c0_i32 = arith.constant 0 : i32
    %c0_i32_0 = arith.constant 0 : i32
    %c0_i32_1 = arith.constant 0 : i32
    return %arg0, %c0_i32, %c0_i32_0 : i32, i32, i32
  }
}

module attributes {stable_mosaic.version = 11 : i64} {
  func.func @_mlp_kernel(%arg0: memref<2x256xf32, #tpu.memory_space<vmem>>, %arg1: memref<256x32xbf16, #tpu.memory_space<vmem>>, %arg2: memref<1x32xf32, #tpu.memory_space<vmem>>, %arg3: memref<32x32xbf16, #tpu.memory_space<vmem>>, %arg4: memref<1x32xf32, #tpu.memory_space<vmem>>, %arg5: memref<32x32xbf16, #tpu.memory_space<vmem>>, %arg6: memref<1x32xf32, #tpu.memory_space<vmem>>, %arg7: memref<32x10xbf16, #tpu.memory_space<vmem>>, %arg8: memref<1x10xf32, #tpu.memory_space<vmem>>, %arg9: memref<2x10xf32, #tpu.memory_space<vmem>>) attributes {dimension_semantics = [], scalar_prefetch = 0 : i64, scratch_operands = 0 : i64, tpu.core_type = #tpu.core_type<tc>} {
    %c0 = arith.constant 0 : index
    %c0_0 = arith.constant 0 : index
    %0 = vector.load %arg0[%c0, %c0_0] : memref<2x256xf32, #tpu.memory_space<vmem>>, vector<2x256xf32>
    %1 = arith.truncf %0 : vector<2x256xf32> to vector<2x256xbf16>
    %c0_1 = arith.constant 0 : index
    %c0_2 = arith.constant 0 : index
    %2 = vector.load %arg1[%c0_1, %c0_2] : memref<256x32xbf16, #tpu.memory_space<vmem>>, vector<256x32xbf16>
    %cst = arith.constant dense<0.000000e+00> : vector<2x32xf32>
    %3 = tpu.matmul %1, %2, %cst {dimension_numbers = #tpu.dot_dimension_numbers<[1], [0], [0], [1], [0, 0, 1, 1], [], []>} : vector<2x256xbf16>, vector<256x32xbf16>, vector<2x32xf32> -> vector<2x32xf32>
    %c0_3 = arith.constant 0 : index
    %c0_4 = arith.constant 0 : index
    %4 = vector.load %arg2[%c0_3, %c0_4] : memref<1x32xf32, #tpu.memory_space<vmem>>, vector<1x32xf32>
    %5 = vector.broadcast %4 : vector<1x32xf32> to vector<2x32xf32>
    %6 = arith.addf %3, %5 : vector<2x32xf32>
    %cst_5 = arith.constant 0.000000e+00 : f32
    %7 = vector.broadcast %cst_5 : f32 to vector<2x32xf32>
    %8 = arith.maximumf %6, %7 : vector<2x32xf32>
    %9 = arith.truncf %8 : vector<2x32xf32> to vector<2x32xbf16>
    %c0_6 = arith.constant 0 : index
    %c0_7 = arith.constant 0 : index
    %10 = vector.load %arg3[%c0_6, %c0_7] : memref<32x32xbf16, #tpu.memory_space<vmem>>, vector<32x32xbf16>
    %cst_8 = arith.constant dense<0.000000e+00> : vector<2x32xf32>
    %11 = tpu.matmul %9, %10, %cst_8 {dimension_numbers = #tpu.dot_dimension_numbers<[1], [0], [0], [1], [0, 0, 1, 1], [], []>} : vector<2x32xbf16>, vector<32x32xbf16>, vector<2x32xf32> -> vector<2x32xf32>
    %c0_9 = arith.constant 0 : index
    %c0_10 = arith.constant 0 : index
    %12 = vector.load %arg4[%c0_9, %c0_10] : memref<1x32xf32, #tpu.memory_space<vmem>>, vector<1x32xf32>
    %13 = vector.broadcast %12 : vector<1x32xf32> to vector<2x32xf32>
    %14 = arith.addf %11, %13 : vector<2x32xf32>
    %cst_11 = arith.constant 0.000000e+00 : f32
    %15 = vector.broadcast %cst_11 : f32 to vector<2x32xf32>
    %16 = arith.maximumf %14, %15 : vector<2x32xf32>
    %17 = arith.truncf %16 : vector<2x32xf32> to vector<2x32xbf16>
    %c0_12 = arith.constant 0 : index
    %c0_13 = arith.constant 0 : index
    %18 = vector.load %arg5[%c0_12, %c0_13] : memref<32x32xbf16, #tpu.memory_space<vmem>>, vector<32x32xbf16>
    %cst_14 = arith.constant dense<0.000000e+00> : vector<2x32xf32>
    %19 = tpu.matmul %17, %18, %cst_14 {dimension_numbers = #tpu.dot_dimension_numbers<[1], [0], [0], [1], [0, 0, 1, 1], [], []>} : vector<2x32xbf16>, vector<32x32xbf16>, vector<2x32xf32> -> vector<2x32xf32>
    %c0_15 = arith.constant 0 : index
    %c0_16 = arith.constant 0 : index
    %20 = vector.load %arg6[%c0_15, %c0_16] : memref<1x32xf32, #tpu.memory_space<vmem>>, vector<1x32xf32>
    %21 = vector.broadcast %20 : vector<1x32xf32> to vector<2x32xf32>
    %22 = arith.addf %19, %21 : vector<2x32xf32>
    %cst_17 = arith.constant 0.000000e+00 : f32
    %23 = vector.broadcast %cst_17 : f32 to vector<2x32xf32>
    %24 = arith.maximumf %22, %23 : vector<2x32xf32>
    %25 = arith.truncf %24 : vector<2x32xf32> to vector<2x32xbf16>
    %c0_18 = arith.constant 0 : index
    %c0_19 = arith.constant 0 : index
    %26 = vector.load %arg7[%c0_18, %c0_19] : memref<32x10xbf16, #tpu.memory_space<vmem>>, vector<32x10xbf16>
    %cst_20 = arith.constant dense<0.000000e+00> : vector<2x10xf32>
    %27 = tpu.matmul %25, %26, %cst_20 {dimension_numbers = #tpu.dot_dimension_numbers<[1], [0], [0], [1], [0, 0, 1, 1], [], []>} : vector<2x32xbf16>, vector<32x10xbf16>, vector<2x10xf32> -> vector<2x10xf32>
    %c0_21 = arith.constant 0 : index
    %c0_22 = arith.constant 0 : index
    %28 = vector.load %arg8[%c0_21, %c0_22] : memref<1x10xf32, #tpu.memory_space<vmem>>, vector<1x10xf32>
    %29 = vector.broadcast %28 : vector<1x10xf32> to vector<2x10xf32>
    %30 = arith.addf %27, %29 : vector<2x10xf32>
    %c0_23 = arith.constant 0 : index
    %c0_24 = arith.constant 0 : index
    %31 = vector.load %arg9[%c0_23, %c0_24] : memref<2x10xf32, #tpu.memory_space<vmem>>, vector<2x10xf32>
    tpu.vector_store %arg9[%c0_23, %c0_24], %30 {strides = array<i32>} : memref<2x10xf32, #tpu.memory_space<vmem>>, vector<2x10xf32>,
    return
  }
}

</mosaic_0001>

<bundles_post_ra>
// kernel: cnn_forward.5
= control target key start
LH: loop header
LB: loop body
LE: loop exit
PB: predicated region body
PF: predicated region fallthrough
CT: control target
= control target key end

     0   :  { %s730_s0 = inlined_call_operand.vmem [shape: f32[2,256], index: 0, kind: input, shape index: {}]   ;;  %s731_s1 = inlined_call_operand.vmem [shape: bf16[256,32], index: 1, kind: input, shape index: {}]   ;;  %s732_s2 = inlined_call_operand.vmem [shape: f32[1,32], index: 2, kind: input, shape index: {}]   ;;  %s733_s3 = inlined_call_operand.vmem [shape: bf16[32,32], index: 3, kind: input, shape index: {}]   ;;  %s734_s4 = inlined_call_operand.vmem [shape: f32[1,32], index: 4, kind: input, shape index: {}]   ;;  %s735_s5 = inlined_call_operand.vmem [shape: bf16[32,32], index: 5, kind: input, shape index: {}]   ;;  %s736_s6 = inlined_call_operand.vmem [shape: f32[1,32], index: 6, kind: input, shape index: {}]   ;;  %s737_s7 = inlined_call_operand.vmem [shape: bf16[32,10], index: 7, kind: input, shape index: {}]   ;;  %s738_s8 = inlined_call_operand.vmem [shape: f32[1,10], index: 8, kind: input, shape index: {}]   ;;  %s739_s9 = inlined_call_operand.hbm [shape: f32[2,10], index: 9, kind: output, shape index: {}]  }
   0x1   :  { %v532_v0 = vld [vmem:[%s731_s1 + $0x40] sm:$0xff]   ;;  %v534_v2 = vld [vmem:[%s731_s1 + $0x48] sm:$0xff]   ;;  %v536_v4 = vld [vmem:[%s731_s1 + $0x50] sm:$0xff]  }
   0x2   :  { %v533_v1 = vld [vmem:[%s731_s1] sm:$0xff]   ;;  %474 = vmatprep.subr.bf16.mxu0 %v532_v0  ;;  %v535_v3 = vld [vmem:[%s731_s1 + $0x8] sm:$0xff]   ;;  %v537_v5 = vld [vmem:[%s731_s1 + $0x10] sm:$0xff]  }
   0x3   :  { %475 = vmatpush3.bf16.msra.mxu0 %v533_v1  ;;  %v538_v6 = vld [vmem:[%s731_s1 + $0x58] sm:$0xff]   ;;  %v540_v8 = vld [vmem:[%s731_s1 + $0x60] sm:$0xff]   ;;  %v542_v10 = vld [vmem:[%s731_s1 + $0x68] sm:$0xff]  }
   0x4   :  { %476 = vmatprep.subr.bf16.mxu0 %v534_v2  ;;  %v539_v7 = vld [vmem:[%s731_s1 + $0x18] sm:$0xff]   ;;  %v541_v9 = vld [vmem:[%s731_s1 + $0x20] sm:$0xff]   ;;  %v543_v12 = vld [vmem:[%s731_s1 + $0x28] sm:$0xff]  }
   0x5   :  { %v444_v11 = vld.sshfl [vmem:[%s730_s0] sm:$0x33 pattern:$0x76325410]  ;;  %v544_v14 = vld [vmem:[%s731_s1 + $0x70] sm:$0xff]  }
   0x6   :  { %v43_v13 = vcombine.high %v444_v11, %v444_v11 }
   0x7   :  { %477 = vmatpush3.bf16.msra.mxu0 %v535_v3 }
   0x8   :  { %478 = vmatprep.subr.bf16.mxu0 %v536_v4  ;;  %v47_v15 = vpack.c.bf16 %v43_v13, %v43_v13 }
   0xb   :  { %479 = vmatpush3.bf16.msra.mxu0 %v537_v5 }
   0xc   :  { %480 = vmatprep.subr.bf16.mxu0 %v538_v6 }
   0xf   :  { %481 = vmatpush3.bf16.msra.mxu0 %v539_v7 }
  0x10   :  { %482 = vmatprep.subr.bf16.mxu0 %v540_v8 }
  0x13   :  { %483 = vmatpush3.bf16.msra.mxu0 %v541_v9 }
  0x14   :  { %484 = vmatprep.subr.bf16.mxu0 %v542_v10 }
  0x15   :  { %14 = vsyncpa [#allocation3], 0  ;;  %215 = vmatprep.mubr.bf16.mxu0 %v47_v15  ;;  %v545_v16 = vld [vmem:[%s731_s1 + $0x30] sm:$0xff]   ;;  %v546_v17 = vld [vmem:[%s731_s1 + $0x78] sm:$0xff]   ;;  %v46_v19 = vpack.c.bf16 %v444_v11, %v444_v11  ;;  %v578_v21 = vmov 0.0   ;;  %vm579_vm0 = vmmov 0  }
  0x16   :  { %v547_v18 = vld [vmem:[%s731_s1 + $0x38] sm:$0xff]   ;;  %v548_v20 = vld [vmem:[%s733_s3] sm:$0xff]   ;;  %505 = vmatprep.subr.bf16.mxu1 %v578_v21  ;;  %v549_v22 = vld [vmem:[%s733_s3 + $0x8] sm:$0xff]   ;;  %509 = vmatprep.mubr.msk.bf16.mxu1 %vm579_vm0, %v578_v21  ;;  %vm248_vm1 = vcmask 261120   ;;  %s580_s15 = smov [#allocation2]   ;;  %vm428_vm2 = vcmask 74752  }
  0x17   :  { %485 = vmatpush3.bf16.msra.mxu0 %v543_v12  ;;  %506 = vmatpush3.bf16.msra.mxu1 %v548_v20  ;;  %v445_v24 = vld [vmem:[%s732_s2] ss:$0 sm:$0xff]  ;;  %v551_v33 = vld [vmem:[%s735_s5 + $0x8] sm:$0xff]  }
  0x18   :  { %486 = vmatprep.subr.bf16.mxu0 %v544_v14  ;;  %507 = vmatprep.subr.bf16.mxu1 %v578_v21  ;;  %v550_v31 = vld [vmem:[%s735_s5] sm:$0xff]   ;;  %v553_v43 = vld [vmem:[%s737_s7 + $0x8] sm:$0xff]  }
  0x19   :  { %v462_v34 = vld [vmem:[%s734_s4] ss:$0 sm:$0xff] }
  0x1a   :  { %v552_v41 = vld [vmem:[%s737_s7] sm:$0xff]   ;;  %s436_s7 = sshll.u32 %s580_s15, 4  ;;  %s437_s7 = int_to_ptr.vmem [resolvable:$true] %s436_s7 }
  0x1b   :  { %487 = vmatpush3.bf16.msra.mxu0 %v545_v16  ;;  %508 = vmatpush3.bf16.msra.mxu1 %v549_v22  ;;  %v466_v44 = vld [vmem:[%s736_s6] ss:$0 sm:$0xff]  ;;  %s554_s6 = scalar_lea.vmem %s437_s7, 32  ;;  %p559_p1 = scmp.lt.s32.totalorder %s437_s7, %s437_s7 }
  0x1c   :  { %488 = vmatprep.subr.bf16.mxu0 %v546_v17  ;;  %513 = vmatprep.subr.bf16.mxu1 %v578_v21  ;;  %v470_v52 = vld [vmem:[%s738_s8] ss:$0 sm:$0xff]  ;;  %p555_p0 = scmp.ne.s32.totalorder %s437_s7, %s554_s6  ;;  %p560_p2 = scmp.lt.s32.totalorder %s554_s6, %s554_s6 }
  0x1e   :  { %p561_p3 = por %p560_p2, %p559_p1 }
  0x1f   :  { %489 = vmatpush3.bf16.msra.mxu0 %v547_v18 }
  0x20   :  { %p562_p4 = pnand %p561_p3, %p555_p0 }
  0x22   :  { %216 = vmatmul.mubr.bf16.vlgmr.msra.gmra.mrb[0].mxu0 %v46_v19 }
  0xf5   :  { %v490_v23 = vpop.f32.mrb[0].mxu0 }
  0xf6   :  { %v491_v25 = vpop.f32.mrb[1].mxu0 }
  0xf7   :  { %v492_v26 = vadd.f32 %v491_v25, %v490_v23  ;;  %v493_v27 = vpop.f32.mrb[2].mxu0 }
  0xf8   :  { %v494_v28 = vpop.f32.mrb[3].mxu0 }
  0xf9   :  { %v218_v29 = vadd.f32 %v492_v26, %v445_v24 }
  0xfb   :  { %v223_v30 = vmax.f32 %v218_v29, 0.0 }
  0xfd   :  { %v224_v32 = vpack.c.bf16 %v223_v30, %v223_v30 }
  0xff   :  { %510 = vmatmul.mubr.msk.bf16.vlgmr.msra.gmra.mrb[0].mxu1 %vm248_vm1, %v224_v32 }
 0x100   :  { %514 = vmatpush3.bf16.msra.mxu1 %v550_v31  ;;  %517 = vmatprep.mubr.msk.bf16.mxu1 %vm579_vm0, %v578_v21 }
 0x101   :  { %515 = vmatprep.subr.bf16.mxu1 %v578_v21 }
 0x104   :  { %516 = vmatpush3.bf16.msra.mxu1 %v551_v33 }
 0x105   :  { %521 = vmatprep.subr.bf16.mxu1 %v578_v21 }
 0x1d2   :  { %v286_v35 = vpop.f32.mrb[0].mxu1 }
 0x1d3   :  { %v287_v36 = vadd.f32 %v462_v34, %v286_v35  ;;  %v511_v37 = vpop.f32.mrb[1].mxu1 }
 0x1d4   :  { %v289_v38 = vpop.f32.mrb[2].mxu1 }
 0x1d5   :  { %v292_v39 = vmax.f32 %v287_v36, 0.0  ;;  %v512_v40 = vpop.f32.mrb[3].mxu1 }
 0x1d7   :  { %v293_v42 = vpack.c.bf16 %v292_v39, %v292_v39 }
 0x1d9   :  { %518 = vmatmul.mubr.msk.bf16.vlgmr.msra.gmra.mrb[4].mxu1 %vm248_vm1, %v293_v42 }
 0x1da   :  { %522 = vmatpush3.bf16.msra.mxu1 %v552_v41  ;;  %525 = vmatprep.mubr.msk.bf16.mxu1 %vm579_vm0, %v578_v21 }
 0x1db   :  { %523 = vmatprep.subr.bf16.mxu1 %v578_v21 }
 0x1de   :  { %524 = vmatpush3.bf16.msra.mxu1 %v553_v43 }
 0x2ac   :  { %v354_v45 = vpop.f32.mrb[4].mxu1 }
 0x2ad   :  { %v355_v46 = vadd.f32 %v466_v44, %v354_v45  ;;  %v519_v47 = vpop.f32.mrb[5].mxu1 }
 0x2ae   :  { %v357_v48 = vpop.f32.mrb[6].mxu1 }
 0x2af   :  { %v360_v49 = vmax.f32 %v355_v46, 0.0  ;;  %v520_v50 = vpop.f32.mrb[7].mxu1 }
 0x2b1   :  { %v361_v51 = vpack.c.bf16 %v360_v49, %v360_v49 }
 0x2b3   :  { %526 = vmatmul.mubr.msk.bf16.vlgmr.msra.gmra.mrb[8].mxu1 %vm248_vm1, %v361_v51 }
 0x386   :  { %v422_v53 = vpop.f32.mrb[8].mxu1 }
 0x387   :  { %v423_v54 = vadd.f32 %v470_v52, %v422_v53  ;;  %v527_v55 = vpop.f32.mrb[9].mxu1 }
 0x388   :  { %v425_v56 = vpop.f32.mrb[10].mxu1 }
 0x389   :  { %v528_v57 = vpop.f32.mrb[11].mxu1  ;;  %429 = vst.msk [vmem:[#allocation2] sm:$0x3] %vm428_vm2, %v423_v54 }
 0x38a   :  { %565 = shalt.err (!%p562_p4)
}
 0x38b   :  { %s566_s8 = scalar_lea.hbm %s739_s9, 32 }
 0x38c   :  { %p567_p5 = scmp.ne.s32.totalorder %s739_s9, %s566_s8  ;;  %p570_p6 = scmp.lt.u32.totalorder %s566_s8, %s739_s9 }
 0x38e   :  { %p572_p7 = pnand %p570_p6, %p567_p5 }
 0x390   :  { %575 = shalt.err (!%p572_p7)
}
 0x391   :  { %439 = dma.vmem_to_hbm [thread:$0]  %s437_s7, 32, %s739_s9, [#allocation3]  }
 0x392   :  { %576 = dma.done.wait [#allocation3], 32  }
 0x393   :  { %577 = vsyncadd [#allocation3], 4294967264 }
 0x394   :  { %443 = vsyncpa [#allocation3], 1 }

// kernel: cnn_forward.4
= control target key start
LH: loop header
LB: loop body
LE: loop exit
PB: predicated region body
PF: predicated region fallthrough
CT: control target
= control target key end

     0   :  { %s2056_s15 = smov 0   ;;  %s2435_s0 = inlined_call_operand.vmem [shape: f32[2,108,8], index: 0, kind: input, shape index: {}]   ;;  %s2436_s1 = inlined_call_operand.vmem [shape: bf16[9,8,16], index: 1, kind: input, shape index: {}]   ;;  %s2437_s2 = inlined_call_operand.vmem [shape: f32[1,16], index: 2, kind: input, shape index: {}]   ;;  %s2438_s3 = inlined_call_operand.vmem [shape: f32[16,69], index: 3, kind: input, shape index: {}]   ;;  %s2439_s4 = inlined_call_operand.vmem [shape: f32[2,16,16], index: 4, kind: output, shape index: {}]  }
   0x1 LB: > { %s1640_s16 = sadd.s32 4294967295, %s2027_s15   ;;  %p1644_p0 = scmp.ge.s32.totalorder %s2027_s15, 1  ;;  %s2027_s15 = sphi %s2056_s15, %s14_s15  }
   0x2   : > { %p162_p1 = scmp.lt.s32.totalorder %s2027_s15, 3 }
   0x4   : > { %p163_p2 = pnand %p1644_p0, %p162_p1 }
   0x5   : > { %v214_v0 = vld [vmem:[%s2436_s1] sm:$0xf] (!%p163_p2)  ;;  %vm231_vm0 = vcmask (!%p163_p2), 1043456   ;;  %p188_p3 = scmp.lt.s32.totalorder (!%p163_p2), %s1640_s16, 1  ;;  %v2029_v1 = vmov (!%p163_p2), 0.0   ;;  %vm2030_vm1 = vmmov (!%p163_p2), 0  }
   0x6   : > { %166 = sbr.rel (%p163_p2) target bundleno = 654 (0x28e), region = 36  ;;  %1773 = vmatprep.subr.bf16.mxu0 (!%p163_p2), %v2029_v1  ;;  %2008 = vmatprep.subr.bf16.mxu1 (!%p163_p2), %v2029_v1  ;;  %v233_v2 = vsel (!%p163_p2), %vm231_vm0, %v214_v0, 0  ;;  %v1653_v3 = vld [vmem:[%s2436_s1 + $0x4] sm:$0xf] (!%p163_p2)  ;;  %v1659_v4 = vld [vmem:[%s2436_s1 + $0x8] sm:$0xf] (!%p163_p2) }
   0x7   : > { %1774 = vmatpush3.bf16.msra.mxu0 (!%p163_p2), %v233_v2  ;;  %2009 = vmatpush3.bf16.msra.mxu1 (!%p163_p2), %v233_v2  ;;  %vm215_vm2 = vcmask (!%p163_p2), 64512   ;;  %v352_v11 = vsel (!%p163_p2), %vm231_vm0, %v1653_v3, 0  ;;  %v490_v12 = vsel (!%p163_p2), %vm231_vm0, %v1659_v4, 0  ;;  %v1665_v24 = vld [vmem:[%s2436_s1 + $0xc] sm:$0xf] (!%p163_p2)  ;;  %vm308_vm3 = vcmask (!%p163_p2), 130048  }
   0x8   : > { %1775 = vmatprep.mubr.msk.bf16.mxu0 (!%p163_p2), %vm2030_vm1, %v2029_v1  ;;  %1787 = vmatprep.mubr.msk.bf16.mxu1 (!%p163_p2), %vm2030_vm1, %v2029_v1  ;;  %v628_v26 = vsel (!%p163_p2), %vm231_vm0, %v1665_v24, 0  ;;  %v1671_v32 = vld [vmem:[%s2436_s1 + $0x10] sm:$0xf] (!%p163_p2)  ;;  %v1677_v56 = vld [vmem:[%s2436_s1 + $0x14] sm:$0xf] (!%p163_p2)  ;;  %vm1495_vm4 = vcmask (!%p163_p2), 564224  }
   0x9   : > { %1795 = vmatprep.subr.bf16.mxu1 (!%p163_p2), %v2029_v1  ;;  %1817 = vmatprep.subr.bf16.mxu0 (!%p163_p2), %v2029_v1  ;;  %v766_v34 = vsel (!%p163_p2), %vm231_vm0, %v1671_v32, 0  ;;  %v904_v58 = vsel (!%p163_p2), %vm231_vm0, %v1677_v56, 0  ;;  %v1683_v62 = vld [vmem:[%s2436_s1 + $0x18] sm:$0xf] (!%p163_p2)  ;;  %vm1502_vm5 = vcmask (!%p163_p2), 1044480  }
   0xa   : > { %v1042_v0 = vsel (!%p163_p2), %vm231_vm0, %v1683_v62, 0 }
   0xd   : > { %s2441_s16 = smov (!%p188_p3, %s1640_s16), 1 }
   0xe   : > { %s2010_s19 = smul.u32 112, %s2441_s16  ;;  %s1707_s21 = sshll.u32 %s2441_s16, 4 }
   0xf   : > { %s197_s24 = scalar_lea.vmem %s2439_s4, %s1707_s21 }
  0x10   : > { %s2082_s22 = scalar_lea.vmem %s2435_s0, %s2010_s19 }
  0x11   : > { %v199_v5 = vld [vmem:[%s2082_s22] sm:$0xff]  ;;  %v200_v6 = vld [vmem:[%s2082_s22 + $0x8] sm:$0xff]  ;;  %v205_v7 = vld [vmem:[%s2082_s22 + $0x30] sm:$0xff] }
  0x12   : > { %v209_v8 = vpack.c.bf16 %v200_v6, %v199_v5  ;;  %v206_v9 = vld [vmem:[%s2082_s22 + $0x38] sm:$0xff]  ;;  %v201_v13 = vld [vmem:[%s2082_s22 + $0x10] sm:$0xff]  ;;  %v207_v15 = vld [vmem:[%s2082_s22 + $0x40] sm:$0xff] }
  0x13   : > { %v212_v10 = vpack.c.bf16 %v206_v9, %v205_v7  ;;  %v202_v14 = vld [vmem:[%s2082_s22 + $0x18] sm:$0xff]  ;;  %v208_v16 = vld [vmem:[%s2082_s22 + $0x48] sm:$0xff]  ;;  %v203_v19 = vld [vmem:[%s2082_s22 + $0x20] sm:$0xff] }
  0x14   : > { %1776 = vmatmul.mubr.msk.bf16.vlgmr.msra.gmra.mrb[0].mxu0 %vm215_vm2, %v209_v8  ;;  %v210_v17 = vpack.c.bf16 %v202_v14, %v201_v13  ;;  %v213_v18 = vpack.c.bf16 %v208_v16, %v207_v15  ;;  %v204_v20 = vld [vmem:[%s2082_s22 + $0x28] sm:$0xff]  ;;  %v321_v29 = vld [vmem:[%s2082_s22 + $0x11] sm:$0xff]  ;;  %v322_v30 = vld [vmem:[%s2082_s22 + $0x19] sm:$0xff] }
  0x15   : > { %1788 = vmatmul.mubr.msk.bf16.vlgmr.msra.gmra.mrb[0].mxu1 %vm215_vm2, %v212_v10  ;;  %1779 = vmatprep.mubr.msk.bf16.mxu0 %vm2030_vm1, %v2029_v1  ;;  %v319_v21 = vld [vmem:[%s2082_s22 + $0x1] sm:$0xff]  ;;  %v320_v22 = vld [vmem:[%s2082_s22 + $0x9] sm:$0xff]  ;;  %v211_v23 = vpack.c.bf16 %v204_v20, %v203_v19  ;;  %v330_v33 = vpack.c.bf16 %v322_v30, %v321_v29  ;;  %v459_v35 = vld [vmem:[%s2082_s22 + $0x12] sm:$0xff] }
  0x16   : > { %1791 = vmatprep.mubr.msk.bf16.mxu1 %vm2030_vm1, %v2029_v1  ;;  %1796 = vmatpush3.bf16.msra.mxu1 %v352_v11  ;;  %v329_v25 = vpack.c.bf16 %v320_v22, %v319_v21  ;;  %v457_v27 = vld [vmem:[%s2082_s22 + $0x2] sm:$0xff]  ;;  %v458_v28 = vld [vmem:[%s2082_s22 + $0xa] sm:$0xff]  ;;  %v460_v36 = vld [vmem:[%s2082_s22 + $0x1a] sm:$0xff] }
  0x17   : > { %1818 = vmatpush3.bf16.msra.mxu0 %v490_v12  ;;  %1839 = vmatprep.subr.bf16.mxu1 %v2029_v1  ;;  %v467_v31 = vpack.c.bf16 %v458_v28, %v457_v27  ;;  %v323_v37 = vld [vmem:[%s2082_s22 + $0x21] sm:$0xff]  ;;  %v324_v38 = vld [vmem:[%s2082_s22 + $0x29] sm:$0xff]  ;;  %v468_v39 = vpack.c.bf16 %v460_v36, %v459_v35  ;;  %v325_v43 = vld [vmem:[%s2082_s22 + $0x31] sm:$0xff]  ;;  %v605_v57 = vpack.c.bf16 %v459_v35, %v458_v28 }
  0x18   : > { %1861 = vmatprep.subr.bf16.mxu0 %v2029_v1  ;;  %v331_v40 = vpack.c.bf16 %v324_v38, %v323_v37  ;;  %v461_v41 = vld [vmem:[%s2082_s22 + $0x22] sm:$0xff]  ;;  %v462_v42 = vld [vmem:[%s2082_s22 + $0x2a] sm:$0xff]  ;;  %v326_v44 = vld [vmem:[%s2082_s22 + $0x39] sm:$0xff] }
  0x19   : > { %v469_v45 = vpack.c.bf16 %v462_v42, %v461_v41  ;;  %v332_v46 = vpack.c.bf16 %v326_v44, %v325_v43  ;;  %v463_v47 = vld [vmem:[%s2082_s22 + $0x32] sm:$0xff]  ;;  %v464_v48 = vld [vmem:[%s2082_s22 + $0x3a] sm:$0xff]  ;;  %v328_v50 = vld [vmem:[%s2082_s22 + $0x49] sm:$0xff]  ;;  %v606_v63 = vpack.c.bf16 %v461_v41, %v460_v36 }
  0x1a   : > { %v327_v49 = vld [vmem:[%s2082_s22 + $0x41] sm:$0xff]  ;;  %v470_v51 = vpack.c.bf16 %v464_v48, %v463_v47  ;;  %v466_v54 = vld [vmem:[%s2082_s22 + $0x4a] sm:$0xff]  ;;  %v734_v60 = vld [vmem:[%s2082_s22 + $0x13] sm:$0xff]  ;;  %v607_v5 = vpack.c.bf16 %v463_v47, %v462_v42 }
  0x1b   : > { %v333_v52 = vpack.c.bf16 %v328_v50, %v327_v49  ;;  %v465_v53 = vld [vmem:[%s2082_s22 + $0x42] sm:$0xff]  ;;  %v733_v59 = vld [vmem:[%s2082_s22 + $0xb] sm:$0xff]  ;;  %v738_v7 = vld [vmem:[%s2082_s22 + $0x33] sm:$0xff] }
  0x1c   : > { %1780 = vmatmul.mubr.msk.bf16.gmra.mrb[4].mxu0 %vm215_vm2, %v210_v17  ;;  %v471_v55 = vpack.c.bf16 %v466_v54, %v465_v53  ;;  %v743_v61 = vpack.c.bf16 %v734_v60, %v733_v59  ;;  %v735_v2 = vld [vmem:[%s2082_s22 + $0x1b] sm:$0xff]  ;;  %v736_v3 = vld [vmem:[%s2082_s22 + $0x23] sm:$0xff]  ;;  %v737_v6 = vld [vmem:[%s2082_s22 + $0x2b] sm:$0xff]  ;;  %v608_v9 = vpack.c.bf16 %v465_v53, %v464_v48 }
  0x1d   : > { %1792 = vmatmul.mubr.msk.bf16.gmra.mrb[4].mxu1 %vm215_vm2, %v213_v18  ;;  %1783 = vmatprep.mubr.msk.bf16.mxu0 %vm2030_vm1, %v2029_v1  ;;  %v744_v4 = vpack.c.bf16 %v736_v3, %v735_v2  ;;  %v745_v8 = vpack.c.bf16 %v738_v7, %v737_v6  ;;  %v739_v10 = vld [vmem:[%s2082_s22 + $0x3b] sm:$0xff]  ;;  %v740_v11 = vld [vmem:[%s2082_s22 + $0x43] sm:$0xff]  ;;  %v604_v12 = vld [vmem:[%s2082_s22 + $0x52] sm:$0xff] }
  0x1e   : > { %1797 = vmatprep.mubr.msk.bf16.mxu1 %vm2030_vm1, %v2029_v1  ;;  %v746_v13 = vpack.c.bf16 %v740_v11, %v739_v10  ;;  %v609_v14 = vpack.c.bf16 %v604_v12, %v466_v54  ;;  %v741_v15 = vld [vmem:[%s2082_s22 + $0x4b] sm:$0xff]  ;;  %v742_v16 = vld [vmem:[%s2082_s22 + $0x53] sm:$0xff]  ;;  %v1689_v20 = vld [vmem:[%s2436_s1 + $0x1c] sm:$0xf] }
  0x1f   : > { %v871_v17 = vld [vmem:[%s2082_s22 + $0xc] sm:$0xff]  ;;  %v872_v18 = vld [vmem:[%s2082_s22 + $0x14] sm:$0xff]  ;;  %v747_v19 = vpack.c.bf16 %v742_v16, %v741_v15  ;;  %v1180_v22 = vsel %vm231_vm0, %v1689_v20, 0  ;;  %v874_v24 = vld [vmem:[%s2082_s22 + $0x24] sm:$0xff] }
  0x20   : > { %v881_v21 = vpack.c.bf16 %v872_v18, %v871_v17  ;;  %v875_v29 = vld [vmem:[%s2082_s22 + $0x2c] sm:$0xff]  ;;  %v876_v30 = vld [vmem:[%s2082_s22 + $0x34] sm:$0xff]  ;;  %v1018_v41 = vld [vmem:[%s2082_s22 + $0x5c] sm:$0xff] }
  0x21   : > { %v883_v32 = vpack.c.bf16 %v876_v30, %v875_v29  ;;  %v879_v37 = vld [vmem:[%s2082_s22 + $0x4c] sm:$0xff]  ;;  %v880_v38 = vld [vmem:[%s2082_s22 + $0x54] sm:$0xff]  ;;  %v1148_v43 = vld [vmem:[%s2082_s22 + $0x1d] sm:$0xff] }
  0x22   : > { %v1147_v42 = vld [vmem:[%s2082_s22 + $0x15] sm:$0xff]  ;;  %v1023_v44 = vpack.c.bf16 %v1018_v41, %v880_v38  ;;  %v1286_v47 = vld [vmem:[%s2082_s22 + $0x1e] sm:$0xff]  ;;  %v1150_v49 = vld [vmem:[%s2082_s22 + $0x2d] sm:$0xff] }
  0x23   : > { %v1149_v48 = vld [vmem:[%s2082_s22 + $0x25] sm:$0xff]  ;;  %v1288_v53 = vld [vmem:[%s2082_s22 + $0x2e] sm:$0xff]  ;;  %v1293_v7 = vld [vmem:[%s2082_s22 + $0x56] sm:$0xff] }
  0x24   : > { %1784 = vmatmul.mubr.msk.bf16.gmra.mrb[8].mxu0 %vm215_vm2, %v211_v23  ;;  %v873_v23 = vld [vmem:[%s2082_s22 + $0x1c] sm:$0xff]  ;;  %v1153_v60 = vld [vmem:[%s2082_s22 + $0x45] sm:$0xff]  ;;  %v1292_v2 = vld [vmem:[%s2082_s22 + $0x4e] sm:$0xff] }
  0x25   : > { %1798 = vmatmul.mubr.msk.bf16.vlgmr.msra.gmra.mrb[8].mxu1 %vm215_vm2, %v329_v25  ;;  %1819 = vmatprep.mubr.msk.bf16.mxu0 %vm2030_vm1, %v2029_v1  ;;  %v1019_v25 = vpack.c.bf16 %v873_v23, %v872_v18  ;;  %v882_v27 = vpack.c.bf16 %v874_v24, %v873_v23  ;;  %v1151_v54 = vld [vmem:[%s2082_s22 + $0x35] sm:$0xff]  ;;  %v1290_v59 = vld [vmem:[%s2082_s22 + $0x3e] sm:$0xff] }
  0x26   : > { %1801 = vmatprep.mubr.msk.bf16.mxu1 %vm2030_vm1, %v2029_v1  ;;  %1840 = vmatpush3.bf16.msra.mxu1 %v628_v26  ;;  %v1695_v26 = vld [vmem:[%s2436_s1 + $0x20] sm:$0xf]  ;;  %v1155_v3 = vld [vmem:[%s2082_s22 + $0x55] sm:$0xff] }
  0x27   : > { %1883 = vmatprep.subr.bf16.mxu1 %v2029_v1  ;;  %v1318_v28 = vsel %vm231_vm0, %v1695_v26, 0 }
  0x2c   : > { %1820 = vmatmul.mubr.msk.bf16.vlgmr.msra.gmra.mrb[12].mxu0 %vm215_vm2, %v467_v31  ;;  %v1020_v31 = vpack.c.bf16 %v875_v29, %v874_v24 }
  0x2d   : > { %1802 = vmatmul.mubr.msk.bf16.gmra.mrb[12].mxu1 %vm215_vm2, %v330_v33  ;;  %1823 = vmatprep.mubr.msk.bf16.mxu0 %vm2030_vm1, %v2029_v1  ;;  %v877_v33 = vld [vmem:[%s2082_s22 + $0x3c] sm:$0xff] }
  0x2e   : > { %1805 = vmatprep.mubr.msk.bf16.mxu1 %vm2030_vm1, %v2029_v1  ;;  %1862 = vmatpush3.bf16.msra.mxu0 %v766_v34  ;;  %v878_v34 = vld [vmem:[%s2082_s22 + $0x44] sm:$0xff]  ;;  %v1021_v35 = vpack.c.bf16 %v877_v33, %v876_v30 }
  0x2f   : > { %1905 = vmatprep.subr.bf16.mxu0 %v2029_v1  ;;  %v884_v36 = vpack.c.bf16 %v878_v34, %v877_v33 }
  0x34   : > { %1824 = vmatmul.mubr.msk.bf16.gmra.mrb[16].mxu0 %vm215_vm2, %v468_v39  ;;  %v1022_v39 = vpack.c.bf16 %v879_v37, %v878_v34 }
  0x35   : > { %1806 = vmatmul.mubr.msk.bf16.gmra.mrb[16].mxu1 %vm215_vm2, %v331_v40  ;;  %1827 = vmatprep.mubr.msk.bf16.mxu0 %vm2030_vm1, %v2029_v1  ;;  %v885_v40 = vpack.c.bf16 %v880_v38, %v879_v37 }
  0x36   : > { %1809 = vmatprep.mubr.msk.bf16.mxu1 %vm2030_vm1, %v2029_v1 }
  0x3c   : > { %1828 = vmatmul.mubr.msk.bf16.gmra.mrb[20].mxu0 %vm215_vm2, %v469_v45  ;;  %v1157_v45 = vpack.c.bf16 %v1148_v43, %v1147_v42 }
  0x3d   : > { %1810 = vmatmul.mubr.msk.bf16.gmra.mrb[20].mxu1 %vm215_vm2, %v332_v46  ;;  %1831 = vmatprep.mubr.msk.bf16.mxu0 %vm2030_vm1, %v2029_v1  ;;  %v1285_v46 = vld [vmem:[%s2082_s22 + $0x16] sm:$0xff] }
  0x3e   : > { %1813 = vmatprep.mubr.msk.bf16.mxu1 %vm2030_vm1, %v2029_v1  ;;  %v1295_v50 = vpack.c.bf16 %v1286_v47, %v1285_v46 }
  0x44   : > { %1832 = vmatmul.mubr.msk.bf16.gmra.mrb[24].mxu0 %vm215_vm2, %v470_v51  ;;  %v1158_v51 = vpack.c.bf16 %v1150_v49, %v1149_v48 }
  0x45   : > { %1814 = vmatmul.mubr.msk.bf16.gmra.mrb[24].mxu1 %vm215_vm2, %v333_v52  ;;  %1835 = vmatprep.mubr.msk.bf16.mxu0 %vm2030_vm1, %v2029_v1  ;;  %v1287_v52 = vld [vmem:[%s2082_s22 + $0x26] sm:$0xff] }
  0x46   : > { %1841 = vmatprep.mubr.msk.bf16.mxu1 %vm2030_vm1, %v2029_v1  ;;  %v1296_v56 = vpack.c.bf16 %v1288_v53, %v1287_v52 }
  0x4c   : > { %1836 = vmatmul.mubr.msk.bf16.gmra.mrb[28].mxu0 %vm215_vm2, %v471_v55  ;;  %v1152_v55 = vld [vmem:[%s2082_s22 + $0x3d] sm:$0xff] }
  0x4d   : > { %1842 = vmatmul.mubr.msk.bf16.vlgmr.msra.gmra.mrb[28].mxu1 %vm215_vm2, %v605_v57  ;;  %1863 = vmatprep.mubr.msk.bf16.mxu0 %vm2030_vm1, %v2029_v1  ;;  %v1159_v57 = vpack.c.bf16 %v1152_v55, %v1151_v54 }
  0x4e   : > { %1845 = vmatprep.mubr.msk.bf16.mxu1 %vm2030_vm1, %v2029_v1  ;;  %1884 = vmatpush3.bf16.msra.mxu1 %v904_v58  ;;  %v1289_v58 = vld [vmem:[%s2082_s22 + $0x36] sm:$0xff] }
  0x4f   : > { %1927 = vmatprep.subr.bf16.mxu1 %v2029_v1  ;;  %v1297_v62 = vpack.c.bf16 %v1290_v59, %v1289_v58 }
  0x54   : > { %1864 = vmatmul.mubr.msk.bf16.vlgmr.msra.gmra.mrb[32].mxu0 %vm215_vm2, %v743_v61  ;;  %v1154_v61 = vld [vmem:[%s2082_s22 + $0x4d] sm:$0xff] }
  0x55   : > { %1846 = vmatmul.mubr.msk.bf16.gmra.mrb[32].mxu1 %vm215_vm2, %v606_v63  ;;  %1867 = vmatprep.mubr.msk.bf16.mxu0 %vm2030_vm1, %v2029_v1  ;;  %v1160_v63 = vpack.c.bf16 %v1154_v61, %v1153_v60 }
  0x56   : > { %1849 = vmatprep.mubr.msk.bf16.mxu1 %vm2030_vm1, %v2029_v1  ;;  %1906 = vmatpush3.bf16.msra.mxu0 %v1042_v0  ;;  %v1291_v0 = vld [vmem:[%s2082_s22 + $0x46] sm:$0xff] }
  0x57   : > { %1949 = vmatprep.subr.bf16.mxu0 %v2029_v1 }
  0x5c   : > { %1868 = vmatmul.mubr.msk.bf16.gmra.mrb[36].mxu0 %vm215_vm2, %v744_v4  ;;  %v1156_v4 = vld [vmem:[%s2082_s22 + $0x5d] sm:$0xff] }
  0x5d   : > { %1850 = vmatmul.mubr.msk.bf16.gmra.mrb[36].mxu1 %vm215_vm2, %v607_v5  ;;  %1871 = vmatprep.mubr.msk.bf16.mxu0 %vm2030_vm1, %v2029_v1  ;;  %v1298_v5 = vpack.c.bf16 %v1292_v2, %v1291_v0  ;;  %v1161_v6 = vpack.c.bf16 %v1156_v4, %v1155_v3 }
  0x5e   : > { %1853 = vmatprep.mubr.msk.bf16.mxu1 %vm2030_vm1, %v2029_v1 }
  0x64   : > { %1872 = vmatmul.mubr.msk.bf16.gmra.mrb[40].mxu0 %vm215_vm2, %v745_v8  ;;  %v1294_v8 = vld [vmem:[%s2082_s22 + $0x5e] sm:$0xff] }
  0x65   : > { %1854 = vmatmul.mubr.msk.bf16.gmra.mrb[40].mxu1 %vm215_vm2, %v608_v9  ;;  %1875 = vmatprep.mubr.msk.bf16.mxu0 %vm2030_vm1, %v2029_v1  ;;  %v1299_v9 = vpack.c.bf16 %v1294_v8, %v1293_v7 }
  0x66   : > { %1857 = vmatprep.mubr.msk.bf16.mxu1 %vm2030_vm1, %v2029_v1 }
  0x6c   : > { %1876 = vmatmul.mubr.msk.bf16.gmra.mrb[44].mxu0 %vm215_vm2, %v746_v13 }
  0x6d   : > { %1858 = vmatmul.mubr.msk.bf16.gmra.mrb[44].mxu1 %vm215_vm2, %v609_v14  ;;  %1879 = vmatprep.mubr.msk.bf16.mxu0 %vm2030_vm1, %v2029_v1 }
  0x6e   : > { %1885 = vmatprep.mubr.msk.bf16.mxu1 %vm2030_vm1, %v2029_v1 }
  0x74   : > { %1880 = vmatmul.mubr.msk.bf16.gmra.mrb[48].mxu0 %vm215_vm2, %v747_v19 }
  0x75   : > { %1886 = vmatmul.mubr.msk.bf16.vlgmr.msra.gmra.mrb[48].mxu1 %vm215_vm2, %v881_v21  ;;  %1907 = vmatprep.mubr.msk.bf16.mxu0 %vm2030_vm1, %v2029_v1 }
  0x76   : > { %1889 = vmatprep.mubr.msk.bf16.mxu1 %vm2030_vm1, %v2029_v1  ;;  %1928 = vmatpush3.bf16.msra.mxu1 %v1180_v22 }
  0x7c   : > { %1908 = vmatmul.mubr.msk.bf16.vlgmr.msra.gmra.mrb[52].mxu0 %vm215_vm2, %v1019_v25 }
  0x7d   : > { %1890 = vmatmul.mubr.msk.bf16.gmra.mrb[52].mxu1 %vm215_vm2, %v882_v27  ;;  %1911 = vmatprep.mubr.msk.bf16.mxu0 %vm2030_vm1, %v2029_v1 }
  0x7e   : > { %1893 = vmatprep.mubr.msk.bf16.mxu1 %vm2030_vm1, %v2029_v1  ;;  %1950 = vmatpush3.bf16.msra.mxu0 %v1318_v28 }
  0x84   : > { %1912 = vmatmul.mubr.msk.bf16.gmra.mrb[56].mxu0 %vm215_vm2, %v1020_v31 }
  0x85   : > { %1894 = vmatmul.mubr.msk.bf16.gmra.mrb[56].mxu1 %vm215_vm2, %v883_v32  ;;  %1915 = vmatprep.mubr.msk.bf16.mxu0 %vm2030_vm1, %v2029_v1 }
  0x86   : > { %1897 = vmatprep.mubr.msk.bf16.mxu1 %vm2030_vm1, %v2029_v1 }
  0x8c   : > { %1916 = vmatmul.mubr.msk.bf16.gmra.mrb[60].mxu0 %vm215_vm2, %v1021_v35 }
  0x8d   : > { %1898 = vmatmul.mubr.msk.bf16.gmra.mrb[60].mxu1 %vm215_vm2, %v884_v36  ;;  %1919 = vmatprep.mubr.msk.bf16.mxu0 %vm2030_vm1, %v2029_v1 }
  0x8e   : > { %1901 = vmatprep.mubr.msk.bf16.mxu1 %vm2030_vm1, %v2029_v1 }
  0x94   : > { %1920 = vmatmul.mubr.msk.bf16.gmra.mrb[64].mxu0 %vm215_vm2, %v1022_v39 }
  0x95   : > { %1902 = vmatmul.mubr.msk.bf16.gmra.mrb[64].mxu1 %vm215_vm2, %v885_v40  ;;  %1923 = vmatprep.mubr.msk.bf16.mxu0 %vm2030_vm1, %v2029_v1 }
  0x96   : > { %1929 = vmatprep.mubr.msk.bf16.mxu1 %vm2030_vm1, %v2029_v1 }
  0x9c   : > { %1924 = vmatmul.mubr.msk.bf16.gmra.mrb[68].mxu0 %vm215_vm2, %v1023_v44 }
  0x9d   : > { %1930 = vmatmul.mubr.msk.bf16.vlgmr.msra.gmra.mrb[68].mxu1 %vm215_vm2, %v1157_v45  ;;  %1951 = vmatprep.mubr.msk.bf16.mxu0 %vm2030_vm1, %v2029_v1 }
  0x9e   : > { %1933 = vmatprep.mubr.msk.bf16.mxu1 %vm2030_vm1, %v2029_v1 }
  0xa4   : > { %1952 = vmatmul.mubr.msk.bf16.vlgmr.msra.gmra.mrb[72].mxu0 %vm215_vm2, %v1295_v50 }
  0xa5   : > { %1934 = vmatmul.mubr.msk.bf16.gmra.mrb[72].mxu1 %vm215_vm2, %v1158_v51  ;;  %1955 = vmatprep.mubr.msk.bf16.mxu0 %vm2030_vm1, %v2029_v1 }
  0xa6   : > { %1937 = vmatprep.mubr.msk.bf16.mxu1 %vm2030_vm1, %v2029_v1 }
  0xac   : > { %1956 = vmatmul.mubr.msk.bf16.gmra.mrb[76].mxu0 %vm215_vm2, %v1296_v56 }
  0xad   : > { %1938 = vmatmul.mubr.msk.bf16.gmra.mrb[76].mxu1 %vm215_vm2, %v1159_v57  ;;  %1959 = vmatprep.mubr.msk.bf16.mxu0 %vm2030_vm1, %v2029_v1 }
  0xae   : > { %1941 = vmatprep.mubr.msk.bf16.mxu1 %vm2030_vm1, %v2029_v1 }
  0xb4   : > { %1960 = vmatmul.mubr.msk.bf16.gmra.mrb[80].mxu0 %vm215_vm2, %v1297_v62 }
  0xb5   : > { %1942 = vmatmul.mubr.msk.bf16.gmra.mrb[80].mxu1 %vm215_vm2, %v1160_v63  ;;  %1963 = vmatprep.mubr.msk.bf16.mxu0 %vm2030_vm1, %v2029_v1 }
  0xb6   : > { %1945 = vmatprep.mubr.msk.bf16.mxu1 %vm2030_vm1, %v2029_v1 }
  0xbc   : > { %1964 = vmatmul.mubr.msk.bf16.gmra.mrb[84].mxu0 %vm215_vm2, %v1298_v5 }
  0xbd   : > { %1946 = vmatmul.mubr.msk.bf16.gmra.mrb[84].mxu1 %vm215_vm2, %v1161_v6  ;;  %1967 = vmatprep.mubr.msk.bf16.mxu0 %vm2030_vm1, %v2029_v1 }
  0xc4   : > { %1968 = vmatmul.mubr.msk.bf16.gmra.mrb[88].mxu0 %vm215_vm2, %v1299_v9 }
  0xe7   : > { %v269_v10 = vpop.f32.mrb[0].mxu0 }
  0xe8   : > { %309 = vst.msk [vmem:[#allocation2] sm:$0xff] %vm308_vm3, %v269_v10  ;;  %v293_v11 = vpop.f32.mrb[0].mxu1  ;;  %v1777_v12 = vpop.f32.mrb[1].mxu0 }
  0xe9   : > { %315 = vst.msk [vmem:[#allocation2 + $0x30] sm:$0xff] %vm308_vm3, %v293_v11  ;;  %v1789_v13 = vpop.f32.mrb[1].mxu1  ;;  %v272_v14 = vpop.f32.mrb[2].mxu0 }
  0xea   : > { %310 = vst.msk [vmem:[#allocation2 + $0x8] sm:$0xff] %vm308_vm3, %v272_v14  ;;  %v296_v15 = vpop.f32.mrb[2].mxu1  ;;  %v1778_v16 = vpop.f32.mrb[3].mxu0 }
  0xeb   : > { %316 = vst.msk [vmem:[#allocation2 + $0x38] sm:$0xff] %vm308_vm3, %v296_v15  ;;  %v1790_v1 = vpop.f32.mrb[3].mxu1 }
  0xef   : > { %v277_v17 = vpop.f32.mrb[4].mxu0  ;;  %v427_v27 = vld [vmem:[#allocation2] sm:$0xff] }
  0xf0   : > { %311 = vst.msk [vmem:[#allocation2 + $0x10] sm:$0xff] %vm308_vm3, %v277_v17  ;;  %v301_v18 = vpop.f32.mrb[4].mxu1  ;;  %v1781_v19 = vpop.f32.mrb[5].mxu0  ;;  %v433_v8 = vld [vmem:[#allocation2 + $0x30] sm:$0xff] }
  0xf1   : > { %317 = vst.msk [vmem:[#allocation2 + $0x40] sm:$0xff] %vm308_vm3, %v301_v18  ;;  %v1793_v20 = vpop.f32.mrb[5].mxu1  ;;  %v280_v21 = vpop.f32.mrb[6].mxu0  ;;  %v428_v33 = vld [vmem:[#allocation2 + $0x8] sm:$0xff] }
  0xf2   : > { %312 = vst.msk [vmem:[#allocation2 + $0x18] sm:$0xff] %vm308_vm3, %v280_v21  ;;  %v304_v22 = vpop.f32.mrb[6].mxu1  ;;  %v1782_v23 = vpop.f32.mrb[7].mxu0  ;;  %v434_v15 = vld [vmem:[#allocation2 + $0x38] sm:$0xff] }
  0xf3   : > { %318 = vst.msk [vmem:[#allocation2 + $0x48] sm:$0xff] %vm308_vm3, %v304_v22  ;;  %v1794_v24 = vpop.f32.mrb[7].mxu1 }
  0xf7   : > { %v285_v25 = vpop.f32.mrb[8].mxu0  ;;  %v429_v39 = vld [vmem:[#allocation2 + $0x10] sm:$0xff] }
  0xf8   : > { %313 = vst.msk [vmem:[#allocation2 + $0x20] sm:$0xff] %vm308_vm3, %v285_v25  ;;  %v388_v26 = vpop.f32.mrb[8].mxu1  ;;  %v1785_v28 = vpop.f32.mrb[9].mxu0  ;;  %v435_v23 = vld [vmem:[#allocation2 + $0x40] sm:$0xff] }
  0xf9   : > { %v437_v29 = vadd.f32 %v427_v27, %v388_v26  ;;  %v1799_v30 = vpop.f32.mrb[9].mxu1  ;;  %v288_v31 = vpop.f32.mrb[10].mxu0  ;;  %v430_v46 = vld [vmem:[#allocation2 + $0x18] sm:$0xff] }
  0xfa   : > { %314 = vst.msk [vmem:[#allocation2 + $0x28] sm:$0xff] %vm308_vm3, %v288_v31  ;;  %v391_v32 = vpop.f32.mrb[10].mxu1  ;;  %v1786_v34 = vpop.f32.mrb[11].mxu0  ;;  %v436_v30 = vld [vmem:[#allocation2 + $0x48] sm:$0xff] }
  0xfb   : > { %447 = vst.msk [vmem:[#allocation2] sm:$0xff] %vm308_vm3, %v437_v29  ;;  %v438_v35 = vadd.f32 %v428_v33, %v391_v32  ;;  %v1800_v36 = vpop.f32.mrb[11].mxu1 }
  0xfd   : > { %448 = vst.msk [vmem:[#allocation2 + $0x8] sm:$0xff] %vm308_vm3, %v438_v35 }
  0xff   : > { %v526_v37 = vpop.f32.mrb[12].mxu0  ;;  %v431_v55 = vld [vmem:[#allocation2 + $0x20] sm:$0xff] }
 0x100   : > { %v396_v38 = vpop.f32.mrb[12].mxu1  ;;  %v1821_v40 = vpop.f32.mrb[13].mxu0 }
 0x101   : > { %v439_v41 = vadd.f32 %v429_v39, %v396_v38  ;;  %v1803_v42 = vpop.f32.mrb[13].mxu1  ;;  %v529_v43 = vpop.f32.mrb[14].mxu0  ;;  %v432_v62 = vld [vmem:[#allocation2 + $0x28] sm:$0xff] }
 0x102   : > { %v565_v44 = vld [vmem:[#allocation2] sm:$0xff]  ;;  %v399_v45 = vpop.f32.mrb[14].mxu1  ;;  %v1822_v47 = vpop.f32.mrb[15].mxu0 }
 0x103   : > { %449 = vst.msk [vmem:[#allocation2 + $0x10] sm:$0xff] %vm308_vm3, %v439_v41  ;;  %v575_v48 = vadd.f32 %v565_v44, %v526_v37  ;;  %v440_v49 = vadd.f32 %v430_v46, %v399_v45  ;;  %v1804_v50 = vpop.f32.mrb[15].mxu1 }
 0x104   : > { %v566_v51 = vld [vmem:[#allocation2 + $0x8] sm:$0xff] }
 0x105   : > { %585 = vst.msk [vmem:[#allocation2] sm:$0xff] %vm308_vm3, %v575_v48  ;;  %450 = vst.msk [vmem:[#allocation2 + $0x18] sm:$0xff] %vm308_vm3, %v440_v49  ;;  %v576_v52 = vadd.f32 %v566_v51, %v529_v43 }
 0x107   : > { %586 = vst.msk [vmem:[#allocation2 + $0x8] sm:$0xff] %vm308_vm3, %v576_v52  ;;  %v534_v53 = vpop.f32.mrb[16].mxu0 }
 0x108   : > { %v404_v54 = vpop.f32.mrb[16].mxu1  ;;  %v1825_v56 = vpop.f32.mrb[17].mxu0 }
 0x109   : > { %v441_v57 = vadd.f32 %v431_v55, %v404_v54  ;;  %v1807_v58 = vpop.f32.mrb[17].mxu1  ;;  %v537_v59 = vpop.f32.mrb[18].mxu0 }
 0x10a   : > { %v567_v60 = vld [vmem:[#allocation2 + $0x10] sm:$0xff]  ;;  %v407_v61 = vpop.f32.mrb[18].mxu1  ;;  %v1826_v63 = vpop.f32.mrb[19].mxu0 }
 0x10b   : > { %451 = vst.msk [vmem:[#allocation2 + $0x20] sm:$0xff] %vm308_vm3, %v441_v57  ;;  %v577_v0 = vadd.f32 %v567_v60, %v534_v53  ;;  %v442_v2 = vadd.f32 %v432_v62, %v407_v61  ;;  %v1808_v3 = vpop.f32.mrb[19].mxu1 }
 0x10c   : > { %v568_v4 = vld [vmem:[#allocation2 + $0x18] sm:$0xff]  ;;  %v703_v39 = vld [vmem:[#allocation2] sm:$0xff] }
 0x10d   : > { %587 = vst.msk [vmem:[#allocation2 + $0x10] sm:$0xff] %vm308_vm3, %v577_v0  ;;  %452 = vst.msk [vmem:[#allocation2 + $0x28] sm:$0xff] %vm308_vm3, %v442_v2  ;;  %v578_v5 = vadd.f32 %v568_v4, %v537_v59 }
 0x10e   : > { %v704_v46 = vld [vmem:[#allocation2 + $0x8] sm:$0xff] }
 0x10f   : > { %588 = vst.msk [vmem:[#allocation2 + $0x18] sm:$0xff] %vm308_vm3, %v578_v5  ;;  %v542_v6 = vpop.f32.mrb[20].mxu0 }
 0x110   : > { %v412_v7 = vpop.f32.mrb[20].mxu1  ;;  %v1829_v9 = vpop.f32.mrb[21].mxu0 }
 0x111   : > { %v443_v10 = vadd.f32 %v433_v8, %v412_v7  ;;  %v1811_v11 = vpop.f32.mrb[21].mxu1  ;;  %v545_v12 = vpop.f32.mrb[22].mxu0 }
 0x112   : > { %v569_v13 = vld [vmem:[#allocation2 + $0x20] sm:$0xff]  ;;  %v415_v14 = vpop.f32.mrb[22].mxu1  ;;  %v1830_v16 = vpop.f32.mrb[23].mxu0 }
 0x113   : > { %453 = vst.msk [vmem:[#allocation2 + $0x30] sm:$0xff] %vm308_vm3, %v443_v10  ;;  %v579_v1 = vadd.f32 %v569_v13, %v542_v6  ;;  %v444_v17 = vadd.f32 %v434_v15, %v415_v14  ;;  %v1812_v18 = vpop.f32.mrb[23].mxu1 }
 0x114   : > { %v570_v19 = vld [vmem:[#allocation2 + $0x28] sm:$0xff]  ;;  %v705_v55 = vld [vmem:[#allocation2 + $0x10] sm:$0xff] }
 0x115   : > { %589 = vst.msk [vmem:[#allocation2 + $0x20] sm:$0xff] %vm308_vm3, %v579_v1  ;;  %454 = vst.msk [vmem:[#allocation2 + $0x38] sm:$0xff] %vm308_vm3, %v444_v17  ;;  %v580_v20 = vadd.f32 %v570_v19, %v545_v12  ;;  %v1486_v1 = vld [vmem:[%s2438_s3] sm:$0xff] }
 0x116   : > { %v706_v62 = vld [vmem:[#allocation2 + $0x18] sm:$0xff]  ;;  %1989 = vmatprep.mubr.msk.f32.mxu1 %vm1495_vm4, %v1486_v1 }
 0x117   : > { %590 = vst.msk [vmem:[#allocation2 + $0x28] sm:$0xff] %vm308_vm3, %v580_v20  ;;  %v550_v21 = vpop.f32.mrb[24].mxu0 }
 0x118   : > { %v420_v22 = vpop.f32.mrb[24].mxu1  ;;  %v1833_v24 = vpop.f32.mrb[25].mxu0 }
 0x119   : > { %v445_v25 = vadd.f32 %v435_v23, %v420_v22  ;;  %v1815_v26 = vpop.f32.mrb[25].mxu1  ;;  %v553_v27 = vpop.f32.mrb[26].mxu0 }
 0x11a   : > { %v571_v28 = vld [vmem:[#allocation2 + $0x30] sm:$0xff]  ;;  %v423_v29 = vpop.f32.mrb[26].mxu1  ;;  %v1834_v31 = vpop.f32.mrb[27].mxu0 }
 0x11b   : > { %455 = vst.msk [vmem:[#allocation2 + $0x40] sm:$0xff] %vm308_vm3, %v445_v25  ;;  %v581_v32 = vadd.f32 %v571_v28, %v550_v21  ;;  %v446_v33 = vadd.f32 %v436_v30, %v423_v29  ;;  %v1816_v34 = vpop.f32.mrb[27].mxu1 }
 0x11c   : > { %v572_v35 = vld [vmem:[#allocation2 + $0x38] sm:$0xff]  ;;  %v707_v8 = vld [vmem:[#allocation2 + $0x20] sm:$0xff] }
 0x11d   : > { %591 = vst.msk [vmem:[#allocation2 + $0x30] sm:$0xff] %vm308_vm3, %v581_v32  ;;  %456 = vst.msk [vmem:[#allocation2 + $0x48] sm:$0xff] %vm308_vm3, %v446_v33  ;;  %v582_v36 = vadd.f32 %v572_v35, %v553_v27 }
 0x11e   : > { %v708_v15 = vld [vmem:[#allocation2 + $0x28] sm:$0xff] }
 0x11f   : > { %592 = vst.msk [vmem:[#allocation2 + $0x38] sm:$0xff] %vm308_vm3, %v582_v36  ;;  %v558_v37 = vpop.f32.mrb[28].mxu0 }
 0x120   : > { %v664_v38 = vpop.f32.mrb[28].mxu1  ;;  %v1837_v40 = vpop.f32.mrb[29].mxu0 }
 0x121   : > { %v713_v41 = vadd.f32 %v703_v39, %v664_v38  ;;  %v1843_v42 = vpop.f32.mrb[29].mxu1  ;;  %v561_v43 = vpop.f32.mrb[30].mxu0 }
 0x122   : > { %v573_v44 = vld [vmem:[#allocation2 + $0x40] sm:$0xff]  ;;  %v667_v45 = vpop.f32.mrb[30].mxu1  ;;  %v1838_v47 = vpop.f32.mrb[31].mxu0 }
 0x123   : > { %v583_v48 = vadd.f32 %v573_v44, %v558_v37  ;;  %723 = vst.msk [vmem:[#allocation2] sm:$0xff] %vm308_vm3, %v713_v41  ;;  %v714_v49 = vadd.f32 %v704_v46, %v667_v45  ;;  %v1844_v50 = vpop.f32.mrb[31].mxu1 }
 0x124   : > { %v574_v51 = vld [vmem:[#allocation2 + $0x48] sm:$0xff]  ;;  %v709_v24 = vld [vmem:[#allocation2 + $0x30] sm:$0xff] }
 0x125   : > { %593 = vst.msk [vmem:[#allocation2 + $0x40] sm:$0xff] %vm308_vm3, %v583_v48  ;;  %v584_v52 = vadd.f32 %v574_v51, %v561_v43  ;;  %724 = vst.msk [vmem:[#allocation2 + $0x8] sm:$0xff] %vm308_vm3, %v714_v49 }
 0x126   : > { %v710_v31 = vld [vmem:[#allocation2 + $0x38] sm:$0xff] }
 0x127   : > { %594 = vst.msk [vmem:[#allocation2 + $0x48] sm:$0xff] %vm308_vm3, %v584_v52  ;;  %v802_v53 = vpop.f32.mrb[32].mxu0 }
 0x128   : > { %v672_v54 = vpop.f32.mrb[32].mxu1  ;;  %v1865_v56 = vpop.f32.mrb[33].mxu0 }
 0x129   : > { %v715_v57 = vadd.f32 %v705_v55, %v672_v54  ;;  %v1847_v58 = vpop.f32.mrb[33].mxu1  ;;  %v805_v59 = vpop.f32.mrb[34].mxu0 }
 0x12a   : > { %v841_v60 = vld [vmem:[#allocation2] sm:$0xff]  ;;  %v675_v61 = vpop.f32.mrb[34].mxu1  ;;  %v1866_v63 = vpop.f32.mrb[35].mxu0 }
 0x12b   : > { %725 = vst.msk [vmem:[#allocation2 + $0x10] sm:$0xff] %vm308_vm3, %v715_v57  ;;  %v851_v0 = vadd.f32 %v841_v60, %v802_v53  ;;  %v716_v2 = vadd.f32 %v706_v62, %v675_v61  ;;  %v1848_v3 = vpop.f32.mrb[35].mxu1 }
 0x12c   : > { %v842_v4 = vld [vmem:[#allocation2 + $0x8] sm:$0xff]  ;;  %v711_v40 = vld [vmem:[#allocation2 + $0x40] sm:$0xff] }
 0x12d   : > { %861 = vst.msk [vmem:[#allocation2] sm:$0xff] %vm308_vm3, %v851_v0  ;;  %726 = vst.msk [vmem:[#allocation2 + $0x18] sm:$0xff] %vm308_vm3, %v716_v2  ;;  %v852_v5 = vadd.f32 %v842_v4, %v805_v59 }
 0x12e   : > { %v712_v47 = vld [vmem:[#allocation2 + $0x48] sm:$0xff] }
 0x12f   : > { %862 = vst.msk [vmem:[#allocation2 + $0x8] sm:$0xff] %vm308_vm3, %v852_v5  ;;  %v810_v6 = vpop.f32.mrb[36].mxu0 }
 0x130   : > { %v680_v7 = vpop.f32.mrb[36].mxu1  ;;  %v1869_v9 = vpop.f32.mrb[37].mxu0 }
 0x131   : > { %v717_v10 = vadd.f32 %v707_v8, %v680_v7  ;;  %v1851_v11 = vpop.f32.mrb[37].mxu1  ;;  %v813_v12 = vpop.f32.mrb[38].mxu0 }
 0x132   : > { %v843_v13 = vld [vmem:[#allocation2 + $0x10] sm:$0xff]  ;;  %v683_v14 = vpop.f32.mrb[38].mxu1  ;;  %v1870_v16 = vpop.f32.mrb[39].mxu0 }
 0x133   : > { %727 = vst.msk [vmem:[#allocation2 + $0x20] sm:$0xff] %vm308_vm3, %v717_v10  ;;  %v853_v17 = vadd.f32 %v843_v13, %v810_v6  ;;  %v718_v18 = vadd.f32 %v708_v15, %v683_v14  ;;  %v1852_v19 = vpop.f32.mrb[39].mxu1 }
 0x134   : > { %v844_v20 = vld [vmem:[#allocation2 + $0x18] sm:$0xff]  ;;  %v979_v56 = vld [vmem:[#allocation2] sm:$0xff] }
 0x135   : > { %863 = vst.msk [vmem:[#allocation2 + $0x10] sm:$0xff] %vm308_vm3, %v853_v17  ;;  %728 = vst.msk [vmem:[#allocation2 + $0x28] sm:$0xff] %vm308_vm3, %v718_v18  ;;  %v854_v21 = vadd.f32 %v844_v20, %v813_v12 }
 0x136   : > { %v980_v63 = vld [vmem:[#allocation2 + $0x8] sm:$0xff] }
 0x137   : > { %864 = vst.msk [vmem:[#allocation2 + $0x18] sm:$0xff] %vm308_vm3, %v854_v21  ;;  %v818_v22 = vpop.f32.mrb[40].mxu0 }
 0x138   : > { %v688_v23 = vpop.f32.mrb[40].mxu1  ;;  %v1873_v25 = vpop.f32.mrb[41].mxu0 }
 0x139   : > { %v719_v26 = vadd.f32 %v709_v24, %v688_v23  ;;  %v1855_v27 = vpop.f32.mrb[41].mxu1  ;;  %v821_v28 = vpop.f32.mrb[42].mxu0 }
 0x13a   : > { %v845_v29 = vld [vmem:[#allocation2 + $0x20] sm:$0xff]  ;;  %v691_v30 = vpop.f32.mrb[42].mxu1  ;;  %v1874_v32 = vpop.f32.mrb[43].mxu0 }
 0x13b   : > { %729 = vst.msk [vmem:[#allocation2 + $0x30] sm:$0xff] %vm308_vm3, %v719_v26  ;;  %v855_v33 = vadd.f32 %v845_v29, %v818_v22  ;;  %v720_v34 = vadd.f32 %v710_v31, %v691_v30  ;;  %v1856_v35 = vpop.f32.mrb[43].mxu1 }
 0x13c   : > { %v846_v36 = vld [vmem:[#allocation2 + $0x28] sm:$0xff]  ;;  %v981_v9 = vld [vmem:[#allocation2 + $0x10] sm:$0xff] }
 0x13d   : > { %865 = vst.msk [vmem:[#allocation2 + $0x20] sm:$0xff] %vm308_vm3, %v855_v33  ;;  %730 = vst.msk [vmem:[#allocation2 + $0x38] sm:$0xff] %vm308_vm3, %v720_v34  ;;  %v856_v37 = vadd.f32 %v846_v36, %v821_v28 }
 0x13e   : > { %v982_v16 = vld [vmem:[#allocation2 + $0x18] sm:$0xff] }
 0x13f   : > { %866 = vst.msk [vmem:[#allocation2 + $0x28] sm:$0xff] %vm308_vm3, %v856_v37  ;;  %v826_v38 = vpop.f32.mrb[44].mxu0 }
 0x140   : > { %v696_v39 = vpop.f32.mrb[44].mxu1  ;;  %v1877_v41 = vpop.f32.mrb[45].mxu0 }
 0x141   : > { %v721_v42 = vadd.f32 %v711_v40, %v696_v39  ;;  %v1859_v43 = vpop.f32.mrb[45].mxu1  ;;  %v829_v44 = vpop.f32.mrb[46].mxu0 }
 0x142   : > { %v847_v45 = vld [vmem:[#allocation2 + $0x30] sm:$0xff]  ;;  %v699_v46 = vpop.f32.mrb[46].mxu1  ;;  %v1878_v48 = vpop.f32.mrb[47].mxu0 }
 0x143   : > { %731 = vst.msk [vmem:[#allocation2 + $0x40] sm:$0xff] %vm308_vm3, %v721_v42  ;;  %v857_v49 = vadd.f32 %v847_v45, %v826_v38  ;;  %v722_v50 = vadd.f32 %v712_v47, %v699_v46  ;;  %v1860_v51 = vpop.f32.mrb[47].mxu1 }
 0x144   : > { %v848_v52 = vld [vmem:[#allocation2 + $0x38] sm:$0xff]  ;;  %v983_v24 = vld [vmem:[#allocation2 + $0x20] sm:$0xff] }
 0x145   : > { %867 = vst.msk [vmem:[#allocation2 + $0x30] sm:$0xff] %vm308_vm3, %v857_v49  ;;  %732 = vst.msk [vmem:[#allocation2 + $0x48] sm:$0xff] %vm308_vm3, %v722_v50  ;;  %v858_v53 = vadd.f32 %v848_v52, %v829_v44 }
 0x146   : > { %v984_v31 = vld [vmem:[#allocation2 + $0x28] sm:$0xff] }
 0x147   : > { %868 = vst.msk [vmem:[#allocation2 + $0x38] sm:$0xff] %vm308_vm3, %v858_v53  ;;  %v834_v54 = vpop.f32.mrb[48].mxu0 }
 0x148   : > { %v940_v55 = vpop.f32.mrb[48].mxu1  ;;  %v1881_v57 = vpop.f32.mrb[49].mxu0 }
 0x149   : > { %v989_v58 = vadd.f32 %v979_v56, %v940_v55  ;;  %v1887_v59 = vpop.f32.mrb[49].mxu1  ;;  %v837_v60 = vpop.f32.mrb[50].mxu0 }
 0x14a   : > { %v849_v61 = vld [vmem:[#allocation2 + $0x40] sm:$0xff]  ;;  %v943_v62 = vpop.f32.mrb[50].mxu1  ;;  %v1882_v0 = vpop.f32.mrb[51].mxu0 }
 0x14b   : > { %v859_v2 = vadd.f32 %v849_v61, %v834_v54  ;;  %999 = vst.msk [vmem:[#allocation2] sm:$0xff] %vm308_vm3, %v989_v58  ;;  %v990_v3 = vadd.f32 %v980_v63, %v943_v62  ;;  %v1888_v4 = vpop.f32.mrb[51].mxu1 }
 0x14c   : > { %v850_v5 = vld [vmem:[#allocation2 + $0x48] sm:$0xff]  ;;  %v985_v40 = vld [vmem:[#allocation2 + $0x30] sm:$0xff] }
 0x14d   : > { %869 = vst.msk [vmem:[#allocation2 + $0x40] sm:$0xff] %vm308_vm3, %v859_v2  ;;  %v860_v6 = vadd.f32 %v850_v5, %v837_v60  ;;  %1000 = vst.msk [vmem:[#allocation2 + $0x8] sm:$0xff] %vm308_vm3, %v990_v3 }
 0x14e   : > { %v986_v47 = vld [vmem:[#allocation2 + $0x38] sm:$0xff] }
 0x14f   : > { %870 = vst.msk [vmem:[#allocation2 + $0x48] sm:$0xff] %vm308_vm3, %v860_v6  ;;  %v1078_v7 = vpop.f32.mrb[52].mxu0 }
 0x150   : > { %v948_v8 = vpop.f32.mrb[52].mxu1  ;;  %v1909_v10 = vpop.f32.mrb[53].mxu0 }
 0x151   : > { %v991_v11 = vadd.f32 %v981_v9, %v948_v8  ;;  %v1891_v12 = vpop.f32.mrb[53].mxu1  ;;  %v1081_v13 = vpop.f32.mrb[54].mxu0 }
 0x152   : > { %v1117_v14 = vld [vmem:[#allocation2] sm:$0xff]  ;;  %v951_v15 = vpop.f32.mrb[54].mxu1  ;;  %v1910_v1 = vpop.f32.mrb[55].mxu0 }
 0x153   : > { %1001 = vst.msk [vmem:[#allocation2 + $0x10] sm:$0xff] %vm308_vm3, %v991_v11  ;;  %v1127_v17 = vadd.f32 %v1117_v14, %v1078_v7  ;;  %v992_v18 = vadd.f32 %v982_v16, %v951_v15  ;;  %v1892_v19 = vpop.f32.mrb[55].mxu1 }
 0x154   : > { %v1118_v20 = vld [vmem:[#allocation2 + $0x8] sm:$0xff]  ;;  %v987_v56 = vld [vmem:[#allocation2 + $0x40] sm:$0xff] }
 0x155   : > { %1137 = vst.msk [vmem:[#allocation2] sm:$0xff] %vm308_vm3, %v1127_v17  ;;  %1002 = vst.msk [vmem:[#allocation2 + $0x18] sm:$0xff] %vm308_vm3, %v992_v18  ;;  %v1128_v21 = vadd.f32 %v1118_v20, %v1081_v13 }
 0x156   : > { %v988_v63 = vld [vmem:[#allocation2 + $0x48] sm:$0xff] }
 0x157   : > { %1138 = vst.msk [vmem:[#allocation2 + $0x8] sm:$0xff] %vm308_vm3, %v1128_v21  ;;  %v1086_v22 = vpop.f32.mrb[56].mxu0 }
 0x158   : > { %v956_v23 = vpop.f32.mrb[56].mxu1  ;;  %v1913_v25 = vpop.f32.mrb[57].mxu0 }
 0x159   : > { %v993_v26 = vadd.f32 %v983_v24, %v956_v23  ;;  %v1895_v27 = vpop.f32.mrb[57].mxu1  ;;  %v1089_v28 = vpop.f32.mrb[58].mxu0 }
 0x15a   : > { %v1119_v29 = vld [vmem:[#allocation2 + $0x10] sm:$0xff]  ;;  %v959_v30 = vpop.f32.mrb[58].mxu1  ;;  %v1914_v32 = vpop.f32.mrb[59].mxu0 }
 0x15b   : > { %1003 = vst.msk [vmem:[#allocation2 + $0x20] sm:$0xff] %vm308_vm3, %v993_v26  ;;  %v1129_v33 = vadd.f32 %v1119_v29, %v1086_v22  ;;  %v994_v34 = vadd.f32 %v984_v31, %v959_v30  ;;  %v1896_v35 = vpop.f32.mrb[59].mxu1 }
 0x15c   : > { %v1120_v36 = vld [vmem:[#allocation2 + $0x18] sm:$0xff]  ;;  %v1255_v9 = vld [vmem:[#allocation2] sm:$0xff] }
 0x15d   : > { %1139 = vst.msk [vmem:[#allocation2 + $0x10] sm:$0xff] %vm308_vm3, %v1129_v33  ;;  %1004 = vst.msk [vmem:[#allocation2 + $0x28] sm:$0xff] %vm308_vm3, %v994_v34  ;;  %v1130_v37 = vadd.f32 %v1120_v36, %v1089_v28 }
 0x15e   : > { %v1256_v16 = vld [vmem:[#allocation2 + $0x8] sm:$0xff] }
 0x15f   : > { %1140 = vst.msk [vmem:[#allocation2 + $0x18] sm:$0xff] %vm308_vm3, %v1130_v37  ;;  %v1094_v38 = vpop.f32.mrb[60].mxu0 }
 0x160   : > { %v964_v39 = vpop.f32.mrb[60].mxu1  ;;  %v1917_v41 = vpop.f32.mrb[61].mxu0 }
 0x161   : > { %v995_v42 = vadd.f32 %v985_v40, %v964_v39  ;;  %v1899_v43 = vpop.f32.mrb[61].mxu1  ;;  %v1097_v44 = vpop.f32.mrb[62].mxu0 }
 0x162   : > { %v1121_v45 = vld [vmem:[#allocation2 + $0x20] sm:$0xff]  ;;  %v967_v46 = vpop.f32.mrb[62].mxu1  ;;  %v1918_v48 = vpop.f32.mrb[63].mxu0 }
 0x163   : > { %1005 = vst.msk [vmem:[#allocation2 + $0x30] sm:$0xff] %vm308_vm3, %v995_v42  ;;  %v1131_v49 = vadd.f32 %v1121_v45, %v1094_v38  ;;  %v996_v50 = vadd.f32 %v986_v47, %v967_v46  ;;  %v1900_v51 = vpop.f32.mrb[63].mxu1 }
 0x164   : > { %v1122_v52 = vld [vmem:[#allocation2 + $0x28] sm:$0xff]  ;;  %v1257_v24 = vld [vmem:[#allocation2 + $0x10] sm:$0xff] }
 0x165   : > { %1141 = vst.msk [vmem:[#allocation2 + $0x20] sm:$0xff] %vm308_vm3, %v1131_v49  ;;  %1006 = vst.msk [vmem:[#allocation2 + $0x38] sm:$0xff] %vm308_vm3, %v996_v50  ;;  %v1132_v53 = vadd.f32 %v1122_v52, %v1097_v44 }
 0x166   : > { %v1258_v31 = vld [vmem:[#allocation2 + $0x18] sm:$0xff] }
 0x167   : > { %1142 = vst.msk [vmem:[#allocation2 + $0x28] sm:$0xff] %vm308_vm3, %v1132_v53  ;;  %v1102_v54 = vpop.f32.mrb[64].mxu0 }
 0x168   : > { %v972_v55 = vpop.f32.mrb[64].mxu1  ;;  %v1921_v57 = vpop.f32.mrb[65].mxu0 }
 0x169   : > { %v997_v58 = vadd.f32 %v987_v56, %v972_v55  ;;  %v1903_v59 = vpop.f32.mrb[65].mxu1  ;;  %v1105_v60 = vpop.f32.mrb[66].mxu0 }
 0x16a   : > { %v1123_v61 = vld [vmem:[#allocation2 + $0x30] sm:$0xff]  ;;  %v975_v62 = vpop.f32.mrb[66].mxu1  ;;  %v1922_v0 = vpop.f32.mrb[67].mxu0 }
 0x16b   : > { %1007 = vst.msk [vmem:[#allocation2 + $0x40] sm:$0xff] %vm308_vm3, %v997_v58  ;;  %v1133_v2 = vadd.f32 %v1123_v61, %v1102_v54  ;;  %v998_v3 = vadd.f32 %v988_v63, %v975_v62  ;;  %v1904_v4 = vpop.f32.mrb[67].mxu1 }
 0x16c   : > { %v1124_v5 = vld [vmem:[#allocation2 + $0x38] sm:$0xff]  ;;  %v1259_v40 = vld [vmem:[#allocation2 + $0x20] sm:$0xff] }
 0x16d   : > { %1143 = vst.msk [vmem:[#allocation2 + $0x30] sm:$0xff] %vm308_vm3, %v1133_v2  ;;  %1008 = vst.msk [vmem:[#allocation2 + $0x48] sm:$0xff] %vm308_vm3, %v998_v3  ;;  %v1134_v6 = vadd.f32 %v1124_v5, %v1105_v60 }
 0x16e   : > { %v1260_v47 = vld [vmem:[#allocation2 + $0x28] sm:$0xff] }
 0x16f   : > { %1144 = vst.msk [vmem:[#allocation2 + $0x38] sm:$0xff] %vm308_vm3, %v1134_v6  ;;  %v1110_v7 = vpop.f32.mrb[68].mxu0 }
 0x170   : > { %v1216_v8 = vpop.f32.mrb[68].mxu1  ;;  %v1925_v10 = vpop.f32.mrb[69].mxu0 }
 0x171   : > { %v1265_v11 = vadd.f32 %v1255_v9, %v1216_v8  ;;  %v1931_v12 = vpop.f32.mrb[69].mxu1  ;;  %v1113_v13 = vpop.f32.mrb[70].mxu0 }
 0x172   : > { %v1125_v14 = vld [vmem:[#allocation2 + $0x40] sm:$0xff]  ;;  %v1219_v15 = vpop.f32.mrb[70].mxu1  ;;  %v1926_v1 = vpop.f32.mrb[71].mxu0 }
 0x173   : > { %v1135_v17 = vadd.f32 %v1125_v14, %v1110_v7  ;;  %1275 = vst.msk [vmem:[#allocation2] sm:$0xff] %vm308_vm3, %v1265_v11  ;;  %v1266_v18 = vadd.f32 %v1256_v16, %v1219_v15  ;;  %v1932_v19 = vpop.f32.mrb[71].mxu1 }
 0x174   : > { %v1126_v20 = vld [vmem:[#allocation2 + $0x48] sm:$0xff]  ;;  %v1261_v56 = vld [vmem:[#allocation2 + $0x30] sm:$0xff] }
 0x175   : > { %1145 = vst.msk [vmem:[#allocation2 + $0x40] sm:$0xff] %vm308_vm3, %v1135_v17  ;;  %v1136_v21 = vadd.f32 %v1126_v20, %v1113_v13  ;;  %1276 = vst.msk [vmem:[#allocation2 + $0x8] sm:$0xff] %vm308_vm3, %v1266_v18 }
 0x176   : > { %v1262_v63 = vld [vmem:[#allocation2 + $0x38] sm:$0xff] }
 0x177   : > { %1146 = vst.msk [vmem:[#allocation2 + $0x48] sm:$0xff] %vm308_vm3, %v1136_v21  ;;  %v1354_v22 = vpop.f32.mrb[72].mxu0 }
 0x178   : > { %v1224_v23 = vpop.f32.mrb[72].mxu1  ;;  %v1953_v25 = vpop.f32.mrb[73].mxu0 }
 0x179   : > { %v1267_v26 = vadd.f32 %v1257_v24, %v1224_v23  ;;  %v1935_v27 = vpop.f32.mrb[73].mxu1  ;;  %v1357_v28 = vpop.f32.mrb[74].mxu0 }
 0x17a   : > { %v1393_v29 = vld [vmem:[#allocation2] sm:$0xff]  ;;  %v1227_v30 = vpop.f32.mrb[74].mxu1  ;;  %v1954_v32 = vpop.f32.mrb[75].mxu0 }
 0x17b   : > { %1277 = vst.msk [vmem:[#allocation2 + $0x10] sm:$0xff] %vm308_vm3, %v1267_v26  ;;  %v1403_v33 = vadd.f32 %v1393_v29, %v1354_v22  ;;  %v1268_v34 = vadd.f32 %v1258_v31, %v1227_v30  ;;  %v1936_v35 = vpop.f32.mrb[75].mxu1 }
 0x17c   : > { %v1394_v36 = vld [vmem:[#allocation2 + $0x8] sm:$0xff]  ;;  %v1263_v20 = vld [vmem:[#allocation2 + $0x40] sm:$0xff] }
 0x17d   : > { %1413 = vst.msk [vmem:[#allocation2] sm:$0xff] %vm308_vm3, %v1403_v33  ;;  %1278 = vst.msk [vmem:[#allocation2 + $0x18] sm:$0xff] %vm308_vm3, %v1268_v34  ;;  %v1404_v37 = vadd.f32 %v1394_v36, %v1357_v28 }
 0x17e   : > { %v1264_v29 = vld [vmem:[#allocation2 + $0x48] sm:$0xff] }
 0x17f   : > { %1414 = vst.msk [vmem:[#allocation2 + $0x8] sm:$0xff] %vm308_vm3, %v1404_v37  ;;  %v1362_v38 = vpop.f32.mrb[76].mxu0 }
 0x180   : > { %v1232_v39 = vpop.f32.mrb[76].mxu1  ;;  %v1957_v41 = vpop.f32.mrb[77].mxu0 }
 0x181   : > { %v1269_v42 = vadd.f32 %v1259_v40, %v1232_v39  ;;  %v1939_v43 = vpop.f32.mrb[77].mxu1  ;;  %v1365_v44 = vpop.f32.mrb[78].mxu0 }
 0x182   : > { %v1395_v45 = vld [vmem:[#allocation2 + $0x10] sm:$0xff]  ;;  %v1235_v46 = vpop.f32.mrb[78].mxu1  ;;  %v1958_v48 = vpop.f32.mrb[79].mxu0 }
 0x183   : > { %1279 = vst.msk [vmem:[#allocation2 + $0x20] sm:$0xff] %vm308_vm3, %v1269_v42  ;;  %v1405_v49 = vadd.f32 %v1395_v45, %v1362_v38  ;;  %v1270_v50 = vadd.f32 %v1260_v47, %v1235_v46  ;;  %v1940_v51 = vpop.f32.mrb[79].mxu1 }
 0x184   : > { %v1396_v52 = vld [vmem:[#allocation2 + $0x18] sm:$0xff]  ;;  %v1423_v10 = vld [vmem:[#allocation2] sm:$0xff] }
 0x185   : > { %1415 = vst.msk [vmem:[#allocation2 + $0x10] sm:$0xff] %vm308_vm3, %v1405_v49  ;;  %1280 = vst.msk [vmem:[#allocation2 + $0x28] sm:$0xff] %vm308_vm3, %v1270_v50  ;;  %v1406_v53 = vadd.f32 %v1396_v52, %v1365_v44 }
 0x186   : > { %v1432_v5 = vld [vmem:[#allocation2 + $0x1] sm:$0xff] }
 0x187   : > { %1416 = vst.msk [vmem:[#allocation2 + $0x18] sm:$0xff] %vm308_vm3, %v1406_v53  ;;  %v1370_v54 = vpop.f32.mrb[80].mxu0  ;;  %v1424_v12 = vld [vmem:[#allocation2 + $0x8] sm:$0xff]  ;;  %v1441_v1 = vmax.f32 %v1423_v10, %v1432_v5 }
 0x188   : > { %v1240_v55 = vpop.f32.mrb[80].mxu1  ;;  %v1961_v57 = vpop.f32.mrb[81].mxu0 }
 0x189   : > { %v1271_v58 = vadd.f32 %v1261_v56, %v1240_v55  ;;  %v1943_v59 = vpop.f32.mrb[81].mxu1  ;;  %v1373_v60 = vpop.f32.mrb[82].mxu0 }
 0x18a   : > { %v1397_v61 = vld [vmem:[#allocation2 + $0x20] sm:$0xff]  ;;  %v1243_v62 = vpop.f32.mrb[82].mxu1  ;;  %v1962_v0 = vpop.f32.mrb[83].mxu0 }
 0x18b   : > { %1281 = vst.msk [vmem:[#allocation2 + $0x30] sm:$0xff] %vm308_vm3, %v1271_v58  ;;  %v1407_v2 = vadd.f32 %v1397_v61, %v1370_v54  ;;  %v1272_v3 = vadd.f32 %v1262_v63, %v1243_v62  ;;  %v1944_v4 = vpop.f32.mrb[83].mxu1 }
 0x18c   : > { %v1398_v6 = vld [vmem:[#allocation2 + $0x28] sm:$0xff]  ;;  %v1425_v40 = vld [vmem:[#allocation2 + $0x10] sm:$0xff] }
 0x18d   : > { %v1433_v7 = vld [vmem:[#allocation2 + $0x9] sm:$0xff]  ;;  %1417 = vst.msk [vmem:[#allocation2 + $0x20] sm:$0xff] %vm308_vm3, %v1407_v2  ;;  %1282 = vst.msk [vmem:[#allocation2 + $0x38] sm:$0xff] %vm308_vm3, %v1272_v3  ;;  %v1408_v9 = vadd.f32 %v1398_v6, %v1373_v60 }
 0x18e   : > { %v1450_v8 = vld [vmem:[#allocation2 + $0xa] sm:$0xff]  ;;  %v1451_v13 = vld [vmem:[#allocation2 + $0x12] sm:$0xff]  ;;  %v1442_v17 = vmax.f32 %v1424_v12, %v1433_v7 }
 0x18f   : > { %v1459_v11 = vld [vmem:[#allocation2 + $0xb] sm:$0xff]  ;;  %v1460_v14 = vld [vmem:[#allocation2 + $0x13] sm:$0xff]  ;;  %1418 = vst.msk [vmem:[#allocation2 + $0x28] sm:$0xff] %vm308_vm3, %v1408_v9  ;;  %v1378_v16 = vpop.f32.mrb[84].mxu0 }
 0x190   : > { %v1468_v15 = vmax.f32 %v1450_v8, %v1459_v11  ;;  %v1469_v18 = vmax.f32 %v1451_v13, %v1460_v14  ;;  %v1248_v19 = vpop.f32.mrb[84].mxu1  ;;  %v1965_v21 = vpop.f32.mrb[85].mxu0  ;;  %v1434_v35 = vld [vmem:[#allocation2 + $0x11] sm:$0xff] }
 0x191   : > { %v1273_v22 = vadd.f32 %v1263_v20, %v1248_v19  ;;  %v1947_v23 = vpop.f32.mrb[85].mxu1  ;;  %v1381_v24 = vpop.f32.mrb[86].mxu0  ;;  %v1426_v42 = vld [vmem:[#allocation2 + $0x18] sm:$0xff]  ;;  %v1443_v47 = vmax.f32 %v1425_v40, %v1434_v35 }
 0x192   : > { %v1477_v25 = vmax.f32 %v1441_v1, %v1468_v15  ;;  %v1478_v26 = vmax.f32 %v1442_v17, %v1469_v18  ;;  %v1399_v27 = vld [vmem:[#allocation2 + $0x30] sm:$0xff]  ;;  %v1251_v28 = vpop.f32.mrb[86].mxu1  ;;  %v1966_v30 = vpop.f32.mrb[87].mxu0 }
 0x193   : > { %1283 = vst.msk [vmem:[#allocation2 + $0x40] sm:$0xff] %vm308_vm3, %v1273_v22  ;;  %v1409_v31 = vadd.f32 %v1399_v27, %v1378_v16  ;;  %v1274_v32 = vadd.f32 %v1264_v29, %v1251_v28  ;;  %v1948_v33 = vpop.f32.mrb[87].mxu1 }
 0x194   : > { %v1992_v34 = vpack.c.bf16 %v1478_v26, %v1477_v25  ;;  %v1400_v36 = vld [vmem:[#allocation2 + $0x38] sm:$0xff]  ;;  %v1427_v63 = vld [vmem:[#allocation2 + $0x20] sm:$0xff]  ;;  %v1487_v33 = vld [vmem:[%s2438_s3 + $0x8] sm:$0xff] }
 0x195   : > { %v1435_v37 = vld [vmem:[#allocation2 + $0x19] sm:$0xff]  ;;  %1419 = vst.msk [vmem:[#allocation2 + $0x30] sm:$0xff] %vm308_vm3, %v1409_v31  ;;  %1284 = vst.msk [vmem:[#allocation2 + $0x48] sm:$0xff] %vm308_vm3, %v1274_v32  ;;  %v1410_v39 = vadd.f32 %v1400_v36, %v1381_v24 }
 0x196   : > { %v1452_v38 = vld [vmem:[#allocation2 + $0x1a] sm:$0xff]  ;;  %1993 = vmatprep.subr.bf16.mxu1 %v1992_v34  ;;  %v1453_v43 = vld [vmem:[#allocation2 + $0x22] sm:$0xff]  ;;  %v1444_v48 = vmax.f32 %v1426_v42, %v1435_v37 }
 0x197   : > { %v1461_v41 = vld [vmem:[#allocation2 + $0x1b] sm:$0xff]  ;;  %1995 = vmatpush3.bf16.msra.mxu1 %v1992_v34  ;;  %v1462_v44 = vld [vmem:[#allocation2 + $0x23] sm:$0xff]  ;;  %1420 = vst.msk [vmem:[#allocation2 + $0x38] sm:$0xff] %vm308_vm3, %v1410_v39  ;;  %v1386_v46 = vpop.f32.mrb[88].mxu0 }
 0x198   : > { %v1470_v45 = vmax.f32 %v1452_v38, %v1461_v41  ;;  %v1471_v49 = vmax.f32 %v1453_v43, %v1462_v44  ;;  %v1969_v50 = vpop.f32.mrb[89].mxu0  ;;  %v1436_v58 = vld [vmem:[#allocation2 + $0x21] sm:$0xff]  ;;  %v1701_v34 = vld [vmem:[%s2437_s2] ss:$0 sm:$0xff] }
 0x199   : > { %v1389_v51 = vpop.f32.mrb[90].mxu0  ;;  %v1428_v2 = vld [vmem:[#allocation2 + $0x28] sm:$0xff]  ;;  %v1445_v6 = vmax.f32 %v1427_v63, %v1436_v58 }
 0x19a   : > { %v1479_v52 = vmax.f32 %v1443_v47, %v1470_v45  ;;  %v1480_v53 = vmax.f32 %v1444_v48, %v1471_v49  ;;  %v1401_v54 = vld [vmem:[#allocation2 + $0x40] sm:$0xff]  ;;  %v1970_v55 = vpop.f32.mrb[91].mxu0 }
 0x19b   : > { %v1411_v56 = vadd.f32 %v1401_v54, %v1386_v46 }
 0x19c   : > { %v1996_v57 = vpack.c.bf16 %v1480_v53, %v1479_v52  ;;  %v1402_v59 = vld [vmem:[#allocation2 + $0x48] sm:$0xff]  ;;  %v1429_v16 = vld [vmem:[#allocation2 + $0x30] sm:$0xff] }
 0x19d   : > { %v1437_v60 = vld [vmem:[#allocation2 + $0x29] sm:$0xff]  ;;  %1421 = vst.msk [vmem:[#allocation2 + $0x40] sm:$0xff] %vm308_vm3, %v1411_v56  ;;  %v1412_v62 = vadd.f32 %v1402_v59, %v1389_v51 }
 0x19e   : > { %v1454_v61 = vld [vmem:[#allocation2 + $0x2a] sm:$0xff]  ;;  %1997 = vmatprep.subr.bf16.mxu1 %v1996_v57  ;;  %v1455_v3 = vld [vmem:[#allocation2 + $0x32] sm:$0xff]  ;;  %v1446_v7 = vmax.f32 %v1428_v2, %v1437_v60 }
 0x19f   : > { %v1463_v0 = vld [vmem:[#allocation2 + $0x2b] sm:$0xff]  ;;  %1999 = vmatpush3.bf16.msra.mxu1 %v1996_v57  ;;  %v1464_v4 = vld [vmem:[#allocation2 + $0x33] sm:$0xff]  ;;  %1422 = vst.msk [vmem:[#allocation2 + $0x48] sm:$0xff] %vm308_vm3, %v1412_v62 }
 0x1a0   : > { %v1472_v5 = vmax.f32 %v1454_v61, %v1463_v0  ;;  %v1473_v8 = vmax.f32 %v1455_v3, %v1464_v4  ;;  %v1438_v12 = vld [vmem:[#allocation2 + $0x31] sm:$0xff] }
 0x1a1   : > { %v1430_v1 = vld [vmem:[#allocation2 + $0x38] sm:$0xff]  ;;  %v1447_v21 = vmax.f32 %v1429_v16, %v1438_v12 }
 0x1a2   : > { %v1481_v9 = vmax.f32 %v1445_v6, %v1472_v5  ;;  %v1482_v10 = vmax.f32 %v1446_v7, %v1473_v8 }
 0x1a4   : > { %v2000_v11 = vpack.c.bf16 %v1482_v10, %v1481_v9  ;;  %v1439_v13 = vld [vmem:[#allocation2 + $0x39] sm:$0xff]  ;;  %v1440_v26 = vld [vmem:[#allocation2 + $0x41] sm:$0x1f] }
 0x1a5   : > { %v1456_v14 = vld [vmem:[#allocation2 + $0x3a] sm:$0xff]  ;;  %v1448_v22 = vmax.f32 %v1430_v1, %v1439_v13 }
 0x1a6   : > { %v1465_v15 = vld [vmem:[#allocation2 + $0x3b] sm:$0xff]  ;;  %2001 = vmatprep.subr.bf16.mxu1 %v2000_v11  ;;  %v1466_v19 = vld [vmem:[#allocation2 + $0x43] sm:$0xff]  ;;  %v1467_v24 = vld [vmem:[#allocation2 + $0x4b] sm:$0x1f] }
 0x1a7   : > { %v1474_v17 = vmax.f32 %v1456_v14, %v1465_v15  ;;  %2003 = vmatpush3.bf16.msra.mxu1 %v2000_v11  ;;  %v1457_v18 = vld [vmem:[#allocation2 + $0x42] sm:$0xff]  ;;  %v1458_v20 = vld [vmem:[#allocation2 + $0x4a] sm:$0x1f] }
 0x1a8   : > { %v1475_v23 = vmax.f32 %v1457_v18, %v1466_v19  ;;  %v1431_v25 = vld [vmem:[#allocation2 + $0x40] sm:$0x1f]  ;;  %v1476_v29 = vmax.f32 %v1458_v20, %v1467_v24 }
 0x1a9   : > { %v1483_v27 = vmax.f32 %v1447_v21, %v1474_v17  ;;  %v1449_v31 = vmax.f32 %v1431_v25, %v1440_v26 }
 0x1aa   : > { %v1484_v28 = vmax.f32 %v1448_v22, %v1475_v23 }
 0x1ab   : > { %v1485_v32 = vmax.f32 %v1449_v31, %v1476_v29 }
 0x1ac   : > { %v2004_v30 = vpack.c.bf16 %v1484_v28, %v1483_v27 }
 0x1ae   : > { %2005 = vmatprep.subr.bf16.mxu1 %v2004_v30 }
 0x1af   : > { %2007 = vmatpush3.bf16.msra.mxu1 %v2004_v30 }
 0x1b0   : > { %1987 = vmatprep.subr.msk.mxu1 %vm1502_vm5, %v1485_v32 }
 0x1b3   : > { %1988 = vmatpush3.msk.msra.mxu1 %vm1502_vm5, %v1485_v32 }
 0x1b4   : > { %1990 = vmatmul.mubr.msk.f32.vlgmr.msra.gmra.mrb[88].mxu1 %vm1495_vm4, %v1487_v33 }
 0x287   : > { %v1991_v35 = vpop.f32.mrb[88].mxu1 }
 0x288   : > { %v1578_v36 = vadd.f32 %v1991_v35, %v1701_v34  ;;  %v1572_v37 = vpop.f32.mrb[89].mxu1 }
 0x289   : > { %v1573_v38 = vadd.f32 %v1701_v34, %v1572_v37 }
 0x28a   : > { %v1582_v39 = vmax.f32 %v1578_v36, 0.0 }
 0x28b   : > { %v1581_v40 = vmax.f32 %v1573_v38, 0.0 }
 0x28c   : > { %1584 = vst.msk [vmem:[%s197_s24 + $0x8] sm:$0xff] %vm308_vm3, %v1582_v39 }
 0x28d   : > { %1583 = vst.msk [vmem:[%s197_s24] sm:$0xff] %vm308_vm3, %v1581_v40 }
 0x28e PF: > { %s14_s15 = sadd.s32 1, %s2027_s15  }
 0x28f   : > { %p11_p4 = scmp.ge.s32.totalorder %s14_s15, 4  }
 0x291   :  { %13 = sbr.rel (!%p11_p4) target bundleno = 1 (0x1), region = 74 }

// kernel: cnn_forward.3
= control target key start
LH: loop header
LB: loop body
LE: loop exit
PB: predicated region body
PF: predicated region fallthrough
CT: control target
= control target key end

     0   :  { %s5165_s15 = smov 0   ;;  %s6301_s0 = inlined_call_operand.vmem [shape: f32[2,332,3], index: 0, kind: input, shape index: {}]   ;;  %s6302_s1 = inlined_call_operand.vmem [shape: bf16[9,3,8], index: 1, kind: input, shape index: {}]   ;;  %s6303_s2 = inlined_call_operand.vmem [shape: f32[1,8], index: 2, kind: input, shape index: {}]   ;;  %s6304_s3 = inlined_call_operand.vmem [shape: f32[64,269], index: 3, kind: input, shape index: {}]   ;;  %s6305_s4 = inlined_call_operand.vmem [shape: f32[2,64,8], index: 4, kind: output, shape index: {}]  }
   0x1 LB: > { %s4293_s16 = sadd.s32 4294967295, %s5136_s15   ;;  %p4297_p0 = scmp.ge.s32.totalorder %s5136_s15, 1  ;;  %s5136_s15 = sphi %s5165_s15, %s14_s15  }
   0x2   : > { %p162_p1 = scmp.lt.s32.totalorder %s5136_s15, 3 }
   0x4   : > { %p163_p2 = pnand %p4297_p0, %p162_p1 }
   0x5   : > { %v253_v0 = vld [vmem:[%s6302_s1] sm:$0x3] (!%p163_p2)  ;;  %vm309_vm0 = vcmask (!%p163_p2), 1040384   ;;  %vm310_vm1 = vcmask (!%p163_p2), 1041408   ;;  %p188_p3 = scmp.lt.s32.totalorder (!%p163_p2), %s4293_s16, 1  ;;  %v5138_v1 = vmov (!%p163_p2), 65535  }
   0x6   : > { %166 = sbr.rel (%p163_p2) target bundleno = 869 (0x365), region = 36  ;;  %v311_v2 = vsel (!%p163_p2), %vm309_vm0, 4294967295, %v5138_v1  ;;  %v4319_v3 = vld [vmem:[%s6302_s1 + $0x2] sm:$0x3] (!%p163_p2)  ;;  %v4338_v4 = vld [vmem:[%s6302_s1 + $0x4] sm:$0x3] (!%p163_p2) }
   0x7   : > { %v5182_v5 = vsel (!%p163_p2), %vm310_vm1, %v311_v2, 0  ;;  %v4357_v9 = vld [vmem:[%s6302_s1 + $0x6] sm:$0x3] (!%p163_p2)  ;;  %v4376_v10 = vld [vmem:[%s6302_s1 + $0x8] sm:$0x3] (!%p163_p2)  ;;  %vm254_vm2 = vcmask (!%p163_p2), 23552  }
   0x8   : > { %v314_v6 = vand.u32 (!%p163_p2), %v5182_v5, %v253_v0  ;;  %v641_v7 = vand.u32 (!%p163_p2), %v4319_v3, %v5182_v5  ;;  %v1039_v8 = vand.u32 (!%p163_p2), %v4338_v4, %v5182_v5  ;;  %v1437_v27 = vand.u32 (!%p163_p2), %v4357_v9, %v5182_v5 }
   0x9   : > { %v5218_v30 = vand.u32 (!%p163_p2), %v4376_v10, %v5182_v5  ;;  %vm493_vm3 = vcmask (!%p163_p2), 64512   ;;  %vm4008_vm4 = vcmask (!%p163_p2), 1044480   ;;  %vm5139_vm5 = vmmov (!%p163_p2), 1  }
   0xa   : > { %4721 = vmatprep.subr.bf16.mxu0 (!%p163_p2), %v314_v6  ;;  %5117 = vmatprep.subr.bf16.mxu1 (!%p163_p2), %v314_v6  ;;  %vm5112_vm6 = vmpackc.low (!%p163_p2), %vm4008_vm4, %vm5139_vm5  ;;  %vm3983_vm7 = vcmask (!%p163_p2), 105472  }
   0xb   : > { %4722 = vmatpush3.bf16.msra.mxu0 (!%p163_p2), %v314_v6  ;;  %5118 = vmatpush3.bf16.msra.mxu1 (!%p163_p2), %v314_v6 }
   0xc   : > { %4759 = vmatprep.subr.bf16.mxu1 (!%p163_p2), %v641_v7  ;;  %4797 = vmatprep.subr.bf16.mxu0 (!%p163_p2), %v1039_v8 }
   0xd   : > { %s6307_s16 = smov (!%p188_p3, %s4293_s16), 1 }
   0xe   : > { %s5119_s23 = smul.u32 336, %s6307_s16  ;;  %s4483_s17 = sshll.u32 %s6307_s16, 6 }
   0xf   : > { %s6280_s20 = scalar_lea.vmem %s6305_s4, %s4483_s17 }
  0x10   : > { %s5193_s26 = scalar_lea.vmem %s6301_s0, %s5119_s23 }
  0x11   : > { %v199_v11 = vld [vmem:[%s5193_s26] sm:$0xff]  ;;  %v200_v12 = vld [vmem:[%s5193_s26 + $0x8] sm:$0xff]  ;;  %v201_v16 = vld [vmem:[%s5193_s26 + $0x10] sm:$0xff] }
  0x12   : > { %v231_v13 = vld [vmem:[%s5193_s26 + $0x100] sm:$0xff]  ;;  %v235_v14 = vpack.c.bf16 %v200_v12, %v199_v11  ;;  %v232_v15 = vld [vmem:[%s5193_s26 + $0x108] sm:$0xff]  ;;  %v202_v17 = vld [vmem:[%s5193_s26 + $0x18] sm:$0xff] }
  0x13   : > { %v251_v18 = vpack.c.bf16 %v232_v15, %v231_v13  ;;  %v236_v19 = vpack.c.bf16 %v202_v17, %v201_v16  ;;  %v233_v20 = vld [vmem:[%s5193_s26 + $0x110] sm:$0xff]  ;;  %v234_v21 = vld [vmem:[%s5193_s26 + $0x118] sm:$0xff]  ;;  %v203_v22 = vld [vmem:[%s5193_s26 + $0x20] sm:$0xff] }
  0x14   : > { %4723 = vmatprep.mubr.msk.bf16.mxu0 %vm254_vm2, %v235_v14  ;;  %v252_v23 = vpack.c.bf16 %v234_v21, %v233_v20  ;;  %v204_v24 = vld [vmem:[%s5193_s26 + $0x28] sm:$0xff]  ;;  %v205_v31 = vld [vmem:[%s5193_s26 + $0x30] sm:$0xff]  ;;  %v206_v32 = vld [vmem:[%s5193_s26 + $0x38] sm:$0xff] }
  0x15   : > { %v530_v25 = vld [vmem:[%s5193_s26 + $0x1] sm:$0xff]  ;;  %v531_v26 = vld [vmem:[%s5193_s26 + $0x9] sm:$0xff]  ;;  %4755 = vmatprep.mubr.msk.bf16.mxu1 %vm254_vm2, %v251_v18  ;;  %4724 = vmatmul.mubr.msk.bf16.vlgmr.msra.gmra.mrb[0].mxu0 %vm254_vm2, %v236_v19  ;;  %v237_v28 = vpack.c.bf16 %v204_v24, %v203_v22  ;;  %v532_v33 = vld [vmem:[%s5193_s26 + $0x11] sm:$0xff]  ;;  %v238_v39 = vpack.c.bf16 %v206_v32, %v205_v31 }
  0x16   : > { %v566_v29 = vpack.c.bf16 %v531_v26, %v530_v25  ;;  %4756 = vmatmul.mubr.msk.bf16.vlgmr.msra.gmra.mrb[0].mxu1 %vm254_vm2, %v252_v23  ;;  %4798 = vmatpush3.bf16.msra.mxu0 %v1039_v8  ;;  %v533_v34 = vld [vmem:[%s5193_s26 + $0x19] sm:$0xff]  ;;  %v208_v36 = vld [vmem:[%s5193_s26 + $0x48] sm:$0xff]  ;;  %v209_v43 = vld [vmem:[%s5193_s26 + $0x50] sm:$0xff] }
  0x17   : > { %4760 = vmatpush3.bf16.msra.mxu1 %v641_v7  ;;  %4727 = vmatprep.mubr.msk.bf16.mxu0 %vm254_vm2, %v237_v28  ;;  %v207_v35 = vld [vmem:[%s5193_s26 + $0x40] sm:$0xff]  ;;  %v535_v38 = vld [vmem:[%s5193_s26 + $0x29] sm:$0xff]  ;;  %v567_v40 = vpack.c.bf16 %v533_v34, %v532_v33  ;;  %v210_v44 = vld [vmem:[%s5193_s26 + $0x58] sm:$0xff] }
  0x18   : > { %4761 = vmatprep.mubr.msk.bf16.mxu1 %vm254_vm2, %v566_v29  ;;  %v534_v37 = vld [vmem:[%s5193_s26 + $0x21] sm:$0xff]  ;;  %4835 = vmatprep.subr.bf16.mxu1 %v1437_v27  ;;  %v239_v41 = vpack.c.bf16 %v208_v36, %v207_v35  ;;  %v536_v45 = vld [vmem:[%s5193_s26 + $0x31] sm:$0xff]  ;;  %v537_v46 = vld [vmem:[%s5193_s26 + $0x39] sm:$0xff]  ;;  %v240_v51 = vpack.c.bf16 %v210_v44, %v209_v43 }
  0x19   : > { %4873 = vmatprep.subr.bf16.mxu0 %v5218_v30  ;;  %v568_v42 = vpack.c.bf16 %v535_v38, %v534_v37  ;;  %v211_v47 = vld [vmem:[%s5193_s26 + $0x60] sm:$0xff]  ;;  %v212_v48 = vld [vmem:[%s5193_s26 + $0x68] sm:$0xff]  ;;  %v569_v52 = vpack.c.bf16 %v537_v46, %v536_v45  ;;  %v213_v55 = vld [vmem:[%s5193_s26 + $0x70] sm:$0xff] }
  0x1a   : > { %v538_v49 = vld [vmem:[%s5193_s26 + $0x41] sm:$0xff]  ;;  %v539_v50 = vld [vmem:[%s5193_s26 + $0x49] sm:$0xff]  ;;  %v241_v53 = vpack.c.bf16 %v212_v48, %v211_v47  ;;  %v214_v56 = vld [vmem:[%s5193_s26 + $0x78] sm:$0xff] }
  0x1b   : > { %v570_v54 = vpack.c.bf16 %v539_v50, %v538_v49  ;;  %v540_v57 = vld [vmem:[%s5193_s26 + $0x51] sm:$0xff]  ;;  %v541_v58 = vld [vmem:[%s5193_s26 + $0x59] sm:$0xff]  ;;  %v216_v60 = vld [vmem:[%s5193_s26 + $0x88] sm:$0xff]  ;;  %v242_v63 = vpack.c.bf16 %v214_v56, %v213_v55 }
  0x1c   : > { %v215_v59 = vld [vmem:[%s5193_s26 + $0x80] sm:$0xff]  ;;  %v543_v62 = vld [vmem:[%s5193_s26 + $0x69] sm:$0xff]  ;;  %v571_v0 = vpack.c.bf16 %v541_v58, %v540_v57  ;;  %v218_v4 = vld [vmem:[%s5193_s26 + $0x98] sm:$0xff] }
  0x1d   : > { %4728 = vmatmul.mubr.msk.bf16.gmra.mrb[4].mxu0 %vm254_vm2, %v238_v39  ;;  %v542_v61 = vld [vmem:[%s5193_s26 + $0x61] sm:$0xff]  ;;  %v243_v1 = vpack.c.bf16 %v216_v60, %v215_v59  ;;  %v217_v3 = vld [vmem:[%s5193_s26 + $0x90] sm:$0xff]  ;;  %v545_v7 = vld [vmem:[%s5193_s26 + $0x79] sm:$0xff] }
  0x1e   : > { %4762 = vmatmul.mubr.msk.bf16.vlgmr.msra.gmra.mrb[4].mxu1 %vm254_vm2, %v567_v40  ;;  %4731 = vmatprep.mubr.msk.bf16.mxu0 %vm254_vm2, %v239_v41  ;;  %v572_v2 = vpack.c.bf16 %v543_v62, %v542_v61  ;;  %v544_v6 = vld [vmem:[%s5193_s26 + $0x71] sm:$0xff]  ;;  %v219_v8 = vld [vmem:[%s5193_s26 + $0xa0] sm:$0xff]  ;;  %v220_v9 = vld [vmem:[%s5193_s26 + $0xa8] sm:$0xff]  ;;  %v244_v12 = vpack.c.bf16 %v218_v4, %v217_v3 }
  0x1f   : > { %4765 = vmatprep.mubr.msk.bf16.mxu1 %vm254_vm2, %v568_v42  ;;  %4836 = vmatpush3.bf16.msra.mxu1 %v1437_v27  ;;  %v546_v10 = vld [vmem:[%s5193_s26 + $0x81] sm:$0xff]  ;;  %v547_v11 = vld [vmem:[%s5193_s26 + $0x89] sm:$0xff]  ;;  %v573_v13 = vpack.c.bf16 %v545_v7, %v544_v6  ;;  %v245_v14 = vpack.c.bf16 %v220_v9, %v219_v8  ;;  %v222_v17 = vld [vmem:[%s5193_s26 + $0xb8] sm:$0xff] }
  0x20   : > { %v574_v15 = vpack.c.bf16 %v547_v11, %v546_v10  ;;  %v221_v16 = vld [vmem:[%s5193_s26 + $0xb0] sm:$0xff]  ;;  %v549_v19 = vld [vmem:[%s5193_s26 + $0x99] sm:$0xff]  ;;  %v224_v21 = vld [vmem:[%s5193_s26 + $0xc8] sm:$0xff] }
  0x21   : > { %v548_v18 = vld [vmem:[%s5193_s26 + $0x91] sm:$0xff]  ;;  %v223_v20 = vld [vmem:[%s5193_s26 + $0xc0] sm:$0xff]  ;;  %v551_v23 = vld [vmem:[%s5193_s26 + $0xa9] sm:$0xff]  ;;  %v246_v25 = vpack.c.bf16 %v222_v17, %v221_v16 }
  0x22   : > { %v550_v22 = vld [vmem:[%s5193_s26 + $0xa1] sm:$0xff]  ;;  %v4395_v24 = vld [vmem:[%s6302_s1 + $0xa] sm:$0x3]  ;;  %v575_v27 = vpack.c.bf16 %v549_v19, %v548_v18  ;;  %v247_v28 = vpack.c.bf16 %v224_v21, %v223_v20  ;;  %v225_v31 = vld [vmem:[%s5193_s26 + $0xd0] sm:$0xff] }
  0x23   : > { %v5284_v26 = vand.u32 %v4395_v24, %v5182_v5  ;;  %v576_v29 = vpack.c.bf16 %v551_v23, %v550_v22  ;;  %v226_v32 = vld [vmem:[%s5193_s26 + $0xd8] sm:$0xff]  ;;  %v227_v35 = vld [vmem:[%s5193_s26 + $0xe0] sm:$0xff]  ;;  %v228_v36 = vld [vmem:[%s5193_s26 + $0xe8] sm:$0xff] }
  0x24   : > { %v552_v33 = vld [vmem:[%s5193_s26 + $0xb1] sm:$0xff]  ;;  %v553_v34 = vld [vmem:[%s5193_s26 + $0xb9] sm:$0xff]  ;;  %v554_v37 = vld [vmem:[%s5193_s26 + $0xc1] sm:$0xff]  ;;  %v248_v39 = vpack.c.bf16 %v226_v32, %v225_v31  ;;  %v249_v41 = vpack.c.bf16 %v228_v36, %v227_v35 }
  0x25   : > { %4732 = vmatmul.mubr.msk.bf16.gmra.mrb[8].mxu0 %vm254_vm2, %v240_v51  ;;  %4911 = vmatprep.subr.bf16.mxu1 %v5284_v26  ;;  %v555_v38 = vld [vmem:[%s5193_s26 + $0xc9] sm:$0xff]  ;;  %v577_v40 = vpack.c.bf16 %v553_v34, %v552_v33  ;;  %v230_v44 = vld [vmem:[%s5193_s26 + $0xf8] sm:$0xff]  ;;  %v558_v49 = vld [vmem:[%s5193_s26 + $0xe1] sm:$0xff] }
  0x26   : > { %4766 = vmatmul.mubr.msk.bf16.gmra.mrb[8].mxu1 %vm254_vm2, %v569_v52  ;;  %4735 = vmatprep.mubr.msk.bf16.mxu0 %vm254_vm2, %v241_v53  ;;  %v578_v42 = vpack.c.bf16 %v555_v38, %v554_v37  ;;  %v229_v43 = vld [vmem:[%s5193_s26 + $0xf0] sm:$0xff]  ;;  %v557_v46 = vld [vmem:[%s5193_s26 + $0xd9] sm:$0xff]  ;;  %v928_v47 = vld [vmem:[%s5193_s26 + $0x2] sm:$0xff] }
  0x27   : > { %4769 = vmatprep.mubr.msk.bf16.mxu1 %vm254_vm2, %v570_v54  ;;  %v556_v45 = vld [vmem:[%s5193_s26 + $0xd1] sm:$0xff]  ;;  %v559_v50 = vld [vmem:[%s5193_s26 + $0xe9] sm:$0xff]  ;;  %v250_v51 = vpack.c.bf16 %v230_v44, %v229_v43  ;;  %v931_v57 = vld [vmem:[%s5193_s26 + $0x1a] sm:$0xff] }
  0x28   : > { %v929_v48 = vld [vmem:[%s5193_s26 + $0xa] sm:$0xff]  ;;  %v579_v52 = vpack.c.bf16 %v557_v46, %v556_v45  ;;  %v580_v54 = vpack.c.bf16 %v559_v50, %v558_v49  ;;  %v930_v56 = vld [vmem:[%s5193_s26 + $0x12] sm:$0xff]  ;;  %v932_v59 = vld [vmem:[%s5193_s26 + $0x22] sm:$0xff] }
  0x29   : > { %v964_v53 = vpack.c.bf16 %v929_v48, %v928_v47  ;;  %v560_v55 = vld [vmem:[%s5193_s26 + $0xf1] sm:$0xff]  ;;  %v561_v58 = vld [vmem:[%s5193_s26 + $0xf9] sm:$0xff]  ;;  %v562_v61 = vld [vmem:[%s5193_s26 + $0x101] sm:$0xff] }
  0x2a   : > { %v933_v60 = vld [vmem:[%s5193_s26 + $0x2a] sm:$0xff]  ;;  %v934_v7 = vld [vmem:[%s5193_s26 + $0x32] sm:$0xff]  ;;  %v935_v8 = vld [vmem:[%s5193_s26 + $0x3a] sm:$0xff] }
  0x2b   : > { %v563_v62 = vld [vmem:[%s5193_s26 + $0x109] sm:$0xff]  ;;  %v564_v6 = vld [vmem:[%s5193_s26 + $0x111] sm:$0xff]  ;;  %v565_v9 = vld [vmem:[%s5193_s26 + $0x119] sm:$0xff] }
  0x2c   : > { %v582_v3 = vpack.c.bf16 %v563_v62, %v562_v61  ;;  %v936_v10 = vld [vmem:[%s5193_s26 + $0x42] sm:$0xff]  ;;  %v937_v11 = vld [vmem:[%s5193_s26 + $0x4a] sm:$0xff]  ;;  %v939_v16 = vld [vmem:[%s5193_s26 + $0x5a] sm:$0xff] }
  0x2d   : > { %4736 = vmatmul.mubr.msk.bf16.gmra.mrb[12].mxu0 %vm254_vm2, %v242_v63  ;;  %v965_v63 = vpack.c.bf16 %v931_v57, %v930_v56  ;;  %v941_v17 = vld [vmem:[%s5193_s26 + $0x6a] sm:$0xff]  ;;  %v942_v20 = vld [vmem:[%s5193_s26 + $0x72] sm:$0xff]  ;;  %v943_v21 = vld [vmem:[%s5193_s26 + $0x7a] sm:$0xff] }
  0x2e   : > { %4770 = vmatmul.mubr.msk.bf16.gmra.mrb[12].mxu1 %vm254_vm2, %v571_v0  ;;  %4739 = vmatprep.mubr.msk.bf16.mxu0 %vm254_vm2, %v243_v1  ;;  %v4414_v0 = vld [vmem:[%s6302_s1 + $0xc] sm:$0x3]  ;;  %v581_v1 = vpack.c.bf16 %v561_v58, %v560_v55  ;;  %v944_v22 = vld [vmem:[%s5193_s26 + $0x82] sm:$0xff]  ;;  %v971_v24 = vpack.c.bf16 %v943_v21, %v942_v20  ;;  %v950_v35 = vld [vmem:[%s5193_s26 + $0xb2] sm:$0xff] }
  0x2f   : > { %4773 = vmatprep.mubr.msk.bf16.mxu1 %vm254_vm2, %v572_v2  ;;  %v966_v2 = vpack.c.bf16 %v933_v60, %v932_v59  ;;  %v5327_v4 = vand.u32 %v4414_v0, %v5182_v5  ;;  %v945_v23 = vld [vmem:[%s5193_s26 + $0x8a] sm:$0xff]  ;;  %v951_v36 = vld [vmem:[%s5193_s26 + $0xba] sm:$0xff]  ;;  %v952_v37 = vld [vmem:[%s5193_s26 + $0xc2] sm:$0xff] }
  0x30   : > { %v949_v31 = vld [vmem:[%s5193_s26 + $0xaa] sm:$0xff]  ;;  %v956_v43 = vld [vmem:[%s5193_s26 + $0xe2] sm:$0xff]  ;;  %v958_v47 = vld [vmem:[%s5193_s26 + $0xf2] sm:$0xff] }
  0x31   : > { %v953_v38 = vld [vmem:[%s5193_s26 + $0xca] sm:$0xff]  ;;  %v959_v48 = vld [vmem:[%s5193_s26 + $0xfa] sm:$0xff]  ;;  %v960_v49 = vld [vmem:[%s5193_s26 + $0x102] sm:$0xff] }
  0x32   : > { %v957_v44 = vld [vmem:[%s5193_s26 + $0xea] sm:$0xff]  ;;  %v1724_v55 = vld [vmem:[%s5193_s26 + $0x13] sm:$0xff]  ;;  %v1725_v56 = vld [vmem:[%s5193_s26 + $0x1b] sm:$0xff] }
  0x33   : > { %v978_v46 = vpack.c.bf16 %v957_v44, %v956_v43  ;;  %v961_v50 = vld [vmem:[%s5193_s26 + $0x10a] sm:$0xff]  ;;  %v1760_v58 = vpack.c.bf16 %v1725_v56, %v1724_v55  ;;  %v1728_v61 = vld [vmem:[%s5193_s26 + $0x33] sm:$0xff]  ;;  %v1729_v62 = vld [vmem:[%s5193_s26 + $0x3b] sm:$0xff] }
  0x34   : > { %v1726_v59 = vld [vmem:[%s5193_s26 + $0x23] sm:$0xff]  ;;  %v1727_v60 = vld [vmem:[%s5193_s26 + $0x2b] sm:$0xff]  ;;  %v2126_v20 = vld [vmem:[%s5193_s26 + $0x34] sm:$0xff] }
  0x35   : > { %4740 = vmatmul.mubr.msk.bf16.gmra.mrb[16].mxu0 %vm254_vm2, %v244_v12  ;;  %v967_v12 = vpack.c.bf16 %v935_v8, %v934_v7  ;;  %v4452_v0 = vld [vmem:[%s6302_s1 + $0x10] sm:$0x3]  ;;  %v2127_v21 = vld [vmem:[%s5193_s26 + $0x3c] sm:$0xff]  ;;  %v1744_v43 = vld [vmem:[%s5193_s26 + $0xb3] sm:$0xff] }
  0x36   : > { %4774 = vmatmul.mubr.msk.bf16.gmra.mrb[16].mxu1 %vm254_vm2, %v573_v13  ;;  %4743 = vmatprep.mubr.msk.bf16.mxu0 %vm254_vm2, %v245_v14  ;;  %v583_v13 = vpack.c.bf16 %v565_v9, %v564_v6  ;;  %v968_v14 = vpack.c.bf16 %v937_v11, %v936_v10  ;;  %v1730_v6 = vld [vmem:[%s5193_s26 + $0x43] sm:$0xff]  ;;  %v1731_v7 = vld [vmem:[%s5193_s26 + $0x4b] sm:$0xff]  ;;  %v1732_v9 = vld [vmem:[%s5193_s26 + $0x53] sm:$0xff] }
  0x37   : > { %4777 = vmatprep.mubr.msk.bf16.mxu1 %vm254_vm2, %v574_v15  ;;  %v938_v15 = vld [vmem:[%s5193_s26 + $0x52] sm:$0xff]  ;;  %v1361_v8 = vld [vmem:[%s5193_s26 + $0x12a] sm:$0xff]  ;;  %v1733_v10 = vld [vmem:[%s5193_s26 + $0x5b] sm:$0xff] }
  0x38   : > { %v969_v18 = vpack.c.bf16 %v939_v16, %v938_v15  ;;  %v2123_v11 = vld [vmem:[%s5193_s26 + $0x1c] sm:$0xff]  ;;  %v1748_v55 = vld [vmem:[%s5193_s26 + $0xd3] sm:$0xff] }
  0x39   : > { %v1734_v16 = vld [vmem:[%s5193_s26 + $0x63] sm:$0xff]  ;;  %v1745_v44 = vld [vmem:[%s5193_s26 + $0xbb] sm:$0xff] }
  0x3a   : > { %v1749_v56 = vld [vmem:[%s5193_s26 + $0xdb] sm:$0xff] }
  0x3d   : > { %4744 = vmatmul.mubr.msk.bf16.gmra.mrb[20].mxu0 %vm254_vm2, %v246_v25  ;;  %v972_v25 = vpack.c.bf16 %v945_v23, %v944_v22 }
  0x3e   : > { %4778 = vmatmul.mubr.msk.bf16.gmra.mrb[20].mxu1 %vm254_vm2, %v575_v27  ;;  %4747 = vmatprep.mubr.msk.bf16.mxu0 %vm254_vm2, %v247_v28  ;;  %v946_v27 = vld [vmem:[%s5193_s26 + $0x92] sm:$0xff]  ;;  %v947_v28 = vld [vmem:[%s5193_s26 + $0x9a] sm:$0xff] }
  0x3f   : > { %4781 = vmatprep.mubr.msk.bf16.mxu1 %vm254_vm2, %v576_v29  ;;  %v948_v29 = vld [vmem:[%s5193_s26 + $0xa2] sm:$0xff]  ;;  %v973_v33 = vpack.c.bf16 %v947_v28, %v946_v27  ;;  %v1739_v28 = vld [vmem:[%s5193_s26 + $0x8b] sm:$0xff] }
  0x40   : > { %v974_v34 = vpack.c.bf16 %v949_v31, %v948_v29  ;;  %v1738_v27 = vld [vmem:[%s5193_s26 + $0x83] sm:$0xff]  ;;  %v2129_v31 = vld [vmem:[%s5193_s26 + $0x4c] sm:$0xff] }
  0x41   : > { %v2128_v29 = vld [vmem:[%s5193_s26 + $0x44] sm:$0xff] }
  0x45   : > { %4748 = vmatmul.mubr.msk.bf16.gmra.mrb[24].mxu0 %vm254_vm2, %v248_v39  ;;  %v975_v39 = vpack.c.bf16 %v951_v36, %v950_v35  ;;  %v2131_v35 = vld [vmem:[%s5193_s26 + $0x5c] sm:$0xff]  ;;  %v1767_v36 = vpack.c.bf16 %v1739_v28, %v1738_v27  ;;  %v1759_v27 = vld [vmem:[%s5193_s26 + $0x12b] sm:$0xff] }
  0x46   : > { %4782 = vmatmul.mubr.msk.bf16.gmra.mrb[24].mxu1 %vm254_vm2, %v577_v40  ;;  %4751 = vmatprep.mubr.msk.bf16.mxu0 %vm254_vm2, %v249_v41  ;;  %v976_v40 = vpack.c.bf16 %v953_v38, %v952_v37  ;;  %v954_v41 = vld [vmem:[%s5193_s26 + $0xd2] sm:$0xff]  ;;  %v5464_v37 = vpack.c.bf16 %v2129_v31, %v2128_v29  ;;  %v2148_v28 = vld [vmem:[%s5193_s26 + $0xe4] sm:$0xff] }
  0x47   : > { %4785 = vmatprep.mubr.msk.bf16.mxu1 %vm254_vm2, %v578_v42  ;;  %v955_v42 = vld [vmem:[%s5193_s26 + $0xda] sm:$0xff]  ;;  %v2149_v29 = vld [vmem:[%s5193_s26 + $0xec] sm:$0xff] }
  0x48   : > { %v977_v45 = vpack.c.bf16 %v955_v42, %v954_v41  ;;  %v2132_v41 = vld [vmem:[%s5193_s26 + $0x64] sm:$0xff]  ;;  %v2133_v42 = vld [vmem:[%s5193_s26 + $0x6c] sm:$0xff]  ;;  %v2150_v31 = vld [vmem:[%s5193_s26 + $0xf4] sm:$0xff] }
  0x4d   : > { %4752 = vmatmul.mubr.msk.bf16.gmra.mrb[28].mxu0 %vm254_vm2, %v250_v51  ;;  %v979_v51 = vpack.c.bf16 %v959_v48, %v958_v47  ;;  %v5482_v48 = vpack.c.bf16 %v2133_v42, %v2132_v41 }
  0x4e   : > { %4786 = vmatmul.mubr.msk.bf16.gmra.mrb[28].mxu1 %vm254_vm2, %v579_v52  ;;  %4799 = vmatprep.mubr.msk.bf16.mxu0 %vm254_vm2, %v964_v53  ;;  %v980_v52 = vpack.c.bf16 %v961_v50, %v960_v49  ;;  %v962_v53 = vld [vmem:[%s5193_s26 + $0x112] sm:$0xff]  ;;  %v1770_v49 = vpack.c.bf16 %v1745_v44, %v1744_v43 }
  0x4f   : > { %4789 = vmatprep.mubr.msk.bf16.mxu1 %vm254_vm2, %v580_v54  ;;  %v963_v54 = vld [vmem:[%s5193_s26 + $0x11a] sm:$0xff]  ;;  %v2157_v43 = vld [vmem:[%s5193_s26 + $0x12c] sm:$0xff] }
  0x50   : > { %v981_v57 = vpack.c.bf16 %v963_v54, %v962_v53  ;;  %v2136_v53 = vld [vmem:[%s5193_s26 + $0x84] sm:$0xff]  ;;  %v2137_v54 = vld [vmem:[%s5193_s26 + $0x8c] sm:$0xff] }
  0x55   : > { %4800 = vmatmul.mubr.msk.bf16.vlgmr.msra.gmra.mrb[32].mxu0 %vm254_vm2, %v965_v63 }
  0x56   : > { %4790 = vmatmul.mubr.msk.bf16.gmra.mrb[32].mxu1 %vm254_vm2, %v581_v1  ;;  %4803 = vmatprep.mubr.msk.bf16.mxu0 %vm254_vm2, %v966_v2  ;;  %v1762_v1 = vpack.c.bf16 %v1729_v62, %v1728_v61  ;;  %v1772_v61 = vpack.c.bf16 %v1749_v56, %v1748_v55  ;;  %v2920_v55 = vld [vmem:[%s5193_s26 + $0x35] sm:$0xff]  ;;  %v2921_v56 = vld [vmem:[%s5193_s26 + $0x3d] sm:$0xff] }
  0x57   : > { %4793 = vmatprep.mubr.msk.bf16.mxu1 %vm254_vm2, %v582_v3  ;;  %4874 = vmatpush3.bf16.msra.mxu0 %v5218_v30  ;;  %v940_v30 = vld [vmem:[%s5193_s26 + $0x62] sm:$0xff] }
  0x58   : > { %4949 = vmatprep.subr.bf16.mxu0 %v5327_v4  ;;  %v970_v19 = vpack.c.bf16 %v941_v17, %v940_v30  ;;  %v1360_v3 = vld [vmem:[%s5193_s26 + $0x122] sm:$0xff]  ;;  %v2125_v17 = vld [vmem:[%s5193_s26 + $0x2c] sm:$0xff] }
  0x59   : > { %v2124_v30 = vld [vmem:[%s5193_s26 + $0x24] sm:$0xff] }
  0x5a   : > { %v5445_v23 = vpack.c.bf16 %v2125_v17, %v2124_v30  ;;  %v1757_v30 = vld [vmem:[%s5193_s26 + $0x11b] sm:$0xff] }
  0x5b   : > { %v2146_v17 = vld [vmem:[%s5193_s26 + $0xd4] sm:$0xff] }
  0x5d   : > { %4804 = vmatmul.mubr.msk.bf16.gmra.mrb[36].mxu0 %vm254_vm2, %v967_v12 }
  0x5e   : > { %4794 = vmatmul.mubr.msk.bf16.gmra.mrb[36].mxu1 %vm254_vm2, %v583_v13  ;;  %4807 = vmatprep.mubr.msk.bf16.mxu0 %vm254_vm2, %v968_v14  ;;  %v1379_v13 = vpack.c.bf16 %v1361_v8, %v1360_v3  ;;  %v2141_v3 = vld [vmem:[%s5193_s26 + $0xac] sm:$0xff]  ;;  %v2142_v8 = vld [vmem:[%s5193_s26 + $0xb4] sm:$0xff] }
  0x5f   : > { %4837 = vmatprep.mubr.msk.bf16.mxu1 %vm254_vm2, %v965_v63  ;;  %v1761_v63 = vpack.c.bf16 %v1727_v60, %v1726_v59  ;;  %v5500_v60 = vpack.c.bf16 %v2137_v54, %v2136_v53 }
  0x65   : > { %4808 = vmatmul.mubr.msk.bf16.gmra.mrb[40].mxu0 %vm254_vm2, %v969_v18 }
  0x66   : > { %4838 = vmatmul.mubr.msk.bf16.vlgmr.msra.gmra.mrb[40].mxu1 %vm254_vm2, %v966_v2  ;;  %4811 = vmatprep.mubr.msk.bf16.mxu0 %vm254_vm2, %v970_v19  ;;  %v5417_v2 = vand.u32 %v4452_v0, %v5182_v5  ;;  %v1751_v0 = vld [vmem:[%s5193_s26 + $0xeb] sm:$0xff] }
  0x67   : > { %4841 = vmatprep.mubr.msk.bf16.mxu1 %vm254_vm2, %v967_v12  ;;  %4912 = vmatpush3.bf16.msra.mxu1 %v5284_v26  ;;  %v4433_v26 = vld [vmem:[%s6302_s1 + $0xe] sm:$0x3]  ;;  %v1763_v12 = vpack.c.bf16 %v1731_v7, %v1730_v6  ;;  %v1752_v6 = vld [vmem:[%s5193_s26 + $0xf3] sm:$0xff]  ;;  %v1753_v7 = vld [vmem:[%s5193_s26 + $0xfb] sm:$0xff] }
  0x68   : > { %v5370_v32 = vand.u32 %v4433_v26, %v5182_v5  ;;  %v2122_v5 = vld [vmem:[%s5193_s26 + $0x14] sm:$0xff] }
  0x69   : > { %v2158_v15 = vpack.c.bf16 %v2123_v11, %v2122_v5  ;;  %v1740_v26 = vld [vmem:[%s5193_s26 + $0x93] sm:$0xff]  ;;  %v1774_v11 = vpack.c.bf16 %v1753_v7, %v1752_v6 }
  0x6a   : > { %4987 = vmatprep.subr.bf16.mxu1 %v5370_v32 }
  0x6d   : > { %4812 = vmatmul.mubr.msk.bf16.gmra.mrb[44].mxu0 %vm254_vm2, %v971_v24 }
  0x6e   : > { %4842 = vmatmul.mubr.msk.bf16.gmra.mrb[44].mxu1 %vm254_vm2, %v968_v14  ;;  %4815 = vmatprep.mubr.msk.bf16.mxu0 %vm254_vm2, %v972_v25  ;;  %v1764_v14 = vpack.c.bf16 %v1733_v10, %v1732_v9  ;;  %v2143_v9 = vld [vmem:[%s5193_s26 + $0xbc] sm:$0xff] }
  0x6f   : > { %4845 = vmatprep.mubr.msk.bf16.mxu1 %vm254_vm2, %v969_v18  ;;  %v1736_v18 = vld [vmem:[%s5193_s26 + $0x73] sm:$0xff] }
  0x75   : > { %4816 = vmatmul.mubr.msk.bf16.gmra.mrb[48].mxu0 %vm254_vm2, %v973_v33 }
  0x76   : > { %4846 = vmatmul.mubr.msk.bf16.gmra.mrb[48].mxu1 %vm254_vm2, %v970_v19  ;;  %4819 = vmatprep.mubr.msk.bf16.mxu0 %vm254_vm2, %v974_v34  ;;  %v1737_v19 = vld [vmem:[%s5193_s26 + $0x7b] sm:$0xff] }
  0x77   : > { %4849 = vmatprep.mubr.msk.bf16.mxu1 %vm254_vm2, %v971_v24  ;;  %v1766_v24 = vpack.c.bf16 %v1737_v19, %v1736_v18  ;;  %v2147_v18 = vld [vmem:[%s5193_s26 + $0xdc] sm:$0xff] }
  0x7d   : > { %4820 = vmatmul.mubr.msk.bf16.gmra.mrb[52].mxu0 %vm254_vm2, %v975_v39 }
  0x7e   : > { %4850 = vmatmul.mubr.msk.bf16.gmra.mrb[52].mxu1 %vm254_vm2, %v972_v25  ;;  %4823 = vmatprep.mubr.msk.bf16.mxu0 %vm254_vm2, %v976_v40  ;;  %v5447_v25 = vpack.c.bf16 %v2127_v21, %v2126_v20 }
  0x7f   : > { %4853 = vmatprep.mubr.msk.bf16.mxu1 %vm254_vm2, %v973_v33  ;;  %v1741_v33 = vld [vmem:[%s5193_s26 + $0x9b] sm:$0xff] }
  0x80   : > { %v1768_v38 = vpack.c.bf16 %v1741_v33, %v1740_v26  ;;  %v2151_v26 = vld [vmem:[%s5193_s26 + $0xfc] sm:$0xff] }
  0x85   : > { %4824 = vmatmul.mubr.msk.bf16.gmra.mrb[56].mxu0 %vm254_vm2, %v977_v45 }
  0x86   : > { %4854 = vmatmul.mubr.msk.bf16.gmra.mrb[56].mxu1 %vm254_vm2, %v974_v34  ;;  %4827 = vmatprep.mubr.msk.bf16.mxu0 %vm254_vm2, %v978_v46  ;;  %v2130_v34 = vld [vmem:[%s5193_s26 + $0x54] sm:$0xff] }
  0x87   : > { %4857 = vmatprep.mubr.msk.bf16.mxu1 %vm254_vm2, %v975_v39  ;;  %v5466_v39 = vpack.c.bf16 %v2131_v35, %v2130_v34  ;;  %v5552_v34 = vpack.c.bf16 %v2149_v29, %v2148_v28  ;;  %v5554_v35 = vpack.c.bf16 %v2151_v26, %v2150_v31 }
  0x8d   : > { %4828 = vmatmul.mubr.msk.bf16.gmra.mrb[60].mxu0 %vm254_vm2, %v979_v51 }
  0x8e   : > { %4858 = vmatmul.mubr.msk.bf16.gmra.mrb[60].mxu1 %vm254_vm2, %v976_v40  ;;  %4831 = vmatprep.mubr.msk.bf16.mxu0 %vm254_vm2, %v980_v52  ;;  %v1742_v40 = vld [vmem:[%s5193_s26 + $0xa3] sm:$0xff] }
  0x8f   : > { %4861 = vmatprep.mubr.msk.bf16.mxu1 %vm254_vm2, %v977_v45  ;;  %v2134_v45 = vld [vmem:[%s5193_s26 + $0x74] sm:$0xff] }
  0x95   : > { %4832 = vmatmul.mubr.msk.bf16.gmra.mrb[64].mxu0 %vm254_vm2, %v981_v57 }
  0x96   : > { %4862 = vmatmul.mubr.msk.bf16.gmra.mrb[64].mxu1 %vm254_vm2, %v978_v46  ;;  %4875 = vmatprep.mubr.msk.bf16.mxu0 %vm254_vm2, %v1760_v58  ;;  %v2135_v46 = vld [vmem:[%s5193_s26 + $0x7c] sm:$0xff] }
  0x97   : > { %4865 = vmatprep.mubr.msk.bf16.mxu1 %vm254_vm2, %v979_v51  ;;  %v5484_v50 = vpack.c.bf16 %v2135_v46, %v2134_v45  ;;  %v1746_v51 = vld [vmem:[%s5193_s26 + $0xc3] sm:$0xff]  ;;  %v2919_v46 = vld [vmem:[%s5193_s26 + $0x2d] sm:$0xff] }
  0x98   : > { %v2139_v58 = vld [vmem:[%s5193_s26 + $0x9c] sm:$0xff]  ;;  %v2918_v45 = vld [vmem:[%s5193_s26 + $0x25] sm:$0xff] }
  0x99   : > { %v2954_v53 = vpack.c.bf16 %v2919_v46, %v2918_v45  ;;  %v2928_v45 = vld [vmem:[%s5193_s26 + $0x75] sm:$0xff]  ;;  %v2929_v46 = vld [vmem:[%s5193_s26 + $0x7d] sm:$0xff] }
  0x9d   : > { %4876 = vmatmul.mubr.msk.bf16.vlgmr.msra.gmra.mrb[68].mxu0 %vm254_vm2, %v1761_v63  ;;  %v1750_v63 = vld [vmem:[%s5193_s26 + $0xe3] sm:$0xff] }
  0x9e   : > { %4866 = vmatmul.mubr.msk.bf16.gmra.mrb[68].mxu1 %vm254_vm2, %v980_v52  ;;  %4879 = vmatprep.mubr.msk.bf16.mxu0 %vm254_vm2, %v1762_v1  ;;  %v1747_v52 = vld [vmem:[%s5193_s26 + $0xcb] sm:$0xff]  ;;  %v1773_v10 = vpack.c.bf16 %v1751_v0, %v1750_v63 }
  0x9f   : > { %4869 = vmatprep.mubr.msk.bf16.mxu1 %vm254_vm2, %v981_v57  ;;  %4950 = vmatpush3.bf16.msra.mxu0 %v5327_v4  ;;  %v1735_v4 = vld [vmem:[%s5193_s26 + $0x6b] sm:$0xff]  ;;  %v2138_v57 = vld [vmem:[%s5193_s26 + $0x94] sm:$0xff]  ;;  %v1771_v59 = vpack.c.bf16 %v1747_v52, %v1746_v51 }
  0xa0   : > { %5025 = vmatprep.subr.bf16.mxu0 %v5417_v2  ;;  %v1765_v22 = vpack.c.bf16 %v1735_v4, %v1734_v16  ;;  %v5502_v62 = vpack.c.bf16 %v2139_v58, %v2138_v57  ;;  %v2140_v1 = vld [vmem:[%s5193_s26 + $0xa4] sm:$0xff]  ;;  %v2145_v16 = vld [vmem:[%s5193_s26 + $0xcc] sm:$0xff] }
  0xa1   : > { %v5518_v5 = vpack.c.bf16 %v2141_v3, %v2140_v1  ;;  %v1756_v4 = vld [vmem:[%s5193_s26 + $0x113] sm:$0xff] }
  0xa2   : > { %v1776_v21 = vpack.c.bf16 %v1757_v30, %v1756_v4  ;;  %v2924_v4 = vld [vmem:[%s5193_s26 + $0x55] sm:$0xff]  ;;  %v2925_v30 = vld [vmem:[%s5193_s26 + $0x5d] sm:$0xff] }
  0xa3   : > { %v2957_v26 = vpack.c.bf16 %v2925_v30, %v2924_v4 }
  0xa5   : > { %4880 = vmatmul.mubr.msk.bf16.gmra.mrb[72].mxu0 %vm254_vm2, %v1763_v12  ;;  %v5520_v12 = vpack.c.bf16 %v2143_v9, %v2142_v8 }
  0xa6   : > { %4870 = vmatmul.mubr.msk.bf16.gmra.mrb[72].mxu1 %vm254_vm2, %v1379_v13  ;;  %4883 = vmatprep.mubr.msk.bf16.mxu0 %vm254_vm2, %v1764_v14  ;;  %v1754_v13 = vld [vmem:[%s5193_s26 + $0x103] sm:$0xff]  ;;  %v1755_v14 = vld [vmem:[%s5193_s26 + $0x10b] sm:$0xff] }
  0xa7   : > { %4913 = vmatprep.mubr.msk.bf16.mxu1 %vm254_vm2, %v2158_v15  ;;  %v2144_v15 = vld [vmem:[%s5193_s26 + $0xc4] sm:$0xff]  ;;  %v1775_v19 = vpack.c.bf16 %v1755_v14, %v1754_v13 }
  0xa8   : > { %v5536_v20 = vpack.c.bf16 %v2145_v16, %v2144_v15 }
  0xad   : > { %4884 = vmatmul.mubr.msk.bf16.gmra.mrb[76].mxu0 %vm254_vm2, %v1765_v22  ;;  %v5538_v22 = vpack.c.bf16 %v2147_v18, %v2146_v17 }
  0xae   : > { %4914 = vmatmul.mubr.msk.bf16.vlgmr.msra.gmra.mrb[76].mxu1 %vm254_vm2, %v5445_v23  ;;  %4887 = vmatprep.mubr.msk.bf16.mxu0 %vm254_vm2, %v1766_v24  ;;  %v1758_v24 = vld [vmem:[%s5193_s26 + $0x123] sm:$0xff] }
  0xaf   : > { %4917 = vmatprep.mubr.msk.bf16.mxu1 %vm254_vm2, %v5447_v25  ;;  %4988 = vmatpush3.bf16.msra.mxu1 %v5370_v32  ;;  %v1743_v32 = vld [vmem:[%s5193_s26 + $0xab] sm:$0xff]  ;;  %v1777_v33 = vpack.c.bf16 %v1759_v27, %v1758_v24 }
  0xb0   : > { %v1769_v47 = vpack.c.bf16 %v1743_v32, %v1742_v40  ;;  %v2154_v40 = vld [vmem:[%s5193_s26 + $0x114] sm:$0xff]  ;;  %v2155_v32 = vld [vmem:[%s5193_s26 + $0x11c] sm:$0xff] }
  0xb1   : > { %v5569_v42 = vpack.c.bf16 %v2155_v32, %v2154_v40 }
  0xb5   : > { %4888 = vmatmul.mubr.msk.bf16.gmra.mrb[80].mxu0 %vm254_vm2, %v1767_v36  ;;  %v2152_v36 = vld [vmem:[%s5193_s26 + $0x104] sm:$0xff] }
  0xb6   : > { %4918 = vmatmul.mubr.msk.bf16.gmra.mrb[80].mxu1 %vm254_vm2, %v5464_v37  ;;  %4891 = vmatprep.mubr.msk.bf16.mxu0 %vm254_vm2, %v1768_v38  ;;  %v2153_v38 = vld [vmem:[%s5193_s26 + $0x10c] sm:$0xff] }
  0xb7   : > { %4921 = vmatprep.mubr.msk.bf16.mxu1 %vm254_vm2, %v5466_v39  ;;  %v5567_v41 = vpack.c.bf16 %v2153_v38, %v2152_v36 }
  0xbd   : > { %4892 = vmatmul.mubr.msk.bf16.gmra.mrb[84].mxu0 %vm254_vm2, %v1769_v47 }
  0xbe   : > { %4922 = vmatmul.mubr.msk.bf16.gmra.mrb[84].mxu1 %vm254_vm2, %v5482_v48  ;;  %4895 = vmatprep.mubr.msk.bf16.mxu0 %vm254_vm2, %v1770_v49 }
  0xbf   : > { %4925 = vmatprep.mubr.msk.bf16.mxu1 %vm254_vm2, %v5484_v50 }
  0xc5   : > { %4896 = vmatmul.mubr.msk.bf16.gmra.mrb[88].mxu0 %vm254_vm2, %v1771_v59  ;;  %v2922_v59 = vld [vmem:[%s5193_s26 + $0x45] sm:$0xff] }
  0xc6   : > { %4926 = vmatmul.mubr.msk.bf16.gmra.mrb[88].mxu1 %vm254_vm2, %v5500_v60  ;;  %4899 = vmatprep.mubr.msk.bf16.mxu0 %vm254_vm2, %v1772_v61  ;;  %v2923_v61 = vld [vmem:[%s5193_s26 + $0x4d] sm:$0xff] }
  0xc7   : > { %4929 = vmatprep.mubr.msk.bf16.mxu1 %vm254_vm2, %v5502_v62  ;;  %v2956_v13 = vpack.c.bf16 %v2923_v61, %v2922_v59 }
  0xcd   : > { %4900 = vmatmul.mubr.msk.bf16.gmra.mrb[92].mxu0 %vm254_vm2, %v1773_v10 }
  0xce   : > { %4930 = vmatmul.mubr.msk.bf16.gmra.mrb[92].mxu1 %vm254_vm2, %v5518_v5  ;;  %4903 = vmatprep.mubr.msk.bf16.mxu0 %vm254_vm2, %v1774_v11 }
  0xcf   : > { %4933 = vmatprep.mubr.msk.bf16.mxu1 %vm254_vm2, %v5520_v12 }
  0xd5   : > { %4904 = vmatmul.mubr.msk.bf16.gmra.mrb[96].mxu0 %vm254_vm2, %v1775_v19  ;;  %v2926_v19 = vld [vmem:[%s5193_s26 + $0x65] sm:$0xff] }
  0xd6   : > { %4934 = vmatmul.mubr.msk.bf16.gmra.mrb[96].mxu1 %vm254_vm2, %v5536_v20  ;;  %4907 = vmatprep.mubr.msk.bf16.mxu0 %vm254_vm2, %v1776_v21  ;;  %v2927_v21 = vld [vmem:[%s5193_s26 + $0x6d] sm:$0xff] }
  0xd7   : > { %4937 = vmatprep.mubr.msk.bf16.mxu1 %vm254_vm2, %v5538_v22  ;;  %v2958_v32 = vpack.c.bf16 %v2927_v21, %v2926_v19 }
  0xdd   : > { %4908 = vmatmul.mubr.msk.bf16.gmra.mrb[100].mxu0 %vm254_vm2, %v1777_v33 }
  0xde   : > { %4938 = vmatmul.mubr.msk.bf16.gmra.mrb[100].mxu1 %vm254_vm2, %v5552_v34  ;;  %4951 = vmatprep.mubr.msk.bf16.mxu0 %vm254_vm2, %v5445_v23  ;;  %v2156_v23 = vld [vmem:[%s5193_s26 + $0x124] sm:$0xff] }
  0xdf   : > { %4941 = vmatprep.mubr.msk.bf16.mxu1 %vm254_vm2, %v5554_v35  ;;  %v5587_v51 = vpack.c.bf16 %v2157_v43, %v2156_v23 }
  0xe5   : > { %4952 = vmatmul.mubr.msk.bf16.vlgmr.msra.gmra.mrb[104].mxu0 %vm254_vm2, %v5447_v25 }
  0xe6   : > { %4942 = vmatmul.mubr.msk.bf16.gmra.mrb[104].mxu1 %vm254_vm2, %v5567_v41  ;;  %4955 = vmatprep.mubr.msk.bf16.mxu0 %vm254_vm2, %v5464_v37 }
  0xe7   : > { %4945 = vmatprep.mubr.msk.bf16.mxu1 %vm254_vm2, %v5569_v42  ;;  %5026 = vmatpush3.bf16.msra.mxu0 %v5417_v2 }
  0xe8   : > { %v4725_v44 = vpop.f32.mrb[0].mxu0 }
  0xe9   : > { %496 = vst.msk [vmem:[#allocation2 + $0x10] sm:$0xff] %vm493_vm3, %v4725_v44  ;;  %v350_v25 = vpop.f32.mrb[1].mxu0  ;;  %v4757_v47 = vpop.f32.mrb[0].mxu1 }
  0xea   : > { %494 = vst.msk [vmem:[#allocation2] sm:$0xff] %vm493_vm3, %v350_v25  ;;  %v4726_v49 = vpop.f32.mrb[2].mxu0  ;;  %528 = vst.msk [vmem:[#allocation2 + $0x110] sm:$0xff] %vm493_vm3, %v4757_v47  ;;  %v478_v37 = vpop.f32.mrb[1].mxu1 }
  0xeb   : > { %497 = vst.msk [vmem:[#allocation2 + $0x18] sm:$0xff] %vm493_vm3, %v4726_v49  ;;  %v353_v2 = vpop.f32.mrb[3].mxu0  ;;  %526 = vst.msk [vmem:[#allocation2 + $0x100] sm:$0xff] %vm493_vm3, %v478_v37  ;;  %v4758_v52 = vpop.f32.mrb[2].mxu1  ;;  %v2930_v49 = vld [vmem:[%s5193_s26 + $0x85] sm:$0xff]  ;;  %v2931_v37 = vld [vmem:[%s5193_s26 + $0x8d] sm:$0xff] }
  0xec   : > { %495 = vst.msk [vmem:[#allocation2 + $0x8] sm:$0xff] %vm493_vm3, %v353_v2  ;;  %529 = vst.msk [vmem:[#allocation2 + $0x118] sm:$0xff] %vm493_vm3, %v4758_v52  ;;  %v481_v54 = vpop.f32.mrb[3].mxu1 }
  0xed   : > { %4956 = vmatmul.mubr.msk.bf16.gmra.mrb[108].mxu0 %vm254_vm2, %v5466_v39  ;;  %527 = vst.msk [vmem:[#allocation2 + $0x108] sm:$0xff] %vm493_vm3, %v481_v54 }
  0xee   : > { %4946 = vmatmul.mubr.msk.bf16.gmra.mrb[108].mxu1 %vm254_vm2, %v5587_v51  ;;  %4959 = vmatprep.mubr.msk.bf16.mxu0 %vm254_vm2, %v5482_v48  ;;  %v2955_v48 = vpack.c.bf16 %v2921_v56, %v2920_v55  ;;  %v2959_v56 = vpack.c.bf16 %v2929_v46, %v2928_v45 }
  0xef   : > { %4989 = vmatprep.mubr.msk.bf16.mxu1 %vm254_vm2, %v2954_v53 }
  0xf0   : > { %v4729_v57 = vpop.f32.mrb[4].mxu0  ;;  %v822_v58 = vld [vmem:[#allocation2 + $0x10] sm:$0xff] }
  0xf1   : > { %500 = vst.msk [vmem:[#allocation2 + $0x30] sm:$0xff] %vm493_vm3, %v4729_v57  ;;  %v4763_v63 = vpop.f32.mrb[4].mxu1  ;;  %v366_v39 = vpop.f32.mrb[5].mxu0  ;;  %v820_v0 = vld [vmem:[#allocation2] sm:$0xff] }
  0xf2   : > { %v858_v1 = vadd.f32 %v4763_v63, %v822_v58  ;;  %498 = vst.msk [vmem:[#allocation2 + $0x20] sm:$0xff] %vm493_vm3, %v366_v39  ;;  %v677_v3 = vpop.f32.mrb[5].mxu1  ;;  %v4730_v6 = vpop.f32.mrb[6].mxu0  ;;  %v823_v7 = vld [vmem:[#allocation2 + $0x18] sm:$0xff]  ;;  %v2960_v63 = vpack.c.bf16 %v2931_v37, %v2930_v49 }
  0xf3   : > { %v856_v8 = vadd.f32 %v820_v0, %v677_v3  ;;  %501 = vst.msk [vmem:[#allocation2 + $0x38] sm:$0xff] %vm493_vm3, %v4730_v6  ;;  %v4764_v9 = vpop.f32.mrb[6].mxu1  ;;  %v369_v10 = vpop.f32.mrb[7].mxu0  ;;  %v821_v11 = vld [vmem:[#allocation2 + $0x8] sm:$0xff]  ;;  %v2932_v3 = vld [vmem:[%s5193_s26 + $0x95] sm:$0xff]  ;;  %v2933_v6 = vld [vmem:[%s5193_s26 + $0x9d] sm:$0xff] }
  0xf4   : > { %894 = vst.msk [vmem:[#allocation2 + $0x10] sm:$0xff] %vm493_vm3, %v858_v1  ;;  %v859_v14 = vadd.f32 %v4764_v9, %v823_v7  ;;  %499 = vst.msk [vmem:[#allocation2 + $0x28] sm:$0xff] %vm493_vm3, %v369_v10  ;;  %v680_v15 = vpop.f32.mrb[7].mxu1  ;;  %v2935_v9 = vld [vmem:[%s5193_s26 + $0xad] sm:$0xff] }
  0xf5   : > { %892 = vst.msk [vmem:[#allocation2] sm:$0xff] %vm493_vm3, %v856_v8  ;;  %v857_v16 = vadd.f32 %v821_v11, %v680_v15  ;;  %4960 = vmatmul.mubr.msk.bf16.gmra.mrb[112].mxu0 %vm254_vm2, %v5484_v50  ;;  %v2934_v8 = vld [vmem:[%s5193_s26 + $0xa5] sm:$0xff] }
  0xf6   : > { %895 = vst.msk [vmem:[#allocation2 + $0x18] sm:$0xff] %vm493_vm3, %v859_v14  ;;  %4990 = vmatmul.mubr.msk.bf16.vlgmr.msra.gmra.mrb[112].mxu1 %vm254_vm2, %v2955_v48  ;;  %4963 = vmatprep.mubr.msk.bf16.mxu0 %vm254_vm2, %v5500_v60  ;;  %v2962_v19 = vpack.c.bf16 %v2935_v9, %v2934_v8  ;;  %v2554_v8 = vld [vmem:[%s5193_s26 + $0x134] sm:$0xff]  ;;  %v2555_v9 = vld [vmem:[%s5193_s26 + $0x13c] sm:$0xff] }
  0xf7   : > { %893 = vst.msk [vmem:[#allocation2 + $0x8] sm:$0xff] %vm493_vm3, %v857_v16  ;;  %4993 = vmatprep.mubr.msk.bf16.mxu1 %vm254_vm2, %v2956_v13  ;;  %v2961_v16 = vpack.c.bf16 %v2933_v6, %v2932_v3 }
  0xf8   : > { %v4733_v17 = vpop.f32.mrb[8].mxu0  ;;  %v826_v18 = vld [vmem:[#allocation2 + $0x30] sm:$0xff] }
  0xf9   : > { %504 = vst.msk [vmem:[#allocation2 + $0x50] sm:$0xff] %vm493_vm3, %v4733_v17  ;;  %v4767_v50 = vpop.f32.mrb[8].mxu1  ;;  %v382_v24 = vpop.f32.mrb[9].mxu0  ;;  %v824_v27 = vld [vmem:[#allocation2 + $0x20] sm:$0xff] }
  0xfa   : > { %v862_v28 = vadd.f32 %v4767_v50, %v826_v18  ;;  %502 = vst.msk [vmem:[#allocation2 + $0x40] sm:$0xff] %vm493_vm3, %v382_v24  ;;  %v693_v29 = vpop.f32.mrb[9].mxu1  ;;  %v4734_v60 = vpop.f32.mrb[10].mxu0  ;;  %v827_v31 = vld [vmem:[#allocation2 + $0x38] sm:$0xff] }
  0xfb   : > { %v860_v33 = vadd.f32 %v824_v27, %v693_v29  ;;  %505 = vst.msk [vmem:[#allocation2 + $0x58] sm:$0xff] %vm493_vm3, %v4734_v60  ;;  %v4768_v36 = vpop.f32.mrb[10].mxu1  ;;  %v385_v38 = vpop.f32.mrb[11].mxu0  ;;  %v825_v40 = vld [vmem:[#allocation2 + $0x28] sm:$0xff]  ;;  %v2936_v27 = vld [vmem:[%s5193_s26 + $0xb5] sm:$0xff] }
  0xfc   : > { %898 = vst.msk [vmem:[#allocation2 + $0x30] sm:$0xff] %vm493_vm3, %v862_v28  ;;  %v863_v23 = vadd.f32 %v4768_v36, %v827_v31  ;;  %503 = vst.msk [vmem:[#allocation2 + $0x48] sm:$0xff] %vm493_vm3, %v385_v38  ;;  %v696_v43 = vpop.f32.mrb[11].mxu1  ;;  %v2937_v28 = vld [vmem:[%s5193_s26 + $0xbd] sm:$0xff]  ;;  %v2938_v31 = vld [vmem:[%s5193_s26 + $0xc5] sm:$0xff] }
  0xfd   : > { %896 = vst.msk [vmem:[#allocation2 + $0x20] sm:$0xff] %vm493_vm3, %v860_v33  ;;  %v861_v44 = vadd.f32 %v825_v40, %v696_v43  ;;  %4964 = vmatmul.mubr.msk.bf16.gmra.mrb[116].mxu0 %vm254_vm2, %v5502_v62 }
  0xfe   : > { %899 = vst.msk [vmem:[#allocation2 + $0x38] sm:$0xff] %vm493_vm3, %v863_v23  ;;  %4994 = vmatmul.mubr.msk.bf16.gmra.mrb[116].mxu1 %vm254_vm2, %v2957_v26  ;;  %4967 = vmatprep.mubr.msk.bf16.mxu0 %vm254_vm2, %v5518_v5  ;;  %v2939_v26 = vld [vmem:[%s5193_s26 + $0xcd] sm:$0xff]  ;;  %v2963_v23 = vpack.c.bf16 %v2937_v28, %v2936_v27 }
  0xff   : > { %897 = vst.msk [vmem:[#allocation2 + $0x28] sm:$0xff] %vm493_vm3, %v861_v44  ;;  %4997 = vmatprep.mubr.msk.bf16.mxu1 %vm254_vm2, %v2958_v32 }
 0x100   : > { %v4737_v25 = vpop.f32.mrb[12].mxu0  ;;  %v830_v47 = vld [vmem:[#allocation2 + $0x50] sm:$0xff] }
 0x101   : > { %508 = vst.msk [vmem:[#allocation2 + $0x70] sm:$0xff] %vm493_vm3, %v4737_v25  ;;  %v4771_v62 = vpop.f32.mrb[12].mxu1  ;;  %v398_v2 = vpop.f32.mrb[13].mxu0  ;;  %v828_v52 = vld [vmem:[#allocation2 + $0x40] sm:$0xff]  ;;  %v2964_v25 = vpack.c.bf16 %v2939_v26, %v2938_v31 }
 0x102   : > { %v866_v53 = vadd.f32 %v4771_v62, %v830_v47  ;;  %506 = vst.msk [vmem:[#allocation2 + $0x60] sm:$0xff] %vm493_vm3, %v398_v2  ;;  %v709_v54 = vpop.f32.mrb[13].mxu1  ;;  %v4738_v5 = vpop.f32.mrb[14].mxu0  ;;  %v831_v55 = vld [vmem:[#allocation2 + $0x58] sm:$0xff] }
 0x103   : > { %v864_v57 = vadd.f32 %v828_v52, %v709_v54  ;;  %509 = vst.msk [vmem:[#allocation2 + $0x78] sm:$0xff] %vm493_vm3, %v4738_v5  ;;  %v4772_v58 = vpop.f32.mrb[14].mxu1  ;;  %v401_v59 = vpop.f32.mrb[15].mxu0  ;;  %v829_v61 = vld [vmem:[#allocation2 + $0x48] sm:$0xff]  ;;  %v2940_v62 = vld [vmem:[%s5193_s26 + $0xd5] sm:$0xff]  ;;  %v2941_v2 = vld [vmem:[%s5193_s26 + $0xdd] sm:$0xff] }
 0x104   : > { %902 = vst.msk [vmem:[#allocation2 + $0x50] sm:$0xff] %vm493_vm3, %v866_v53  ;;  %v867_v39 = vadd.f32 %v4772_v58, %v831_v55  ;;  %507 = vst.msk [vmem:[#allocation2 + $0x68] sm:$0xff] %vm493_vm3, %v401_v59  ;;  %v712_v0 = vpop.f32.mrb[15].mxu1  ;;  %v2942_v54 = vld [vmem:[%s5193_s26 + $0xe5] sm:$0xff]  ;;  %v2943_v5 = vld [vmem:[%s5193_s26 + $0xed] sm:$0xff] }
 0x105   : > { %900 = vst.msk [vmem:[#allocation2 + $0x40] sm:$0xff] %vm493_vm3, %v864_v57  ;;  %v865_v1 = vadd.f32 %v829_v61, %v712_v0  ;;  %4968 = vmatmul.mubr.msk.bf16.gmra.mrb[120].mxu0 %vm254_vm2, %v5520_v12  ;;  %v2965_v61 = vpack.c.bf16 %v2941_v2, %v2940_v62  ;;  %v2966_v3 = vpack.c.bf16 %v2943_v5, %v2942_v54  ;;  %v1218_v2 = vld [vmem:[#allocation2] sm:$0xff] }
 0x106   : > { %903 = vst.msk [vmem:[#allocation2 + $0x58] sm:$0xff] %vm493_vm3, %v867_v39  ;;  %4998 = vmatmul.mubr.msk.bf16.gmra.mrb[120].mxu1 %vm254_vm2, %v2959_v56  ;;  %4971 = vmatprep.mubr.msk.bf16.mxu0 %vm254_vm2, %v5536_v20 }
 0x107   : > { %901 = vst.msk [vmem:[#allocation2 + $0x48] sm:$0xff] %vm493_vm3, %v865_v1  ;;  %5001 = vmatprep.mubr.msk.bf16.mxu1 %vm254_vm2, %v2960_v63 }
 0x108   : > { %v4741_v7 = vpop.f32.mrb[16].mxu0  ;;  %v834_v48 = vld [vmem:[#allocation2 + $0x70] sm:$0xff] }
 0x109   : > { %512 = vst.msk [vmem:[#allocation2 + $0x90] sm:$0xff] %vm493_vm3, %v4741_v7  ;;  %v4775_v12 = vpop.f32.mrb[16].mxu1  ;;  %v414_v10 = vpop.f32.mrb[17].mxu0  ;;  %v832_v11 = vld [vmem:[#allocation2 + $0x60] sm:$0xff] }
 0x10a   : > { %v870_v13 = vadd.f32 %v4775_v12, %v834_v48  ;;  %510 = vst.msk [vmem:[#allocation2 + $0x80] sm:$0xff] %vm493_vm3, %v414_v10  ;;  %v725_v14 = vpop.f32.mrb[17].mxu1  ;;  %v4742_v20 = vpop.f32.mrb[18].mxu0  ;;  %v835_v15 = vld [vmem:[#allocation2 + $0x78] sm:$0xff] }
 0x10b   : > { %v868_v4 = vadd.f32 %v832_v11, %v725_v14  ;;  %513 = vst.msk [vmem:[#allocation2 + $0x98] sm:$0xff] %vm493_vm3, %v4742_v20  ;;  %v4776_v30 = vpop.f32.mrb[18].mxu1  ;;  %v417_v17 = vpop.f32.mrb[19].mxu0  ;;  %v833_v18 = vld [vmem:[#allocation2 + $0x68] sm:$0xff]  ;;  %v2944_v12 = vld [vmem:[%s5193_s26 + $0xf5] sm:$0xff]  ;;  %v2945_v10 = vld [vmem:[%s5193_s26 + $0xfd] sm:$0xff] }
 0x10c   : > { %906 = vst.msk [vmem:[#allocation2 + $0x70] sm:$0xff] %vm493_vm3, %v870_v13  ;;  %v871_v21 = vadd.f32 %v4776_v30, %v835_v15  ;;  %511 = vst.msk [vmem:[#allocation2 + $0x88] sm:$0xff] %vm493_vm3, %v417_v17  ;;  %v728_v50 = vpop.f32.mrb[19].mxu1  ;;  %v3316_v11 = vld [vmem:[%s5193_s26 + $0x26] sm:$0xff]  ;;  %v3317_v13 = vld [vmem:[%s5193_s26 + $0x2e] sm:$0xff] }
 0x10d   : > { %904 = vst.msk [vmem:[#allocation2 + $0x60] sm:$0xff] %vm493_vm3, %v868_v4  ;;  %v869_v24 = vadd.f32 %v833_v18, %v728_v50  ;;  %4972 = vmatmul.mubr.msk.bf16.gmra.mrb[124].mxu0 %vm254_vm2, %v5538_v22  ;;  %v2947_v15 = vld [vmem:[%s5193_s26 + $0x10d] sm:$0xff]  ;;  %v2967_v50 = vpack.c.bf16 %v2945_v10, %v2944_v12  ;;  %v3323_v12 = vld [vmem:[%s5193_s26 + $0x5e] sm:$0xff] }
 0x10e   : > { %907 = vst.msk [vmem:[#allocation2 + $0x78] sm:$0xff] %vm493_vm3, %v871_v21  ;;  %5002 = vmatmul.mubr.msk.bf16.gmra.mrb[124].mxu1 %vm254_vm2, %v2961_v16  ;;  %4975 = vmatprep.mubr.msk.bf16.mxu0 %vm254_vm2, %v5552_v34  ;;  %v2953_v10 = vld [vmem:[%s5193_s26 + $0x13d] sm:$0xff] }
 0x10f   : > { %905 = vst.msk [vmem:[#allocation2 + $0x68] sm:$0xff] %vm493_vm3, %v869_v24  ;;  %5005 = vmatprep.mubr.msk.bf16.mxu1 %vm254_vm2, %v2962_v19  ;;  %v3352_v24 = vpack.c.bf16 %v3317_v13, %v3316_v11  ;;  %v3324_v11 = vld [vmem:[%s5193_s26 + $0x66] sm:$0xff]  ;;  %v3325_v13 = vld [vmem:[%s5193_s26 + $0x6e] sm:$0xff] }
 0x110   : > { %v4745_v29 = vpop.f32.mrb[20].mxu0  ;;  %v838_v60 = vld [vmem:[#allocation2 + $0x90] sm:$0xff] }
 0x111   : > { %516 = vst.msk [vmem:[#allocation2 + $0xb0] sm:$0xff] %vm493_vm3, %v4745_v29  ;;  %v4779_v22 = vpop.f32.mrb[20].mxu1  ;;  %v430_v33 = vpop.f32.mrb[21].mxu0  ;;  %v836_v36 = vld [vmem:[#allocation2 + $0x80] sm:$0xff] }
 0x112   : > { %v874_v38 = vadd.f32 %v4779_v22, %v838_v60  ;;  %514 = vst.msk [vmem:[#allocation2 + $0xa0] sm:$0xff] %vm493_vm3, %v430_v33  ;;  %v741_v40 = vpop.f32.mrb[21].mxu1  ;;  %v4746_v34 = vpop.f32.mrb[22].mxu0  ;;  %v839_v32 = vld [vmem:[#allocation2 + $0x98] sm:$0xff] }
 0x113   : > { %v872_v43 = vadd.f32 %v836_v36, %v741_v40  ;;  %517 = vst.msk [vmem:[#allocation2 + $0xb8] sm:$0xff] %vm493_vm3, %v4746_v34  ;;  %v4780_v44 = vpop.f32.mrb[22].mxu1  ;;  %v433_v45 = vpop.f32.mrb[23].mxu0  ;;  %v837_v46 = vld [vmem:[#allocation2 + $0x88] sm:$0xff]  ;;  %v2948_v36 = vld [vmem:[%s5193_s26 + $0x115] sm:$0xff]  ;;  %v3319_v34 = vld [vmem:[%s5193_s26 + $0x3e] sm:$0xff] }
 0x114   : > { %910 = vst.msk [vmem:[#allocation2 + $0x90] sm:$0xff] %vm493_vm3, %v874_v38  ;;  %v875_v47 = vadd.f32 %v4780_v44, %v839_v32  ;;  %515 = vst.msk [vmem:[#allocation2 + $0xa8] sm:$0xff] %vm493_vm3, %v433_v45  ;;  %v744_v49 = vpop.f32.mrb[23].mxu1  ;;  %v2949_v38 = vld [vmem:[%s5193_s26 + $0x11d] sm:$0xff]  ;;  %v2950_v32 = vld [vmem:[%s5193_s26 + $0x125] sm:$0xff] }
 0x115   : > { %908 = vst.msk [vmem:[#allocation2 + $0x80] sm:$0xff] %vm493_vm3, %v872_v43  ;;  %v873_v37 = vadd.f32 %v837_v46, %v744_v49  ;;  %4976 = vmatmul.mubr.msk.bf16.gmra.mrb[128].mxu0 %vm254_vm2, %v5554_v35  ;;  %v3318_v40 = vld [vmem:[%s5193_s26 + $0x36] sm:$0xff]  ;;  %v3321_v43 = vld [vmem:[%s5193_s26 + $0x4e] sm:$0xff] }
 0x116   : > { %911 = vst.msk [vmem:[#allocation2 + $0x98] sm:$0xff] %vm493_vm3, %v875_v47  ;;  %5006 = vmatmul.mubr.msk.bf16.gmra.mrb[128].mxu1 %vm254_vm2, %v2963_v23  ;;  %4979 = vmatprep.mubr.msk.bf16.mxu0 %vm254_vm2, %v5567_v41  ;;  %v3320_v23 = vld [vmem:[%s5193_s26 + $0x46] sm:$0xff]  ;;  %v1220_v46 = vld [vmem:[#allocation2 + $0x10] sm:$0xff] }
 0x117   : > { %909 = vst.msk [vmem:[#allocation2 + $0x88] sm:$0xff] %vm493_vm3, %v873_v37  ;;  %5009 = vmatprep.mubr.msk.bf16.mxu1 %vm254_vm2, %v2964_v25  ;;  %v2951_v25 = vld [vmem:[%s5193_s26 + $0x12d] sm:$0xff] }
 0x118   : > { %v4749_v52 = vpop.f32.mrb[24].mxu0  ;;  %v842_v53 = vld [vmem:[#allocation2 + $0xb0] sm:$0xff] }
 0x119   : > { %520 = vst.msk [vmem:[#allocation2 + $0xd0] sm:$0xff] %vm493_vm3, %v4749_v52  ;;  %v4783_v35 = vpop.f32.mrb[24].mxu1  ;;  %v446_v55 = vpop.f32.mrb[25].mxu0  ;;  %v840_v56 = vld [vmem:[#allocation2 + $0xa0] sm:$0xff]  ;;  %v3353_v52 = vpack.c.bf16 %v3319_v34, %v3318_v40  ;;  %v853_v40 = vld [vmem:[#allocation2 + $0x108] sm:$0xff] }
 0x11a   : > { %v878_v57 = vadd.f32 %v4783_v35, %v842_v53  ;;  %518 = vst.msk [vmem:[#allocation2 + $0xc0] sm:$0xff] %vm493_vm3, %v446_v55  ;;  %v757_v58 = vpop.f32.mrb[25].mxu1  ;;  %v4750_v41 = vpop.f32.mrb[26].mxu0  ;;  %v843_v59 = vld [vmem:[#allocation2 + $0xb8] sm:$0xff] }
 0x11b   : > { %v876_v63 = vadd.f32 %v840_v56, %v757_v58  ;;  %521 = vst.msk [vmem:[#allocation2 + $0xd8] sm:$0xff] %vm493_vm3, %v4750_v41  ;;  %v4784_v39 = vpop.f32.mrb[26].mxu1  ;;  %v449_v0 = vpop.f32.mrb[27].mxu0  ;;  %v841_v1 = vld [vmem:[#allocation2 + $0xa8] sm:$0xff]  ;;  %v1221_v56 = vld [vmem:[#allocation2 + $0x18] sm:$0xff]  ;;  %v3354_v58 = vpack.c.bf16 %v3321_v43, %v3320_v23 }
 0x11c   : > { %914 = vst.msk [vmem:[#allocation2 + $0xb0] sm:$0xff] %vm493_vm3, %v878_v57  ;;  %v879_v6 = vadd.f32 %v4784_v39, %v843_v59  ;;  %519 = vst.msk [vmem:[#allocation2 + $0xc8] sm:$0xff] %vm493_vm3, %v449_v0  ;;  %v760_v7 = vpop.f32.mrb[27].mxu1  ;;  %v2969_v57 = vpack.c.bf16 %v2949_v38, %v2948_v36  ;;  %v1219_v0 = vld [vmem:[#allocation2 + $0x8] sm:$0xff]  ;;  %v3326_v23 = vld [vmem:[%s5193_s26 + $0x76] sm:$0xff] }
 0x11d   : > { %912 = vst.msk [vmem:[#allocation2 + $0xa0] sm:$0xff] %vm493_vm3, %v876_v63  ;;  %v877_v48 = vadd.f32 %v841_v1, %v760_v7  ;;  %4980 = vmatmul.mubr.msk.bf16.gmra.mrb[132].mxu0 %vm254_vm2, %v5569_v42  ;;  %v2946_v42 = vld [vmem:[%s5193_s26 + $0x105] sm:$0xff]  ;;  %v2970_v1 = vpack.c.bf16 %v2951_v25, %v2950_v32  ;;  %v1228_v25 = vld [vmem:[#allocation2 + $0x50] sm:$0xff] }
 0x11e   : > { %915 = vst.msk [vmem:[#allocation2 + $0xb8] sm:$0xff] %vm493_vm3, %v879_v6  ;;  %5010 = vmatmul.mubr.msk.bf16.gmra.mrb[132].mxu1 %vm254_vm2, %v2965_v61  ;;  %4983 = vmatprep.mubr.msk.bf16.mxu0 %vm254_vm2, %v5587_v51  ;;  %v2573_v51 = vpack.c.bf16 %v2555_v9, %v2554_v8  ;;  %v2968_v31 = vpack.c.bf16 %v2947_v15, %v2946_v42  ;;  %v2952_v8 = vld [vmem:[%s5193_s26 + $0x135] sm:$0xff]  ;;  %v3327_v43 = vld [vmem:[%s5193_s26 + $0x7e] sm:$0xff] }
 0x11f   : > { %913 = vst.msk [vmem:[#allocation2 + $0xa8] sm:$0xff] %vm493_vm3, %v877_v48  ;;  %5013 = vmatprep.mubr.msk.bf16.mxu1 %vm254_vm2, %v2966_v3  ;;  %v3322_v9 = vld [vmem:[%s5193_s26 + $0x56] sm:$0xff] }
 0x120   : > { %v4753_v14 = vpop.f32.mrb[28].mxu0  ;;  %v846_v20 = vld [vmem:[#allocation2 + $0xd0] sm:$0xff] }
 0x121   : > { %524 = vst.msk [vmem:[#allocation2 + $0xf0] sm:$0xff] %vm493_vm3, %v4753_v14  ;;  %v4787_v16 = vpop.f32.mrb[28].mxu1  ;;  %v462_v4 = vpop.f32.mrb[29].mxu0  ;;  %v844_v30 = vld [vmem:[#allocation2 + $0xc0] sm:$0xff]  ;;  %v854_v15 = vld [vmem:[#allocation2 + $0x110] sm:$0xff] }
 0x122   : > { %v882_v17 = vadd.f32 %v4787_v16, %v846_v20  ;;  %522 = vst.msk [vmem:[#allocation2 + $0xe0] sm:$0xff] %vm493_vm3, %v462_v4  ;;  %v773_v18 = vpop.f32.mrb[29].mxu1  ;;  %v4754_v19 = vpop.f32.mrb[30].mxu0  ;;  %v847_v21 = vld [vmem:[#allocation2 + $0xd8] sm:$0xff]  ;;  %v1224_v20 = vld [vmem:[#allocation2 + $0x30] sm:$0xff] }
 0x123   : > { %v880_v27 = vadd.f32 %v844_v30, %v773_v18  ;;  %525 = vst.msk [vmem:[#allocation2 + $0xf8] sm:$0xff] %vm493_vm3, %v4754_v19  ;;  %v4788_v28 = vpop.f32.mrb[30].mxu1  ;;  %v465_v29 = vpop.f32.mrb[31].mxu0  ;;  %v845_v60 = vld [vmem:[#allocation2 + $0xc8] sm:$0xff]  ;;  %v1222_v30 = vld [vmem:[#allocation2 + $0x20] sm:$0xff] }
 0x124   : > { %918 = vst.msk [vmem:[#allocation2 + $0xd0] sm:$0xff] %vm493_vm3, %v882_v17  ;;  %v883_v26 = vadd.f32 %v4788_v28, %v847_v21  ;;  %523 = vst.msk [vmem:[#allocation2 + $0xe8] sm:$0xff] %vm493_vm3, %v465_v29  ;;  %v776_v22 = vpop.f32.mrb[31].mxu1  ;;  %v852_v19 = vld [vmem:[#allocation2 + $0x100] sm:$0xff]  ;;  %v3356_v28 = vpack.c.bf16 %v3325_v13, %v3324_v11  ;;  %v1232_v11 = vld [vmem:[#allocation2 + $0x70] sm:$0xff] }
 0x125   : > { %916 = vst.msk [vmem:[#allocation2 + $0xc0] sm:$0xff] %vm493_vm3, %v880_v27  ;;  %v881_v33 = vadd.f32 %v845_v60, %v776_v22  ;;  %4984 = vmatmul.mubr.msk.bf16.gmra.mrb[136].mxu0 %vm254_vm2, %v2573_v51  ;;  %v3355_v51 = vpack.c.bf16 %v3323_v12, %v3322_v9  ;;  %v2971_v27 = vpack.c.bf16 %v2953_v10, %v2952_v8  ;;  %v3331_v8 = vld [vmem:[%s5193_s26 + $0x9e] sm:$0xff]  ;;  %v3332_v9 = vld [vmem:[%s5193_s26 + $0xa6] sm:$0xff]  ;;  %v3333_v12 = vld [vmem:[%s5193_s26 + $0xae] sm:$0xff] }
 0x126   : > { %919 = vst.msk [vmem:[#allocation2 + $0xd8] sm:$0xff] %vm493_vm3, %v883_v26  ;;  %5014 = vmatmul.mubr.msk.bf16.gmra.mrb[136].mxu1 %vm254_vm2, %v2967_v50  ;;  %5027 = vmatprep.mubr.msk.bf16.mxu0 %vm254_vm2, %v3352_v24  ;;  %v1225_v24 = vld [vmem:[#allocation2 + $0x38] sm:$0xff] }
 0x127   : > { %917 = vst.msk [vmem:[#allocation2 + $0xc8] sm:$0xff] %vm493_vm3, %v881_v33  ;;  %5017 = vmatprep.mubr.msk.bf16.mxu1 %vm254_vm2, %v2968_v31  ;;  %v855_v31 = vld [vmem:[#allocation2 + $0x118] sm:$0xff]  ;;  %v1223_v33 = vld [vmem:[#allocation2 + $0x28] sm:$0xff] }
 0x128   : > { %v850_v44 = vld [vmem:[#allocation2 + $0xf0] sm:$0xff]  ;;  %v4801_v45 = vpop.f32.mrb[32].mxu0 }
 0x129   : > { %v4791_v47 = vpop.f32.mrb[32].mxu1  ;;  %v1256_v49 = vadd.f32 %v4801_v45, %v1220_v46  ;;  %v848_v37 = vld [vmem:[#allocation2 + $0xe0] sm:$0xff]  ;;  %v1075_v62 = vpop.f32.mrb[33].mxu0  ;;  %v3329_v45 = vld [vmem:[%s5193_s26 + $0x8e] sm:$0xff] }
 0x12a   : > { %v886_v53 = vadd.f32 %v4791_v47, %v850_v44  ;;  %v789_v54 = vpop.f32.mrb[33].mxu1  ;;  %v1254_v5 = vadd.f32 %v1218_v2, %v1075_v62  ;;  %v851_v35 = vld [vmem:[#allocation2 + $0xf8] sm:$0xff]  ;;  %v4802_v55 = vpop.f32.mrb[34].mxu0  ;;  %v3328_v44 = vld [vmem:[%s5193_s26 + $0x86] sm:$0xff] }
 0x12b   : > { %1292 = vst.msk [vmem:[#allocation2 + $0x10] sm:$0xff] %vm493_vm3, %v1256_v49  ;;  %v884_v41 = vadd.f32 %v848_v37, %v789_v54  ;;  %v4792_v59 = vpop.f32.mrb[34].mxu1  ;;  %v1257_v61 = vadd.f32 %v4802_v55, %v1221_v56  ;;  %v849_v63 = vld [vmem:[#allocation2 + $0xe8] sm:$0xff]  ;;  %v1078_v39 = vpop.f32.mrb[35].mxu0  ;;  %v1226_v2 = vld [vmem:[#allocation2 + $0x40] sm:$0xff]  ;;  %v1229_v56 = vld [vmem:[#allocation2 + $0x58] sm:$0xff] }
 0x12c   : > { %922 = vst.msk [vmem:[#allocation2 + $0xf0] sm:$0xff] %vm493_vm3, %v886_v53  ;;  %1290 = vst.msk [vmem:[#allocation2] sm:$0xff] %vm493_vm3, %v1254_v5  ;;  %v887_v3 = vadd.f32 %v4792_v59, %v851_v35  ;;  %v792_v6 = vpop.f32.mrb[35].mxu1  ;;  %v1255_v7 = vadd.f32 %v1219_v0, %v1078_v39  ;;  %v1227_v39 = vld [vmem:[#allocation2 + $0x48] sm:$0xff] }
 0x12d   : > { %920 = vst.msk [vmem:[#allocation2 + $0xe0] sm:$0xff] %vm493_vm3, %v884_v41  ;;  %1293 = vst.msk [vmem:[#allocation2 + $0x18] sm:$0xff] %vm493_vm3, %v1257_v61  ;;  %v885_v48 = vadd.f32 %v849_v63, %v792_v6  ;;  %5028 = vmatmul.mubr.msk.bf16.vlgmr.msra.gmra.mrb[140].mxu0 %vm254_vm2, %v3353_v52  ;;  %v3357_v52 = vpack.c.bf16 %v3327_v43, %v3326_v23  ;;  %v1236_v43 = vld [vmem:[#allocation2 + $0x90] sm:$0xff] }
 0x12e   : > { %923 = vst.msk [vmem:[#allocation2 + $0xf8] sm:$0xff] %vm493_vm3, %v887_v3  ;;  %1291 = vst.msk [vmem:[#allocation2 + $0x8] sm:$0xff] %vm493_vm3, %v1255_v7  ;;  %5018 = vmatmul.mubr.msk.bf16.gmra.mrb[140].mxu1 %vm254_vm2, %v2969_v57  ;;  %5031 = vmatprep.mubr.msk.bf16.mxu0 %vm254_vm2, %v3354_v58  ;;  %v3358_v57 = vpack.c.bf16 %v3329_v45, %v3328_v44 }
 0x12f   : > { %921 = vst.msk [vmem:[#allocation2 + $0xe8] sm:$0xff] %vm493_vm3, %v885_v48  ;;  %5021 = vmatprep.mubr.msk.bf16.mxu1 %vm254_vm2, %v2970_v1  ;;  %v3330_v48 = vld [vmem:[%s5193_s26 + $0x96] sm:$0xff] }
 0x130   : > { %v4805_v14 = vpop.f32.mrb[36].mxu0 }
 0x131   : > { %v4795_v42 = vpop.f32.mrb[36].mxu1  ;;  %v1260_v16 = vadd.f32 %v4805_v14, %v1224_v20  ;;  %v1091_v4 = vpop.f32.mrb[37].mxu0 }
 0x132   : > { %v890_v17 = vadd.f32 %v4795_v42, %v854_v15  ;;  %v805_v18 = vpop.f32.mrb[37].mxu1  ;;  %v1258_v21 = vadd.f32 %v1222_v30, %v1091_v4  ;;  %v4806_v50 = vpop.f32.mrb[38].mxu0  ;;  %v1618_v37 = vld [vmem:[#allocation2 + $0x10] sm:$0xff]  ;;  %v1230_v15 = vld [vmem:[#allocation2 + $0x60] sm:$0xff] }
 0x133   : > { %1296 = vst.msk [vmem:[#allocation2 + $0x30] sm:$0xff] %vm493_vm3, %v1260_v16  ;;  %v888_v29 = vadd.f32 %v852_v19, %v805_v18  ;;  %v4796_v60 = vpop.f32.mrb[38].mxu1  ;;  %v1261_v26 = vadd.f32 %v4806_v50, %v1225_v24  ;;  %v1094_v22 = vpop.f32.mrb[39].mxu0  ;;  %v1616_v35 = vld [vmem:[#allocation2] sm:$0xff]  ;;  %v3359_v16 = vpack.c.bf16 %v3331_v8, %v3330_v48  ;;  %v1233_v19 = vld [vmem:[#allocation2 + $0x78] sm:$0xff]  ;;  %v1240_v8 = vld [vmem:[#allocation2 + $0xb0] sm:$0xff] }
 0x134   : > { %926 = vst.msk [vmem:[#allocation2 + $0x110] sm:$0xff] %vm493_vm3, %v890_v17  ;;  %1294 = vst.msk [vmem:[#allocation2 + $0x20] sm:$0xff] %vm493_vm3, %v1258_v21  ;;  %v891_v36 = vadd.f32 %v4796_v60, %v855_v31  ;;  %v808_v38 = vpop.f32.mrb[39].mxu1  ;;  %v1259_v34 = vadd.f32 %v1223_v33, %v1094_v22  ;;  %v1619_v61 = vld [vmem:[#allocation2 + $0x18] sm:$0xff]  ;;  %v3360_v21 = vpack.c.bf16 %v3333_v12, %v3332_v9  ;;  %v1231_v60 = vld [vmem:[#allocation2 + $0x68] sm:$0xff] }
 0x135   : > { %924 = vst.msk [vmem:[#allocation2 + $0x100] sm:$0xff] %vm493_vm3, %v888_v29  ;;  %1297 = vst.msk [vmem:[#allocation2 + $0x38] sm:$0xff] %vm493_vm3, %v1261_v26  ;;  %v889_v32 = vadd.f32 %v853_v40, %v808_v38  ;;  %5032 = vmatmul.mubr.msk.bf16.gmra.mrb[144].mxu0 %vm254_vm2, %v3355_v51  ;;  %v1617_v6 = vld [vmem:[#allocation2 + $0x8] sm:$0xff]  ;;  %v3334_v38 = vld [vmem:[%s5193_s26 + $0xb6] sm:$0xff] }
 0x136   : > { %927 = vst.msk [vmem:[#allocation2 + $0x118] sm:$0xff] %vm493_vm3, %v891_v36  ;;  %1295 = vst.msk [vmem:[#allocation2 + $0x28] sm:$0xff] %vm493_vm3, %v1259_v34  ;;  %5022 = vmatmul.mubr.msk.bf16.gmra.mrb[144].mxu1 %vm254_vm2, %v2971_v27  ;;  %5035 = vmatprep.mubr.msk.bf16.mxu0 %vm254_vm2, %v3356_v28  ;;  %v3335_v40 = vld [vmem:[%s5193_s26 + $0xbe] sm:$0xff]  ;;  %v3336_v34 = vld [vmem:[%s5193_s26 + $0xc6] sm:$0xff] }
 0x137   : > { %925 = vst.msk [vmem:[#allocation2 + $0x108] sm:$0xff] %vm493_vm3, %v889_v32  ;;  %v3337_v32 = vld [vmem:[%s5193_s26 + $0xce] sm:$0xff] }
 0x138   : > { %v4809_v46 = vpop.f32.mrb[40].mxu0 }
 0x139   : > { %v1264_v47 = vadd.f32 %v4809_v46, %v1228_v25  ;;  %v4839_v49 = vpop.f32.mrb[40].mxu1  ;;  %v1107_v62 = vpop.f32.mrb[41].mxu0 }
 0x13a   : > { %v1654_v53 = vadd.f32 %v4839_v49, %v1618_v37  ;;  %v1262_v54 = vadd.f32 %v1226_v2, %v1107_v62  ;;  %v1473_v5 = vpop.f32.mrb[41].mxu1  ;;  %v4810_v55 = vpop.f32.mrb[42].mxu0  ;;  %v1622_v20 = vld [vmem:[#allocation2 + $0x30] sm:$0xff]  ;;  %v3361_v49 = vpack.c.bf16 %v3335_v40, %v3334_v38 }
 0x13b   : > { %1300 = vst.msk [vmem:[#allocation2 + $0x50] sm:$0xff] %vm493_vm3, %v1264_v47  ;;  %v1652_v58 = vadd.f32 %v1616_v35, %v1473_v5  ;;  %v1265_v41 = vadd.f32 %v4810_v55, %v1229_v56  ;;  %v4840_v59 = vpop.f32.mrb[42].mxu1  ;;  %v1110_v63 = vpop.f32.mrb[43].mxu0  ;;  %v1620_v17 = vld [vmem:[#allocation2 + $0x20] sm:$0xff]  ;;  %v3362_v5 = vpack.c.bf16 %v3337_v32, %v3336_v34  ;;  %v1244_v40 = vld [vmem:[#allocation2 + $0xd0] sm:$0xff] }
 0x13c   : > { %1690 = vst.msk [vmem:[#allocation2 + $0x10] sm:$0xff] %vm493_vm3, %v1654_v53  ;;  %1298 = vst.msk [vmem:[#allocation2 + $0x40] sm:$0xff] %vm493_vm3, %v1262_v54  ;;  %v1655_v0 = vadd.f32 %v4840_v59, %v1619_v61  ;;  %v1263_v1 = vadd.f32 %v1227_v39, %v1110_v63  ;;  %v1476_v3 = vpop.f32.mrb[43].mxu1  ;;  %v1623_v28 = vld [vmem:[#allocation2 + $0x38] sm:$0xff]  ;;  %v1234_v47 = vld [vmem:[#allocation2 + $0x80] sm:$0xff] }
 0x13d   : > { %1688 = vst.msk [vmem:[#allocation2] sm:$0xff] %vm493_vm3, %v1652_v58  ;;  %1301 = vst.msk [vmem:[#allocation2 + $0x58] sm:$0xff] %vm493_vm3, %v1265_v41  ;;  %v1653_v7 = vadd.f32 %v1617_v6, %v1476_v3  ;;  %5036 = vmatmul.mubr.msk.bf16.gmra.mrb[148].mxu0 %vm254_vm2, %v3357_v52  ;;  %v1621_v33 = vld [vmem:[#allocation2 + $0x28] sm:$0xff]  ;;  %v1237_v54 = vld [vmem:[#allocation2 + $0x98] sm:$0xff] }
 0x13e   : > { %1691 = vst.msk [vmem:[#allocation2 + $0x18] sm:$0xff] %vm493_vm3, %v1655_v0  ;;  %1299 = vst.msk [vmem:[#allocation2 + $0x48] sm:$0xff] %vm493_vm3, %v1263_v1  ;;  %5039 = vmatprep.mubr.msk.bf16.mxu0 %vm254_vm2, %v3358_v57  ;;  %v1235_v41 = vld [vmem:[#allocation2 + $0x88] sm:$0xff]  ;;  %v3338_v1 = vld [vmem:[%s5193_s26 + $0xd6] sm:$0xff] }
 0x13f   : > { %1689 = vst.msk [vmem:[#allocation2 + $0x8] sm:$0xff] %vm493_vm3, %v1653_v7  ;;  %v3339_v3 = vld [vmem:[%s5193_s26 + $0xde] sm:$0xff]  ;;  %v3340_v6 = vld [vmem:[%s5193_s26 + $0xe6] sm:$0xff]  ;;  %v3341_v7 = vld [vmem:[%s5193_s26 + $0xee] sm:$0xff] }
 0x140   : > { %v4813_v10 = vpop.f32.mrb[44].mxu0 }
 0x141   : > { %v1268_v13 = vadd.f32 %v4813_v10, %v1232_v11  ;;  %v4843_v14 = vpop.f32.mrb[44].mxu1  ;;  %v1123_v42 = vpop.f32.mrb[45].mxu0 }
 0x142   : > { %v1658_v4 = vadd.f32 %v4843_v14, %v1622_v20  ;;  %v1266_v30 = vadd.f32 %v1230_v15, %v1123_v42  ;;  %v1489_v51 = vpop.f32.mrb[45].mxu1  ;;  %v4814_v18 = vpop.f32.mrb[46].mxu0  ;;  %v1626_v46 = vld [vmem:[#allocation2 + $0x50] sm:$0xff]  ;;  %v3363_v14 = vpack.c.bf16 %v3339_v3, %v3338_v1 }
 0x143   : > { %1304 = vst.msk [vmem:[#allocation2 + $0x70] sm:$0xff] %vm493_vm3, %v1268_v13  ;;  %v1656_v50 = vadd.f32 %v1620_v17, %v1489_v51  ;;  %v1269_v24 = vadd.f32 %v4814_v18, %v1233_v19  ;;  %v4844_v27 = vpop.f32.mrb[46].mxu1  ;;  %v1126_v29 = vpop.f32.mrb[47].mxu0  ;;  %v1624_v52 = vld [vmem:[#allocation2 + $0x40] sm:$0xff]  ;;  %v3364_v51 = vpack.c.bf16 %v3341_v7, %v3340_v6  ;;  %v1248_v3 = vld [vmem:[#allocation2 + $0xf0] sm:$0xff] }
 0x144   : > { %1694 = vst.msk [vmem:[#allocation2 + $0x30] sm:$0xff] %vm493_vm3, %v1658_v4  ;;  %1302 = vst.msk [vmem:[#allocation2 + $0x60] sm:$0xff] %vm493_vm3, %v1266_v30  ;;  %v1659_v31 = vadd.f32 %v4844_v27, %v1623_v28  ;;  %v1267_v26 = vadd.f32 %v1231_v60, %v1126_v29  ;;  %v1492_v22 = vpop.f32.mrb[47].mxu1  ;;  %v1627_v57 = vld [vmem:[#allocation2 + $0x58] sm:$0xff]  ;;  %v1238_v13 = vld [vmem:[#allocation2 + $0xa0] sm:$0xff] }
 0x145   : > { %1692 = vst.msk [vmem:[#allocation2 + $0x20] sm:$0xff] %vm493_vm3, %v1656_v50  ;;  %1305 = vst.msk [vmem:[#allocation2 + $0x78] sm:$0xff] %vm493_vm3, %v1269_v24  ;;  %v1657_v36 = vadd.f32 %v1621_v33, %v1492_v22  ;;  %5040 = vmatmul.mubr.msk.bf16.gmra.mrb[152].mxu0 %vm254_vm2, %v3359_v16  ;;  %v1625_v39 = vld [vmem:[#allocation2 + $0x48] sm:$0xff]  ;;  %v1241_v30 = vld [vmem:[#allocation2 + $0xb8] sm:$0xff] }
 0x146   : > { %1695 = vst.msk [vmem:[#allocation2 + $0x38] sm:$0xff] %vm493_vm3, %v1659_v31  ;;  %1303 = vst.msk [vmem:[#allocation2 + $0x68] sm:$0xff] %vm493_vm3, %v1267_v26  ;;  %5043 = vmatprep.mubr.msk.bf16.mxu0 %vm254_vm2, %v3360_v21  ;;  %v1239_v24 = vld [vmem:[#allocation2 + $0xa8] sm:$0xff]  ;;  %v3342_v26 = vld [vmem:[%s5193_s26 + $0xf6] sm:$0xff] }
 0x147   : > { %1693 = vst.msk [vmem:[#allocation2 + $0x28] sm:$0xff] %vm493_vm3, %v1657_v36  ;;  %v3343_v22 = vld [vmem:[%s5193_s26 + $0xfe] sm:$0xff]  ;;  %v3344_v33 = vld [vmem:[%s5193_s26 + $0x106] sm:$0xff]  ;;  %v3345_v36 = vld [vmem:[%s5193_s26 + $0x10e] sm:$0xff] }
 0x148   : > { %v4817_v23 = vpop.f32.mrb[48].mxu0 }
 0x149   : > { %v1272_v44 = vadd.f32 %v4817_v23, %v1236_v43  ;;  %v4847_v45 = vpop.f32.mrb[48].mxu1  ;;  %v1139_v25 = vpop.f32.mrb[49].mxu0 }
 0x14a   : > { %v1662_v37 = vadd.f32 %v4847_v45, %v1626_v46  ;;  %v1270_v62 = vadd.f32 %v1234_v47, %v1139_v25  ;;  %v1505_v2 = vpop.f32.mrb[49].mxu1  ;;  %v4818_v53 = vpop.f32.mrb[50].mxu0  ;;  %v1630_v10 = vld [vmem:[#allocation2 + $0x70] sm:$0xff]  ;;  %v3365_v45 = vpack.c.bf16 %v3343_v22, %v3342_v26 }
 0x14b   : > { %1308 = vst.msk [vmem:[#allocation2 + $0x90] sm:$0xff] %vm493_vm3, %v1272_v44  ;;  %v1660_v35 = vadd.f32 %v1624_v52, %v1505_v2  ;;  %v1273_v55 = vadd.f32 %v4818_v53, %v1237_v54  ;;  %v4848_v56 = vpop.f32.mrb[50].mxu1  ;;  %v1142_v58 = vpop.f32.mrb[51].mxu0  ;;  %v1628_v16 = vld [vmem:[#allocation2 + $0x60] sm:$0xff]  ;;  %v3366_v2 = vpack.c.bf16 %v3345_v36, %v3344_v33 }
 0x14c   : > { %1698 = vst.msk [vmem:[#allocation2 + $0x50] sm:$0xff] %vm493_vm3, %v1662_v37  ;;  %1306 = vst.msk [vmem:[#allocation2 + $0x80] sm:$0xff] %vm493_vm3, %v1270_v62  ;;  %v1663_v59 = vadd.f32 %v4848_v56, %v1627_v57  ;;  %v1271_v61 = vadd.f32 %v1235_v41, %v1142_v58  ;;  %v1508_v63 = vpop.f32.mrb[51].mxu1  ;;  %v1631_v21 = vld [vmem:[#allocation2 + $0x78] sm:$0xff]  ;;  %v1242_v44 = vld [vmem:[#allocation2 + $0xc0] sm:$0xff] }
 0x14d   : > { %1696 = vst.msk [vmem:[#allocation2 + $0x40] sm:$0xff] %vm493_vm3, %v1660_v35  ;;  %1309 = vst.msk [vmem:[#allocation2 + $0x98] sm:$0xff] %vm493_vm3, %v1273_v55  ;;  %v1661_v0 = vadd.f32 %v1625_v39, %v1508_v63  ;;  %5044 = vmatmul.mubr.msk.bf16.gmra.mrb[156].mxu0 %vm254_vm2, %v3361_v49  ;;  %v1629_v60 = vld [vmem:[#allocation2 + $0x68] sm:$0xff]  ;;  %v1245_v62 = vld [vmem:[#allocation2 + $0xd8] sm:$0xff] }
 0x14e   : > { %1699 = vst.msk [vmem:[#allocation2 + $0x58] sm:$0xff] %vm493_vm3, %v1663_v59  ;;  %1307 = vst.msk [vmem:[#allocation2 + $0x88] sm:$0xff] %vm493_vm3, %v1271_v61  ;;  %5047 = vmatprep.mubr.msk.bf16.mxu0 %vm254_vm2, %v3362_v5  ;;  %v1243_v55 = vld [vmem:[#allocation2 + $0xc8] sm:$0xff]  ;;  %v3346_v61 = vld [vmem:[%s5193_s26 + $0x116] sm:$0xff] }
 0x14f   : > { %1697 = vst.msk [vmem:[#allocation2 + $0x48] sm:$0xff] %vm493_vm3, %v1661_v0  ;;  %v3347_v63 = vld [vmem:[%s5193_s26 + $0x11e] sm:$0xff]  ;;  %v3348_v39 = vld [vmem:[%s5193_s26 + $0x126] sm:$0xff]  ;;  %v3349_v0 = vld [vmem:[%s5193_s26 + $0x12e] sm:$0xff] }
 0x150   : > { %v4821_v48 = vpop.f32.mrb[52].mxu0 }
 0x151   : > { %v1276_v9 = vadd.f32 %v4821_v48, %v1240_v8  ;;  %v4851_v12 = vpop.f32.mrb[52].mxu1  ;;  %v1155_v11 = vpop.f32.mrb[53].mxu0 }
 0x152   : > { %v1666_v20 = vadd.f32 %v4851_v12, %v1630_v10  ;;  %v1274_v42 = vadd.f32 %v1238_v13, %v1155_v11  ;;  %v1521_v15 = vpop.f32.mrb[53].mxu1  ;;  %v4822_v4 = vpop.f32.mrb[54].mxu0  ;;  %v1634_v23 = vld [vmem:[#allocation2 + $0x90] sm:$0xff]  ;;  %v3367_v12 = vpack.c.bf16 %v3347_v63, %v3346_v61 }
 0x153   : > { %1312 = vst.msk [vmem:[#allocation2 + $0xb0] sm:$0xff] %vm493_vm3, %v1276_v9  ;;  %v1664_v17 = vadd.f32 %v1628_v16, %v1521_v15  ;;  %v1277_v18 = vadd.f32 %v4822_v4, %v1241_v30  ;;  %v4852_v19 = vpop.f32.mrb[54].mxu1  ;;  %v1158_v50 = vpop.f32.mrb[55].mxu0  ;;  %v1632_v49 = vld [vmem:[#allocation2 + $0x80] sm:$0xff]  ;;  %v3368_v15 = vpack.c.bf16 %v3349_v0, %v3348_v39 }
 0x154   : > { %1702 = vst.msk [vmem:[#allocation2 + $0x70] sm:$0xff] %vm493_vm3, %v1666_v20  ;;  %1310 = vst.msk [vmem:[#allocation2 + $0xa0] sm:$0xff] %vm493_vm3, %v1274_v42  ;;  %v1667_v27 = vadd.f32 %v4852_v19, %v1631_v21  ;;  %v1275_v28 = vadd.f32 %v1239_v24, %v1158_v50  ;;  %v1524_v29 = vpop.f32.mrb[55].mxu1  ;;  %v1635_v5 = vld [vmem:[#allocation2 + $0x98] sm:$0xff]  ;;  %v1246_v9 = vld [vmem:[#allocation2 + $0xe0] sm:$0xff] }
 0x155   : > { %1700 = vst.msk [vmem:[#allocation2 + $0x60] sm:$0xff] %vm493_vm3, %v1664_v17  ;;  %1313 = vst.msk [vmem:[#allocation2 + $0xb8] sm:$0xff] %vm493_vm3, %v1277_v18  ;;  %v1665_v31 = vadd.f32 %v1629_v60, %v1524_v29  ;;  %5048 = vmatmul.mubr.msk.bf16.gmra.mrb[160].mxu0 %vm254_vm2, %v3363_v14  ;;  %v1633_v41 = vld [vmem:[#allocation2 + $0x88] sm:$0xff]  ;;  %v1249_v42 = vld [vmem:[#allocation2 + $0xf8] sm:$0xff] }
 0x156   : > { %1703 = vst.msk [vmem:[#allocation2 + $0x78] sm:$0xff] %vm493_vm3, %v1667_v27  ;;  %1311 = vst.msk [vmem:[#allocation2 + $0xa8] sm:$0xff] %vm493_vm3, %v1275_v28  ;;  %5051 = vmatprep.mubr.msk.bf16.mxu0 %vm254_vm2, %v3364_v51  ;;  %v1247_v18 = vld [vmem:[#allocation2 + $0xe8] sm:$0xff]  ;;  %v3350_v28 = vld [vmem:[%s5193_s26 + $0x136] sm:$0xff] }
 0x157   : > { %1701 = vst.msk [vmem:[#allocation2 + $0x68] sm:$0xff] %vm493_vm3, %v1665_v31  ;;  %v3351_v29 = vld [vmem:[%s5193_s26 + $0x13e] sm:$0xff]  ;;  %v1252_v31 = vld [vmem:[#allocation2 + $0x110] sm:$0xff] }
 0x158   : > { %v4825_v38 = vpop.f32.mrb[56].mxu0 }
 0x159   : > { %v1280_v34 = vadd.f32 %v4825_v38, %v1244_v40  ;;  %v4855_v32 = vpop.f32.mrb[56].mxu1  ;;  %v1171_v43 = vpop.f32.mrb[57].mxu0  ;;  %v1250_v38 = vld [vmem:[#allocation2 + $0x100] sm:$0xff]  ;;  %v3369_v40 = vpack.c.bf16 %v3351_v29, %v3350_v28 }
 0x15a   : > { %v1670_v46 = vadd.f32 %v4855_v32, %v1634_v23  ;;  %v1278_v25 = vadd.f32 %v1242_v44, %v1171_v43  ;;  %v1537_v47 = vpop.f32.mrb[57].mxu1  ;;  %v4826_v37 = vpop.f32.mrb[58].mxu0  ;;  %v1638_v48 = vld [vmem:[#allocation2 + $0xb0] sm:$0xff] }
 0x15b   : > { %1316 = vst.msk [vmem:[#allocation2 + $0xd0] sm:$0xff] %vm493_vm3, %v1280_v34  ;;  %v1668_v52 = vadd.f32 %v1632_v49, %v1537_v47  ;;  %v1281_v53 = vadd.f32 %v4826_v37, %v1245_v62  ;;  %v4856_v54 = vpop.f32.mrb[58].mxu1  ;;  %v1174_v35 = vpop.f32.mrb[59].mxu0  ;;  %v1636_v14 = vld [vmem:[#allocation2 + $0xa0] sm:$0xff]  ;;  %v1251_v62 = vld [vmem:[#allocation2 + $0x108] sm:$0xff] }
 0x15c   : > { %1706 = vst.msk [vmem:[#allocation2 + $0x90] sm:$0xff] %vm493_vm3, %v1670_v46  ;;  %1314 = vst.msk [vmem:[#allocation2 + $0xc0] sm:$0xff] %vm493_vm3, %v1278_v25  ;;  %v1671_v56 = vadd.f32 %v4856_v54, %v1635_v5  ;;  %v1279_v57 = vadd.f32 %v1243_v55, %v1174_v35  ;;  %v1540_v58 = vpop.f32.mrb[59].mxu1  ;;  %v1639_v51 = vld [vmem:[#allocation2 + $0xb8] sm:$0xff]  ;;  %v2016_v55 = vld [vmem:[#allocation2 + $0x10] sm:$0xff] }
 0x15d   : > { %1704 = vst.msk [vmem:[#allocation2 + $0x80] sm:$0xff] %vm493_vm3, %v1668_v52  ;;  %1317 = vst.msk [vmem:[#allocation2 + $0xd8] sm:$0xff] %vm493_vm3, %v1281_v53  ;;  %v1669_v59 = vadd.f32 %v1633_v41, %v1540_v58  ;;  %5052 = vmatmul.mubr.msk.bf16.gmra.mrb[164].mxu0 %vm254_vm2, %v3365_v45  ;;  %v1637_v24 = vld [vmem:[#allocation2 + $0xa8] sm:$0xff]  ;;  %v1253_v45 = vld [vmem:[#allocation2 + $0x118] sm:$0xff] }
 0x15e   : > { %1707 = vst.msk [vmem:[#allocation2 + $0x98] sm:$0xff] %vm493_vm3, %v1671_v56  ;;  %1315 = vst.msk [vmem:[#allocation2 + $0xc8] sm:$0xff] %vm493_vm3, %v1279_v57  ;;  %5055 = vmatprep.mubr.msk.bf16.mxu0 %vm254_vm2, %v3366_v2 }
 0x15f   : > { %1705 = vst.msk [vmem:[#allocation2 + $0x88] sm:$0xff] %vm493_vm3, %v1669_v59  ;;  %v2014_v59 = vld [vmem:[#allocation2] sm:$0xff] }
 0x160   : > { %v4829_v1 = vpop.f32.mrb[60].mxu0 }
 0x161   : > { %v1284_v6 = vadd.f32 %v4829_v1, %v1248_v3  ;;  %v4859_v7 = vpop.f32.mrb[60].mxu1  ;;  %v1187_v8 = vpop.f32.mrb[61].mxu0  ;;  %v2017_v3 = vld [vmem:[#allocation2 + $0x18] sm:$0xff] }
 0x162   : > { %v1674_v10 = vadd.f32 %v4859_v7, %v1638_v48  ;;  %v1282_v11 = vadd.f32 %v1246_v9, %v1187_v8  ;;  %v1553_v13 = vpop.f32.mrb[61].mxu1  ;;  %v4830_v20 = vpop.f32.mrb[62].mxu0  ;;  %v1642_v33 = vld [vmem:[#allocation2 + $0xd0] sm:$0xff] }
 0x163   : > { %1320 = vst.msk [vmem:[#allocation2 + $0xf0] sm:$0xff] %vm493_vm3, %v1284_v6  ;;  %v1672_v16 = vadd.f32 %v1636_v14, %v1553_v13  ;;  %v1285_v4 = vadd.f32 %v4830_v20, %v1249_v42  ;;  %v4860_v30 = vpop.f32.mrb[62].mxu1  ;;  %v1190_v17 = vpop.f32.mrb[63].mxu0  ;;  %v1640_v43 = vld [vmem:[#allocation2 + $0xc0] sm:$0xff] }
 0x164   : > { %1710 = vst.msk [vmem:[#allocation2 + $0xb0] sm:$0xff] %vm493_vm3, %v1674_v10  ;;  %1318 = vst.msk [vmem:[#allocation2 + $0xe0] sm:$0xff] %vm493_vm3, %v1282_v11  ;;  %v1675_v19 = vadd.f32 %v4860_v30, %v1639_v51  ;;  %v1283_v21 = vadd.f32 %v1247_v18, %v1190_v17  ;;  %v1556_v50 = vpop.f32.mrb[63].mxu1  ;;  %v1643_v49 = vld [vmem:[#allocation2 + $0xd8] sm:$0xff]  ;;  %v2018_v17 = vld [vmem:[#allocation2 + $0x20] sm:$0xff] }
 0x165   : > { %1708 = vst.msk [vmem:[#allocation2 + $0xa0] sm:$0xff] %vm493_vm3, %v1672_v16  ;;  %1321 = vst.msk [vmem:[#allocation2 + $0xf8] sm:$0xff] %vm493_vm3, %v1285_v4  ;;  %v1673_v27 = vadd.f32 %v1637_v24, %v1556_v50  ;;  %5056 = vmatmul.mubr.msk.bf16.gmra.mrb[168].mxu0 %vm254_vm2, %v3367_v12  ;;  %v1641_v54 = vld [vmem:[#allocation2 + $0xc8] sm:$0xff] }
 0x166   : > { %1711 = vst.msk [vmem:[#allocation2 + $0xb8] sm:$0xff] %vm493_vm3, %v1675_v19  ;;  %1319 = vst.msk [vmem:[#allocation2 + $0xe8] sm:$0xff] %vm493_vm3, %v1283_v21  ;;  %5059 = vmatprep.mubr.msk.bf16.mxu0 %vm254_vm2, %v3368_v15  ;;  %v2015_v12 = vld [vmem:[#allocation2 + $0x8] sm:$0xff]  ;;  %v2020_v15 = vld [vmem:[#allocation2 + $0x30] sm:$0xff] }
 0x167   : > { %1709 = vst.msk [vmem:[#allocation2 + $0xa8] sm:$0xff] %vm493_vm3, %v1673_v27  ;;  %v2021_v27 = vld [vmem:[#allocation2 + $0x38] sm:$0xff] }
 0x168   : > { %v4833_v60 = vpop.f32.mrb[64].mxu0 }
 0x169   : > { %v1288_v26 = vadd.f32 %v4833_v60, %v1252_v31  ;;  %v4863_v22 = vpop.f32.mrb[64].mxu1  ;;  %v1203_v36 = vpop.f32.mrb[65].mxu0 }
 0x16a   : > { %v1678_v34 = vadd.f32 %v4863_v22, %v1642_v33  ;;  %v1286_v32 = vadd.f32 %v1250_v38, %v1203_v36  ;;  %v1569_v23 = vpop.f32.mrb[65].mxu1  ;;  %v4834_v44 = vpop.f32.mrb[66].mxu0  ;;  %v1646_v57 = vld [vmem:[#allocation2 + $0xf0] sm:$0xff]  ;;  %v2019_v22 = vld [vmem:[#allocation2 + $0x28] sm:$0xff] }
 0x16b   : > { %1324 = vst.msk [vmem:[#allocation2 + $0x110] sm:$0xff] %vm493_vm3, %v1288_v26  ;;  %v1676_v46 = vadd.f32 %v1640_v43, %v1569_v23  ;;  %v1289_v25 = vadd.f32 %v4834_v44, %v1253_v45  ;;  %v4864_v47 = vpop.f32.mrb[66].mxu1  ;;  %v1206_v37 = vpop.f32.mrb[67].mxu0  ;;  %v1644_v39 = vld [vmem:[#allocation2 + $0xe0] sm:$0xff]  ;;  %v2024_v23 = vld [vmem:[#allocation2 + $0x50] sm:$0xff] }
 0x16c   : > { %1714 = vst.msk [vmem:[#allocation2 + $0xd0] sm:$0xff] %vm493_vm3, %v1678_v34  ;;  %1322 = vst.msk [vmem:[#allocation2 + $0x100] sm:$0xff] %vm493_vm3, %v1286_v32  ;;  %v1679_v2 = vadd.f32 %v4864_v47, %v1643_v49  ;;  %v1287_v52 = vadd.f32 %v1251_v62, %v1206_v37  ;;  %v1572_v53 = vpop.f32.mrb[67].mxu1  ;;  %v1647_v48 = vld [vmem:[#allocation2 + $0xf8] sm:$0xff] }
 0x16d   : > { %1712 = vst.msk [vmem:[#allocation2 + $0xc0] sm:$0xff] %vm493_vm3, %v1676_v46  ;;  %1325 = vst.msk [vmem:[#allocation2 + $0x118] sm:$0xff] %vm493_vm3, %v1289_v25  ;;  %v1677_v5 = vadd.f32 %v1641_v54, %v1572_v53  ;;  %5060 = vmatmul.mubr.msk.bf16.gmra.mrb[172].mxu0 %vm254_vm2, %v3369_v40  ;;  %v1645_v13 = vld [vmem:[#allocation2 + $0xe8] sm:$0xff]  ;;  %v2022_v25 = vld [vmem:[#allocation2 + $0x40] sm:$0xff] }
 0x16e   : > { %1715 = vst.msk [vmem:[#allocation2 + $0xd8] sm:$0xff] %vm493_vm3, %v1679_v2  ;;  %1323 = vst.msk [vmem:[#allocation2 + $0x108] sm:$0xff] %vm493_vm3, %v1287_v52  ;;  %v2025_v52 = vld [vmem:[#allocation2 + $0x58] sm:$0xff] }
 0x16f   : > { %1713 = vst.msk [vmem:[#allocation2 + $0xc8] sm:$0xff] %vm493_vm3, %v1677_v5 }
 0x170   : > { %v4877_v35 = vpop.f32.mrb[68].mxu0 }
 0x171   : > { %v4867_v56 = vpop.f32.mrb[68].mxu1  ;;  %v2052_v58 = vadd.f32 %v4877_v35, %v2016_v55  ;;  %v1871_v41 = vpop.f32.mrb[69].mxu0 }
 0x172   : > { %v1682_v61 = vadd.f32 %v4867_v56, %v1646_v57  ;;  %v1585_v63 = vpop.f32.mrb[69].mxu1  ;;  %v2050_v0 = vadd.f32 %v2014_v59, %v1871_v41  ;;  %v4878_v1 = vpop.f32.mrb[70].mxu0  ;;  %v1650_v4 = vld [vmem:[#allocation2 + $0x110] sm:$0xff]  ;;  %v2023_v56 = vld [vmem:[#allocation2 + $0x48] sm:$0xff] }
 0x173   : > { %2088 = vst.msk [vmem:[#allocation2 + $0x10] sm:$0xff] %vm493_vm3, %v2052_v58  ;;  %v1680_v6 = vadd.f32 %v1644_v39, %v1585_v63  ;;  %v4868_v7 = vpop.f32.mrb[70].mxu1  ;;  %v2053_v8 = vadd.f32 %v4878_v1, %v2017_v3  ;;  %v1874_v9 = vpop.f32.mrb[71].mxu0  ;;  %v1648_v21 = vld [vmem:[#allocation2 + $0x100] sm:$0xff]  ;;  %v2028_v39 = vld [vmem:[#allocation2 + $0x70] sm:$0xff] }
 0x174   : > { %1718 = vst.msk [vmem:[#allocation2 + $0xf0] sm:$0xff] %vm493_vm3, %v1682_v61  ;;  %2086 = vst.msk [vmem:[#allocation2] sm:$0xff] %vm493_vm3, %v2050_v0  ;;  %v1683_v10 = vadd.f32 %v4868_v7, %v1647_v48  ;;  %v1588_v11 = vpop.f32.mrb[71].mxu1  ;;  %v2051_v14 = vadd.f32 %v2015_v12, %v1874_v9  ;;  %v1651_v60 = vld [vmem:[#allocation2 + $0x118] sm:$0xff]  ;;  %v2026_v7 = vld [vmem:[#allocation2 + $0x60] sm:$0xff] }
 0x175   : > { %1716 = vst.msk [vmem:[#allocation2 + $0xe0] sm:$0xff] %vm493_vm3, %v1680_v6  ;;  %2089 = vst.msk [vmem:[#allocation2 + $0x18] sm:$0xff] %vm493_vm3, %v2053_v8  ;;  %v1681_v20 = vadd.f32 %v1645_v13, %v1588_v11  ;;  %v1649_v38 = vld [vmem:[#allocation2 + $0x108] sm:$0xff]  ;;  %v2029_v11 = vld [vmem:[#allocation2 + $0x78] sm:$0xff] }
 0x176   : > { %1719 = vst.msk [vmem:[#allocation2 + $0xf8] sm:$0xff] %vm493_vm3, %v1683_v10  ;;  %2087 = vst.msk [vmem:[#allocation2 + $0x8] sm:$0xff] %vm493_vm3, %v2051_v14 }
 0x177   : > { %1717 = vst.msk [vmem:[#allocation2 + $0xe8] sm:$0xff] %vm493_vm3, %v1681_v20 }
 0x178   : > { %v4881_v42 = vpop.f32.mrb[72].mxu0 }
 0x179   : > { %v4871_v16 = vpop.f32.mrb[72].mxu1  ;;  %v2056_v30 = vadd.f32 %v4881_v42, %v2020_v15  ;;  %v1887_v51 = vpop.f32.mrb[73].mxu0 }
 0x17a   : > { %v1686_v18 = vadd.f32 %v4871_v16, %v1650_v4  ;;  %v1601_v19 = vpop.f32.mrb[73].mxu1  ;;  %v2054_v50 = vadd.f32 %v2018_v17, %v1887_v51  ;;  %v4882_v24 = vpop.f32.mrb[74].mxu0  ;;  %v2414_v45 = vld [vmem:[#allocation2 + $0x10] sm:$0xff]  ;;  %v2027_v16 = vld [vmem:[#allocation2 + $0x68] sm:$0xff] }
 0x17b   : > { %2092 = vst.msk [vmem:[#allocation2 + $0x30] sm:$0xff] %vm493_vm3, %v2056_v30  ;;  %v1684_v28 = vadd.f32 %v1648_v21, %v1601_v19  ;;  %v4872_v29 = vpop.f32.mrb[74].mxu1  ;;  %v2057_v31 = vadd.f32 %v4882_v24, %v2021_v27  ;;  %v1890_v26 = vpop.f32.mrb[75].mxu0  ;;  %v2412_v62 = vld [vmem:[#allocation2] sm:$0xff]  ;;  %v2032_v21 = vld [vmem:[#allocation2 + $0x90] sm:$0xff] }
 0x17c   : > { %1722 = vst.msk [vmem:[#allocation2 + $0x110] sm:$0xff] %vm493_vm3, %v1686_v18  ;;  %2090 = vst.msk [vmem:[#allocation2 + $0x20] sm:$0xff] %vm493_vm3, %v2054_v50  ;;  %v1687_v33 = vadd.f32 %v4872_v29, %v1651_v60  ;;  %v1604_v36 = vpop.f32.mrb[75].mxu1  ;;  %v2055_v40 = vadd.f32 %v2019_v22, %v1890_v26  ;;  %v2415_v35 = vld [vmem:[#allocation2 + $0x18] sm:$0xff]  ;;  %v2030_v29 = vld [vmem:[#allocation2 + $0x80] sm:$0xff] }
 0x17d   : > { %1720 = vst.msk [vmem:[#allocation2 + $0x100] sm:$0xff] %vm493_vm3, %v1684_v28  ;;  %2093 = vst.msk [vmem:[#allocation2 + $0x38] sm:$0xff] %vm493_vm3, %v2057_v31  ;;  %v1685_v34 = vadd.f32 %v1649_v38, %v1604_v36  ;;  %v2413_v59 = vld [vmem:[#allocation2 + $0x8] sm:$0xff]  ;;  %v2033_v36 = vld [vmem:[#allocation2 + $0x98] sm:$0xff] }
 0x17e   : > { %1723 = vst.msk [vmem:[#allocation2 + $0x118] sm:$0xff] %vm493_vm3, %v1687_v33  ;;  %2091 = vst.msk [vmem:[#allocation2 + $0x28] sm:$0xff] %vm493_vm3, %v2055_v40 }
 0x17f   : > { %1721 = vst.msk [vmem:[#allocation2 + $0x108] sm:$0xff] %vm493_vm3, %v1685_v34 }
 0x180   : > { %v4885_v32 = vpop.f32.mrb[76].mxu0 }
 0x181   : > { %v2060_v43 = vadd.f32 %v4885_v32, %v2024_v23  ;;  %v4915_v44 = vpop.f32.mrb[76].mxu1  ;;  %v1903_v46 = vpop.f32.mrb[77].mxu0 }
 0x182   : > { %v2450_v47 = vadd.f32 %v4915_v44, %v2414_v45  ;;  %v2058_v49 = vadd.f32 %v2022_v25, %v1903_v46  ;;  %v2269_v37 = vpop.f32.mrb[77].mxu1  ;;  %v4886_v2 = vpop.f32.mrb[78].mxu0  ;;  %v2418_v3 = vld [vmem:[#allocation2 + $0x30] sm:$0xff] }
 0x183   : > { %2096 = vst.msk [vmem:[#allocation2 + $0x50] sm:$0xff] %vm493_vm3, %v2060_v43  ;;  %v2448_v53 = vadd.f32 %v2412_v62, %v2269_v37  ;;  %v2061_v54 = vadd.f32 %v4886_v2, %v2025_v52  ;;  %v4916_v5 = vpop.f32.mrb[78].mxu1  ;;  %v1906_v55 = vpop.f32.mrb[79].mxu0  ;;  %v2416_v12 = vld [vmem:[#allocation2 + $0x20] sm:$0xff]  ;;  %v2031_v43 = vld [vmem:[#allocation2 + $0x88] sm:$0xff]  ;;  %v2036_v37 = vld [vmem:[#allocation2 + $0xb0] sm:$0xff] }
 0x184   : > { %2486 = vst.msk [vmem:[#allocation2 + $0x10] sm:$0xff] %vm493_vm3, %v2450_v47  ;;  %2094 = vst.msk [vmem:[#allocation2 + $0x40] sm:$0xff] %vm493_vm3, %v2058_v49  ;;  %v2451_v57 = vadd.f32 %v4916_v5, %v2415_v35  ;;  %v2059_v58 = vadd.f32 %v2023_v56, %v1906_v55  ;;  %v2272_v41 = vpop.f32.mrb[79].mxu1  ;;  %v2419_v42 = vld [vmem:[#allocation2 + $0x38] sm:$0xff] }
 0x185   : > { %2484 = vst.msk [vmem:[#allocation2] sm:$0xff] %vm493_vm3, %v2448_v53  ;;  %2097 = vst.msk [vmem:[#allocation2 + $0x58] sm:$0xff] %vm493_vm3, %v2061_v54  ;;  %v2449_v61 = vadd.f32 %v2413_v59, %v2272_v41  ;;  %v2417_v17 = vld [vmem:[#allocation2 + $0x28] sm:$0xff]  ;;  %v2034_v54 = vld [vmem:[#allocation2 + $0xa0] sm:$0xff] }
 0x186   : > { %2487 = vst.msk [vmem:[#allocation2 + $0x18] sm:$0xff] %vm493_vm3, %v2451_v57  ;;  %2095 = vst.msk [vmem:[#allocation2 + $0x48] sm:$0xff] %vm493_vm3, %v2059_v58  ;;  %v2037_v58 = vld [vmem:[#allocation2 + $0xb8] sm:$0xff] }
 0x187   : > { %2485 = vst.msk [vmem:[#allocation2 + $0x8] sm:$0xff] %vm493_vm3, %v2449_v61 }
 0x188   : > { %v4889_v63 = vpop.f32.mrb[80].mxu0 }
 0x189   : > { %v2064_v0 = vadd.f32 %v4889_v63, %v2028_v39  ;;  %v4919_v1 = vpop.f32.mrb[80].mxu1  ;;  %v1919_v6 = vpop.f32.mrb[81].mxu0 }
 0x18a   : > { %v2454_v48 = vadd.f32 %v4919_v1, %v2418_v3  ;;  %v2062_v8 = vadd.f32 %v2026_v7, %v1919_v6  ;;  %v2285_v9 = vpop.f32.mrb[81].mxu1  ;;  %v4890_v10 = vpop.f32.mrb[82].mxu0  ;;  %v2422_v27 = vld [vmem:[#allocation2 + $0x50] sm:$0xff] }
 0x18b   : > { %2100 = vst.msk [vmem:[#allocation2 + $0x70] sm:$0xff] %vm493_vm3, %v2064_v0  ;;  %v2452_v13 = vadd.f32 %v2416_v12, %v2285_v9  ;;  %v2065_v14 = vadd.f32 %v4890_v10, %v2029_v11  ;;  %v4920_v20 = vpop.f32.mrb[82].mxu1  ;;  %v1922_v15 = vpop.f32.mrb[83].mxu0  ;;  %v2420_v22 = vld [vmem:[#allocation2 + $0x40] sm:$0xff]  ;;  %v2035_v0 = vld [vmem:[#allocation2 + $0xa8] sm:$0xff]  ;;  %v2040_v9 = vld [vmem:[#allocation2 + $0xd0] sm:$0xff] }
 0x18c   : > { %2490 = vst.msk [vmem:[#allocation2 + $0x30] sm:$0xff] %vm493_vm3, %v2454_v48  ;;  %2098 = vst.msk [vmem:[#allocation2 + $0x60] sm:$0xff] %vm493_vm3, %v2062_v8  ;;  %v2455_v4 = vadd.f32 %v4920_v20, %v2419_v42  ;;  %v2063_v30 = vadd.f32 %v2027_v16, %v1922_v15  ;;  %v2288_v51 = vpop.f32.mrb[83].mxu1  ;;  %v2423_v32 = vld [vmem:[#allocation2 + $0x58] sm:$0xff] }
 0x18d   : > { %2488 = vst.msk [vmem:[#allocation2 + $0x20] sm:$0xff] %vm493_vm3, %v2452_v13  ;;  %2101 = vst.msk [vmem:[#allocation2 + $0x78] sm:$0xff] %vm493_vm3, %v2065_v14  ;;  %v2453_v18 = vadd.f32 %v2417_v17, %v2288_v51  ;;  %v2421_v25 = vld [vmem:[#allocation2 + $0x48] sm:$0xff]  ;;  %v2038_v14 = vld [vmem:[#allocation2 + $0xc0] sm:$0xff] }
 0x18e   : > { %2491 = vst.msk [vmem:[#allocation2 + $0x38] sm:$0xff] %vm493_vm3, %v2455_v4  ;;  %2099 = vst.msk [vmem:[#allocation2 + $0x68] sm:$0xff] %vm493_vm3, %v2063_v30  ;;  %v2041_v30 = vld [vmem:[#allocation2 + $0xd8] sm:$0xff] }
 0x18f   : > { %2489 = vst.msk [vmem:[#allocation2 + $0x28] sm:$0xff] %vm493_vm3, %v2453_v18 }
 0x190   : > { %v4893_v19 = vpop.f32.mrb[84].mxu0 }
 0x191   : > { %v2068_v50 = vadd.f32 %v4893_v19, %v2032_v21  ;;  %v4923_v24 = vpop.f32.mrb[84].mxu1  ;;  %v1935_v28 = vpop.f32.mrb[85].mxu0 }
 0x192   : > { %v2458_v60 = vadd.f32 %v4923_v24, %v2422_v27  ;;  %v2066_v31 = vadd.f32 %v2030_v29, %v1935_v28  ;;  %v2301_v26 = vpop.f32.mrb[85].mxu1  ;;  %v4894_v33 = vpop.f32.mrb[86].mxu0  ;;  %v2426_v52 = vld [vmem:[#allocation2 + $0x70] sm:$0xff] }
 0x193   : > { %2104 = vst.msk [vmem:[#allocation2 + $0x90] sm:$0xff] %vm493_vm3, %v2068_v50  ;;  %v2456_v38 = vadd.f32 %v2420_v22, %v2301_v26  ;;  %v2069_v40 = vadd.f32 %v4894_v33, %v2033_v36  ;;  %v4924_v34 = vpop.f32.mrb[86].mxu1  ;;  %v1938_v23 = vpop.f32.mrb[87].mxu0  ;;  %v2424_v56 = vld [vmem:[#allocation2 + $0x60] sm:$0xff]  ;;  %v2039_v50 = vld [vmem:[#allocation2 + $0xc8] sm:$0xff]  ;;  %v2044_v26 = vld [vmem:[#allocation2 + $0xf0] sm:$0xff] }
 0x194   : > { %2494 = vst.msk [vmem:[#allocation2 + $0x50] sm:$0xff] %vm493_vm3, %v2458_v60  ;;  %2102 = vst.msk [vmem:[#allocation2 + $0x80] sm:$0xff] %vm493_vm3, %v2066_v31  ;;  %v2459_v44 = vadd.f32 %v4924_v34, %v2423_v32  ;;  %v2067_v45 = vadd.f32 %v2031_v43, %v1938_v23  ;;  %v2304_v46 = vpop.f32.mrb[87].mxu1  ;;  %v2427_v63 = vld [vmem:[#allocation2 + $0x78] sm:$0xff] }
 0x195   : > { %2492 = vst.msk [vmem:[#allocation2 + $0x40] sm:$0xff] %vm493_vm3, %v2456_v38  ;;  %2105 = vst.msk [vmem:[#allocation2 + $0x98] sm:$0xff] %vm493_vm3, %v2069_v40  ;;  %v2457_v47 = vadd.f32 %v2421_v25, %v2304_v46  ;;  %v2425_v7 = vld [vmem:[#allocation2 + $0x68] sm:$0xff]  ;;  %v2042_v40 = vld [vmem:[#allocation2 + $0xe0] sm:$0xff] }
 0x196   : > { %2495 = vst.msk [vmem:[#allocation2 + $0x58] sm:$0xff] %vm493_vm3, %v2459_v44  ;;  %2103 = vst.msk [vmem:[#allocation2 + $0x88] sm:$0xff] %vm493_vm3, %v2067_v45  ;;  %v2045_v45 = vld [vmem:[#allocation2 + $0xf8] sm:$0xff] }
 0x197   : > { %2493 = vst.msk [vmem:[#allocation2 + $0x48] sm:$0xff] %vm493_vm3, %v2457_v47 }
 0x198   : > { %v4897_v49 = vpop.f32.mrb[88].mxu0 }
 0x199   : > { %v2072_v62 = vadd.f32 %v4897_v49, %v2036_v37  ;;  %v4927_v2 = vpop.f32.mrb[88].mxu1  ;;  %v1951_v53 = vpop.f32.mrb[89].mxu0 }
 0x19a   : > { %v2462_v5 = vadd.f32 %v4927_v2, %v2426_v52  ;;  %v2070_v35 = vadd.f32 %v2034_v54, %v1951_v53  ;;  %v2317_v55 = vpop.f32.mrb[89].mxu1  ;;  %v4898_v57 = vpop.f32.mrb[90].mxu0  ;;  %v2430_v11 = vld [vmem:[#allocation2 + $0x90] sm:$0xff] }
 0x19b   : > { %2108 = vst.msk [vmem:[#allocation2 + $0xb0] sm:$0xff] %vm493_vm3, %v2072_v62  ;;  %v2460_v41 = vadd.f32 %v2424_v56, %v2317_v55  ;;  %v2073_v59 = vadd.f32 %v4898_v57, %v2037_v58  ;;  %v4928_v61 = vpop.f32.mrb[90].mxu1  ;;  %v1954_v39 = vpop.f32.mrb[91].mxu0  ;;  %v2428_v16 = vld [vmem:[#allocation2 + $0x80] sm:$0xff]  ;;  %v2043_v62 = vld [vmem:[#allocation2 + $0xe8] sm:$0xff]  ;;  %v2048_v55 = vld [vmem:[#allocation2 + $0x110] sm:$0xff] }
 0x19c   : > { %2498 = vst.msk [vmem:[#allocation2 + $0x70] sm:$0xff] %vm493_vm3, %v2462_v5  ;;  %2106 = vst.msk [vmem:[#allocation2 + $0xa0] sm:$0xff] %vm493_vm3, %v2070_v35  ;;  %v2463_v1 = vadd.f32 %v4928_v61, %v2427_v63  ;;  %v2071_v3 = vadd.f32 %v2035_v0, %v1954_v39  ;;  %v2320_v6 = vpop.f32.mrb[91].mxu1  ;;  %v2431_v19 = vld [vmem:[#allocation2 + $0x98] sm:$0xff] }
 0x19d   : > { %2496 = vst.msk [vmem:[#allocation2 + $0x60] sm:$0xff] %vm493_vm3, %v2460_v41  ;;  %2109 = vst.msk [vmem:[#allocation2 + $0xb8] sm:$0xff] %vm493_vm3, %v2073_v59  ;;  %v2461_v48 = vadd.f32 %v2425_v7, %v2320_v6  ;;  %v2429_v29 = vld [vmem:[#allocation2 + $0x88] sm:$0xff]  ;;  %v2046_v59 = vld [vmem:[#allocation2 + $0x100] sm:$0xff] }
 0x19e   : > { %2499 = vst.msk [vmem:[#allocation2 + $0x78] sm:$0xff] %vm493_vm3, %v2463_v1  ;;  %2107 = vst.msk [vmem:[#allocation2 + $0xa8] sm:$0xff] %vm493_vm3, %v2071_v3  ;;  %v2049_v3 = vld [vmem:[#allocation2 + $0x118] sm:$0xff] }
 0x19f   : > { %2497 = vst.msk [vmem:[#allocation2 + $0x68] sm:$0xff] %vm493_vm3, %v2461_v48 }
 0x1a0   : > { %v4901_v8 = vpop.f32.mrb[92].mxu0 }
 0x1a1   : > { %v2076_v12 = vadd.f32 %v4901_v8, %v2040_v9  ;;  %v4931_v10 = vpop.f32.mrb[92].mxu1  ;;  %v1967_v13 = vpop.f32.mrb[93].mxu0 }
 0x1a2   : > { %v2466_v20 = vadd.f32 %v4931_v10, %v2430_v11  ;;  %v2074_v42 = vadd.f32 %v2038_v14, %v1967_v13  ;;  %v2333_v15 = vpop.f32.mrb[93].mxu1  ;;  %v4902_v4 = vpop.f32.mrb[94].mxu0  ;;  %v2434_v36 = vld [vmem:[#allocation2 + $0xb0] sm:$0xff] }
 0x1a3   : > { %2112 = vst.msk [vmem:[#allocation2 + $0xd0] sm:$0xff] %vm493_vm3, %v2076_v12  ;;  %v2464_v51 = vadd.f32 %v2428_v16, %v2333_v15  ;;  %v2077_v17 = vadd.f32 %v4902_v4, %v2041_v30  ;;  %v4932_v18 = vpop.f32.mrb[94].mxu1  ;;  %v1970_v21 = vpop.f32.mrb[95].mxu0  ;;  %v2432_v43 = vld [vmem:[#allocation2 + $0xa0] sm:$0xff]  ;;  %v2047_v12 = vld [vmem:[#allocation2 + $0x108] sm:$0xff]  ;;  %v2812_v15 = vld [vmem:[#allocation2 + $0x10] sm:$0xff] }
 0x1a4   : > { %2502 = vst.msk [vmem:[#allocation2 + $0x90] sm:$0xff] %vm493_vm3, %v2466_v20  ;;  %2110 = vst.msk [vmem:[#allocation2 + $0xc0] sm:$0xff] %vm493_vm3, %v2074_v42  ;;  %v2467_v24 = vadd.f32 %v4932_v18, %v2431_v19  ;;  %v2075_v27 = vadd.f32 %v2039_v50, %v1970_v21  ;;  %v2336_v28 = vpop.f32.mrb[95].mxu1  ;;  %v2435_v49 = vld [vmem:[#allocation2 + $0xb8] sm:$0xff] }
 0x1a5   : > { %2500 = vst.msk [vmem:[#allocation2 + $0x80] sm:$0xff] %vm493_vm3, %v2464_v51  ;;  %2113 = vst.msk [vmem:[#allocation2 + $0xd8] sm:$0xff] %vm493_vm3, %v2077_v17  ;;  %v2465_v60 = vadd.f32 %v2429_v29, %v2336_v28  ;;  %v2433_v54 = vld [vmem:[#allocation2 + $0xa8] sm:$0xff]  ;;  %v2810_v17 = vld [vmem:[#allocation2] sm:$0xff] }
 0x1a6   : > { %2503 = vst.msk [vmem:[#allocation2 + $0x98] sm:$0xff] %vm493_vm3, %v2467_v24  ;;  %2111 = vst.msk [vmem:[#allocation2 + $0xc8] sm:$0xff] %vm493_vm3, %v2075_v27  ;;  %v2813_v27 = vld [vmem:[#allocation2 + $0x18] sm:$0xff] }
 0x1a7   : > { %2501 = vst.msk [vmem:[#allocation2 + $0x88] sm:$0xff] %vm493_vm3, %v2465_v60 }
 0x1a8   : > { %v4905_v31 = vpop.f32.mrb[96].mxu0 }
 0x1a9   : > { %v2080_v22 = vadd.f32 %v4905_v31, %v2044_v26  ;;  %v4935_v33 = vpop.f32.mrb[96].mxu1  ;;  %v1983_v38 = vpop.f32.mrb[97].mxu0 }
 0x1aa   : > { %v2470_v34 = vadd.f32 %v4935_v33, %v2434_v36  ;;  %v2078_v32 = vadd.f32 %v2042_v40, %v1983_v38  ;;  %v2349_v23 = vpop.f32.mrb[97].mxu1  ;;  %v4906_v44 = vpop.f32.mrb[98].mxu0  ;;  %v2438_v58 = vld [vmem:[#allocation2 + $0xd0] sm:$0xff] }
 0x1ab   : > { %2116 = vst.msk [vmem:[#allocation2 + $0xf0] sm:$0xff] %vm493_vm3, %v2080_v22  ;;  %v2468_v46 = vadd.f32 %v2432_v43, %v2349_v23  ;;  %v2081_v25 = vadd.f32 %v4906_v44, %v2045_v45  ;;  %v4936_v47 = vpop.f32.mrb[98].mxu1  ;;  %v1986_v37 = vpop.f32.mrb[99].mxu0  ;;  %v2436_v0 = vld [vmem:[#allocation2 + $0xc0] sm:$0xff]  ;;  %v2811_v22 = vld [vmem:[#allocation2 + $0x8] sm:$0xff]  ;;  %v2816_v23 = vld [vmem:[#allocation2 + $0x30] sm:$0xff] }
 0x1ac   : > { %2506 = vst.msk [vmem:[#allocation2 + $0xb0] sm:$0xff] %vm493_vm3, %v2470_v34  ;;  %2114 = vst.msk [vmem:[#allocation2 + $0xe0] sm:$0xff] %vm493_vm3, %v2078_v32  ;;  %v2471_v2 = vadd.f32 %v4936_v47, %v2435_v49  ;;  %v2079_v52 = vadd.f32 %v2043_v62, %v1986_v37  ;;  %v2352_v53 = vpop.f32.mrb[99].mxu1  ;;  %v2439_v8 = vld [vmem:[#allocation2 + $0xd8] sm:$0xff] }
 0x1ad   : > { %2504 = vst.msk [vmem:[#allocation2 + $0xa0] sm:$0xff] %vm493_vm3, %v2468_v46  ;;  %2117 = vst.msk [vmem:[#allocation2 + $0xf8] sm:$0xff] %vm493_vm3, %v2081_v25  ;;  %v2469_v5 = vadd.f32 %v2433_v54, %v2352_v53  ;;  %v2437_v14 = vld [vmem:[#allocation2 + $0xc8] sm:$0xff]  ;;  %v2814_v25 = vld [vmem:[#allocation2 + $0x20] sm:$0xff] }
 0x1ae   : > { %2507 = vst.msk [vmem:[#allocation2 + $0xb8] sm:$0xff] %vm493_vm3, %v2471_v2  ;;  %2115 = vst.msk [vmem:[#allocation2 + $0xe8] sm:$0xff] %vm493_vm3, %v2079_v52  ;;  %v2817_v52 = vld [vmem:[#allocation2 + $0x38] sm:$0xff] }
 0x1af   : > { %2505 = vst.msk [vmem:[#allocation2 + $0xa8] sm:$0xff] %vm493_vm3, %v2469_v5 }
 0x1b0   : > { %v4909_v35 = vpop.f32.mrb[100].mxu0 }
 0x1b1   : > { %v2084_v56 = vadd.f32 %v4909_v35, %v2048_v55  ;;  %v4939_v57 = vpop.f32.mrb[100].mxu1  ;;  %v1999_v41 = vpop.f32.mrb[101].mxu0 }
 0x1b2   : > { %v2474_v61 = vadd.f32 %v4939_v57, %v2438_v58  ;;  %v2082_v63 = vadd.f32 %v2046_v59, %v1999_v41  ;;  %v2365_v39 = vpop.f32.mrb[101].mxu1  ;;  %v4910_v1 = vpop.f32.mrb[102].mxu0  ;;  %v2442_v4 = vld [vmem:[#allocation2 + $0xf0] sm:$0xff] }
 0x1b3   : > { %2120 = vst.msk [vmem:[#allocation2 + $0x110] sm:$0xff] %vm493_vm3, %v2084_v56  ;;  %v2472_v6 = vadd.f32 %v2436_v0, %v2365_v39  ;;  %v2085_v7 = vadd.f32 %v4910_v1, %v2049_v3  ;;  %v4940_v48 = vpop.f32.mrb[102].mxu1  ;;  %v2002_v9 = vpop.f32.mrb[103].mxu0  ;;  %v2440_v21 = vld [vmem:[#allocation2 + $0xe0] sm:$0xff]  ;;  %v2815_v56 = vld [vmem:[#allocation2 + $0x28] sm:$0xff]  ;;  %v2820_v39 = vld [vmem:[#allocation2 + $0x50] sm:$0xff] }
 0x1b4   : > { %2510 = vst.msk [vmem:[#allocation2 + $0xd0] sm:$0xff] %vm493_vm3, %v2474_v61  ;;  %2118 = vst.msk [vmem:[#allocation2 + $0x100] sm:$0xff] %vm493_vm3, %v2082_v63  ;;  %v2475_v10 = vadd.f32 %v4940_v48, %v2439_v8  ;;  %v2083_v11 = vadd.f32 %v2047_v12, %v2002_v9  ;;  %v2368_v13 = vpop.f32.mrb[103].mxu1  ;;  %v2443_v60 = vld [vmem:[#allocation2 + $0xf8] sm:$0xff] }
 0x1b5   : > { %2508 = vst.msk [vmem:[#allocation2 + $0xc0] sm:$0xff] %vm493_vm3, %v2472_v6  ;;  %2121 = vst.msk [vmem:[#allocation2 + $0x118] sm:$0xff] %vm493_vm3, %v2085_v7  ;;  %v2473_v20 = vadd.f32 %v2437_v14, %v2368_v13  ;;  %v2441_v38 = vld [vmem:[#allocation2 + $0xe8] sm:$0xff]  ;;  %v2818_v7 = vld [vmem:[#allocation2 + $0x40] sm:$0xff] }
 0x1b6   : > { %2511 = vst.msk [vmem:[#allocation2 + $0xd8] sm:$0xff] %vm493_vm3, %v2475_v10  ;;  %2119 = vst.msk [vmem:[#allocation2 + $0x108] sm:$0xff] %vm493_vm3, %v2083_v11  ;;  %v2821_v11 = vld [vmem:[#allocation2 + $0x58] sm:$0xff] }
 0x1b7   : > { %2509 = vst.msk [vmem:[#allocation2 + $0xc8] sm:$0xff] %vm493_vm3, %v2473_v20 }
 0x1b8   : > { %v4953_v42 = vpop.f32.mrb[104].mxu0 }
 0x1b9   : > { %v4943_v16 = vpop.f32.mrb[104].mxu1  ;;  %v2848_v30 = vadd.f32 %v4953_v42, %v2812_v15  ;;  %v2667_v51 = vpop.f32.mrb[105].mxu0 }
 0x1ba   : > { %v2478_v18 = vadd.f32 %v4943_v16, %v2442_v4  ;;  %v2381_v19 = vpop.f32.mrb[105].mxu1  ;;  %v2846_v50 = vadd.f32 %v2810_v17, %v2667_v51  ;;  %v4954_v24 = vpop.f32.mrb[106].mxu0  ;;  %v2446_v44 = vld [vmem:[#allocation2 + $0x110] sm:$0xff]  ;;  %v2819_v16 = vld [vmem:[#allocation2 + $0x48] sm:$0xff] }
 0x1bb   : > { %2884 = vst.msk [vmem:[#allocation2 + $0x10] sm:$0xff] %vm493_vm3, %v2848_v30  ;;  %v2476_v28 = vadd.f32 %v2440_v21, %v2381_v19  ;;  %v4944_v29 = vpop.f32.mrb[106].mxu1  ;;  %v2849_v31 = vadd.f32 %v4954_v24, %v2813_v27  ;;  %v2670_v26 = vpop.f32.mrb[107].mxu0  ;;  %v2444_v37 = vld [vmem:[#allocation2 + $0x100] sm:$0xff]  ;;  %v2824_v21 = vld [vmem:[#allocation2 + $0x70] sm:$0xff] }
 0x1bc   : > { %2514 = vst.msk [vmem:[#allocation2 + $0xf0] sm:$0xff] %vm493_vm3, %v2478_v18  ;;  %2882 = vst.msk [vmem:[#allocation2] sm:$0xff] %vm493_vm3, %v2846_v50  ;;  %v2479_v33 = vadd.f32 %v4944_v29, %v2443_v60  ;;  %v2384_v36 = vpop.f32.mrb[107].mxu1  ;;  %v2847_v40 = vadd.f32 %v2811_v22, %v2670_v26  ;;  %v2447_v5 = vld [vmem:[#allocation2 + $0x118] sm:$0xff]  ;;  %v2822_v29 = vld [vmem:[#allocation2 + $0x60] sm:$0xff] }
 0x1bd   : > { %2512 = vst.msk [vmem:[#allocation2 + $0xe0] sm:$0xff] %vm493_vm3, %v2476_v28  ;;  %2885 = vst.msk [vmem:[#allocation2 + $0x18] sm:$0xff] %vm493_vm3, %v2849_v31  ;;  %v2477_v34 = vadd.f32 %v2441_v38, %v2384_v36  ;;  %v2445_v41 = vld [vmem:[#allocation2 + $0x108] sm:$0xff]  ;;  %v2825_v36 = vld [vmem:[#allocation2 + $0x78] sm:$0xff] }
 0x1be   : > { %2515 = vst.msk [vmem:[#allocation2 + $0xf8] sm:$0xff] %vm493_vm3, %v2479_v33  ;;  %2883 = vst.msk [vmem:[#allocation2 + $0x8] sm:$0xff] %vm493_vm3, %v2847_v40 }
 0x1bf   : > { %2513 = vst.msk [vmem:[#allocation2 + $0xe8] sm:$0xff] %vm493_vm3, %v2477_v34 }
 0x1c0   : > { %v4957_v32 = vpop.f32.mrb[108].mxu0 }
 0x1c1   : > { %v4947_v43 = vpop.f32.mrb[108].mxu1  ;;  %v2852_v45 = vadd.f32 %v4957_v32, %v2816_v23  ;;  %v2683_v46 = vpop.f32.mrb[109].mxu0 }
 0x1c2   : > { %v2482_v47 = vadd.f32 %v4947_v43, %v2446_v44  ;;  %v2397_v49 = vpop.f32.mrb[109].mxu1  ;;  %v2850_v62 = vadd.f32 %v2814_v25, %v2683_v46  ;;  %v4958_v2 = vpop.f32.mrb[110].mxu0  ;;  %v3210_v3 = vld [vmem:[#allocation2 + $0x10] sm:$0xff]  ;;  %v2823_v43 = vld [vmem:[#allocation2 + $0x68] sm:$0xff] }
 0x1c3   : > { %2888 = vst.msk [vmem:[#allocation2 + $0x30] sm:$0xff] %vm493_vm3, %v2852_v45  ;;  %v2480_v53 = vadd.f32 %v2444_v37, %v2397_v49  ;;  %v4948_v54 = vpop.f32.mrb[110].mxu1  ;;  %v2853_v35 = vadd.f32 %v4958_v2, %v2817_v52  ;;  %v2686_v55 = vpop.f32.mrb[111].mxu0  ;;  %v3208_v12 = vld [vmem:[#allocation2] sm:$0xff]  ;;  %v2828_v37 = vld [vmem:[#allocation2 + $0x90] sm:$0xff] }
 0x1c4   : > { %2518 = vst.msk [vmem:[#allocation2 + $0x110] sm:$0xff] %vm493_vm3, %v2482_v47  ;;  %2886 = vst.msk [vmem:[#allocation2 + $0x20] sm:$0xff] %vm493_vm3, %v2850_v62  ;;  %v2483_v57 = vadd.f32 %v4948_v54, %v2447_v5  ;;  %v2400_v58 = vpop.f32.mrb[111].mxu1  ;;  %v2851_v59 = vadd.f32 %v2815_v56, %v2686_v55  ;;  %v3211_v42 = vld [vmem:[#allocation2 + $0x18] sm:$0xff]  ;;  %v3953_v62 = vld [vmem:[%s6304_s3 + $0x8] sm:$0xff] }
 0x1c5   : > { %2516 = vst.msk [vmem:[#allocation2 + $0x100] sm:$0xff] %vm493_vm3, %v2480_v53  ;;  %2889 = vst.msk [vmem:[#allocation2 + $0x38] sm:$0xff] %vm493_vm3, %v2853_v35  ;;  %v2481_v61 = vadd.f32 %v2445_v41, %v2400_v58  ;;  %v3209_v17 = vld [vmem:[#allocation2 + $0x8] sm:$0xff]  ;;  %v2826_v5 = vld [vmem:[#allocation2 + $0x80] sm:$0xff]  ;;  %4076 = vmatprep.mubr.f32.mxu1 %v3953_v62 }
 0x1c6   : > { %2519 = vst.msk [vmem:[#allocation2 + $0x118] sm:$0xff] %vm493_vm3, %v2483_v57  ;;  %2887 = vst.msk [vmem:[#allocation2 + $0x28] sm:$0xff] %vm493_vm3, %v2851_v59  ;;  %v2829_v41 = vld [vmem:[#allocation2 + $0x98] sm:$0xff] }
 0x1c7   : > { %2517 = vst.msk [vmem:[#allocation2 + $0x108] sm:$0xff] %vm493_vm3, %v2481_v61 }
 0x1c8   : > { %v4961_v63 = vpop.f32.mrb[112].mxu0 }
 0x1c9   : > { %v2856_v0 = vadd.f32 %v4961_v63, %v2820_v39  ;;  %v4991_v1 = vpop.f32.mrb[112].mxu1  ;;  %v2699_v6 = vpop.f32.mrb[113].mxu0 }
 0x1ca   : > { %v3246_v48 = vadd.f32 %v4991_v1, %v3210_v3  ;;  %v2854_v8 = vadd.f32 %v2818_v7, %v2699_v6  ;;  %v3065_v9 = vpop.f32.mrb[113].mxu1  ;;  %v4962_v10 = vpop.f32.mrb[114].mxu0  ;;  %v3214_v27 = vld [vmem:[#allocation2 + $0x30] sm:$0xff]  ;;  %v2827_v1 = vld [vmem:[#allocation2 + $0x88] sm:$0xff] }
 0x1cb   : > { %2892 = vst.msk [vmem:[#allocation2 + $0x50] sm:$0xff] %vm493_vm3, %v2856_v0  ;;  %v3244_v13 = vadd.f32 %v3208_v12, %v3065_v9  ;;  %v2857_v14 = vadd.f32 %v4962_v10, %v2821_v11  ;;  %v4992_v20 = vpop.f32.mrb[114].mxu1  ;;  %v2702_v15 = vpop.f32.mrb[115].mxu0  ;;  %v3212_v22 = vld [vmem:[#allocation2 + $0x20] sm:$0xff]  ;;  %v2832_v12 = vld [vmem:[#allocation2 + $0xb0] sm:$0xff] }
 0x1cc   : > { %3282 = vst.msk [vmem:[#allocation2 + $0x10] sm:$0xff] %vm493_vm3, %v3246_v48  ;;  %2890 = vst.msk [vmem:[#allocation2 + $0x40] sm:$0xff] %vm493_vm3, %v2854_v8  ;;  %v3247_v4 = vadd.f32 %v4992_v20, %v3211_v42  ;;  %v2855_v30 = vadd.f32 %v2819_v16, %v2702_v15  ;;  %v3068_v51 = vpop.f32.mrb[115].mxu1  ;;  %v3215_v32 = vld [vmem:[#allocation2 + $0x38] sm:$0xff]  ;;  %v2830_v20 = vld [vmem:[#allocation2 + $0xa0] sm:$0xff] }
 0x1cd   : > { %3280 = vst.msk [vmem:[#allocation2] sm:$0xff] %vm493_vm3, %v3244_v13  ;;  %2893 = vst.msk [vmem:[#allocation2 + $0x58] sm:$0xff] %vm493_vm3, %v2857_v14  ;;  %v3245_v18 = vadd.f32 %v3209_v17, %v3068_v51  ;;  %v3213_v25 = vld [vmem:[#allocation2 + $0x28] sm:$0xff]  ;;  %v2833_v51 = vld [vmem:[#allocation2 + $0xb8] sm:$0xff] }
 0x1ce   : > { %3283 = vst.msk [vmem:[#allocation2 + $0x18] sm:$0xff] %vm493_vm3, %v3247_v4  ;;  %2891 = vst.msk [vmem:[#allocation2 + $0x48] sm:$0xff] %vm493_vm3, %v2855_v30 }
 0x1cf   : > { %3281 = vst.msk [vmem:[#allocation2 + $0x8] sm:$0xff] %vm493_vm3, %v3245_v18 }
 0x1d0   : > { %v4965_v19 = vpop.f32.mrb[116].mxu0 }
 0x1d1   : > { %v2860_v50 = vadd.f32 %v4965_v19, %v2824_v21  ;;  %v4995_v24 = vpop.f32.mrb[116].mxu1  ;;  %v2715_v28 = vpop.f32.mrb[117].mxu0 }
 0x1d2   : > { %v3250_v60 = vadd.f32 %v4995_v24, %v3214_v27  ;;  %v2858_v31 = vadd.f32 %v2822_v29, %v2715_v28  ;;  %v3081_v26 = vpop.f32.mrb[117].mxu1  ;;  %v4966_v33 = vpop.f32.mrb[118].mxu0  ;;  %v3218_v53 = vld [vmem:[#allocation2 + $0x50] sm:$0xff]  ;;  %v2831_v24 = vld [vmem:[#allocation2 + $0xa8] sm:$0xff] }
 0x1d3   : > { %2896 = vst.msk [vmem:[#allocation2 + $0x70] sm:$0xff] %vm493_vm3, %v2860_v50  ;;  %v3248_v38 = vadd.f32 %v3212_v22, %v3081_v26  ;;  %v2861_v40 = vadd.f32 %v4966_v33, %v2825_v36  ;;  %v4996_v34 = vpop.f32.mrb[118].mxu1  ;;  %v2718_v23 = vpop.f32.mrb[119].mxu0  ;;  %v3216_v57 = vld [vmem:[#allocation2 + $0x40] sm:$0xff]  ;;  %v2836_v22 = vld [vmem:[#allocation2 + $0xd0] sm:$0xff] }
 0x1d4   : > { %3286 = vst.msk [vmem:[#allocation2 + $0x30] sm:$0xff] %vm493_vm3, %v3250_v60  ;;  %2894 = vst.msk [vmem:[#allocation2 + $0x60] sm:$0xff] %vm493_vm3, %v2858_v31  ;;  %v3251_v44 = vadd.f32 %v4996_v34, %v3215_v32  ;;  %v2859_v45 = vadd.f32 %v2823_v43, %v2718_v23  ;;  %v3084_v46 = vpop.f32.mrb[119].mxu1  ;;  %v3219_v39 = vld [vmem:[#allocation2 + $0x58] sm:$0xff]  ;;  %v2834_v34 = vld [vmem:[#allocation2 + $0xc0] sm:$0xff] }
 0x1d5   : > { %3284 = vst.msk [vmem:[#allocation2 + $0x20] sm:$0xff] %vm493_vm3, %v3248_v38  ;;  %2897 = vst.msk [vmem:[#allocation2 + $0x78] sm:$0xff] %vm493_vm3, %v2861_v40  ;;  %v3249_v47 = vadd.f32 %v3213_v25, %v3084_v46  ;;  %v3217_v48 = vld [vmem:[#allocation2 + $0x48] sm:$0xff]  ;;  %v2837_v46 = vld [vmem:[#allocation2 + $0xd8] sm:$0xff] }
 0x1d6   : > { %3287 = vst.msk [vmem:[#allocation2 + $0x38] sm:$0xff] %vm493_vm3, %v3251_v44  ;;  %2895 = vst.msk [vmem:[#allocation2 + $0x68] sm:$0xff] %vm493_vm3, %v2859_v45 }
 0x1d7   : > { %3285 = vst.msk [vmem:[#allocation2 + $0x28] sm:$0xff] %vm493_vm3, %v3249_v47 }
 0x1d8   : > { %v4969_v49 = vpop.f32.mrb[120].mxu0 }
 0x1d9   : > { %v2864_v2 = vadd.f32 %v4969_v49, %v2828_v37  ;;  %v4999_v52 = vpop.f32.mrb[120].mxu1  ;;  %v2731_v54 = vpop.f32.mrb[121].mxu0 }
 0x1da   : > { %v3254_v35 = vadd.f32 %v4999_v52, %v3218_v53  ;;  %v2862_v55 = vadd.f32 %v2826_v5, %v2731_v54  ;;  %v3097_v56 = vpop.f32.mrb[121].mxu1  ;;  %v4970_v58 = vpop.f32.mrb[122].mxu0  ;;  %v3222_v13 = vld [vmem:[#allocation2 + $0x70] sm:$0xff] }
 0x1db   : > { %2900 = vst.msk [vmem:[#allocation2 + $0x90] sm:$0xff] %vm493_vm3, %v2864_v2  ;;  %v3252_v59 = vadd.f32 %v3216_v57, %v3097_v56  ;;  %v2865_v61 = vadd.f32 %v4970_v58, %v2829_v41  ;;  %v5000_v63 = vpop.f32.mrb[122].mxu1  ;;  %v2734_v0 = vpop.f32.mrb[123].mxu0  ;;  %v3220_v4 = vld [vmem:[#allocation2 + $0x60] sm:$0xff]  ;;  %v2835_v2 = vld [vmem:[#allocation2 + $0xc8] sm:$0xff]  ;;  %v2840_v56 = vld [vmem:[#allocation2 + $0xf0] sm:$0xff] }
 0x1dc   : > { %3290 = vst.msk [vmem:[#allocation2 + $0x50] sm:$0xff] %vm493_vm3, %v3254_v35  ;;  %2898 = vst.msk [vmem:[#allocation2 + $0x80] sm:$0xff] %vm493_vm3, %v2862_v55  ;;  %v3255_v3 = vadd.f32 %v5000_v63, %v3219_v39  ;;  %v2863_v6 = vadd.f32 %v2827_v1, %v2734_v0  ;;  %v3100_v7 = vpop.f32.mrb[123].mxu1  ;;  %v3223_v21 = vld [vmem:[#allocation2 + $0x78] sm:$0xff] }
 0x1dd   : > { %3288 = vst.msk [vmem:[#allocation2 + $0x40] sm:$0xff] %vm493_vm3, %v3252_v59  ;;  %2901 = vst.msk [vmem:[#allocation2 + $0x98] sm:$0xff] %vm493_vm3, %v2865_v61  ;;  %v3253_v8 = vadd.f32 %v3217_v48, %v3100_v7  ;;  %v3221_v60 = vld [vmem:[#allocation2 + $0x68] sm:$0xff]  ;;  %v2838_v61 = vld [vmem:[#allocation2 + $0xe0] sm:$0xff] }
 0x1de   : > { %3291 = vst.msk [vmem:[#allocation2 + $0x58] sm:$0xff] %vm493_vm3, %v3255_v3  ;;  %2899 = vst.msk [vmem:[#allocation2 + $0x88] sm:$0xff] %vm493_vm3, %v2863_v6  ;;  %v2841_v6 = vld [vmem:[#allocation2 + $0xf8] sm:$0xff] }
 0x1df   : > { %3289 = vst.msk [vmem:[#allocation2 + $0x48] sm:$0xff] %vm493_vm3, %v3253_v8 }
 0x1e0   : > { %v4973_v9 = vpop.f32.mrb[124].mxu0 }
 0x1e1   : > { %v2868_v10 = vadd.f32 %v4973_v9, %v2832_v12  ;;  %v5003_v11 = vpop.f32.mrb[124].mxu1  ;;  %v2747_v14 = vpop.f32.mrb[125].mxu0 }
 0x1e2   : > { %v3258_v42 = vadd.f32 %v5003_v11, %v3222_v13  ;;  %v2866_v15 = vadd.f32 %v2830_v20, %v2747_v14  ;;  %v3113_v16 = vpop.f32.mrb[125].mxu1  ;;  %v4974_v30 = vpop.f32.mrb[126].mxu0  ;;  %v3226_v38 = vld [vmem:[#allocation2 + $0x90] sm:$0xff] }
 0x1e3   : > { %2904 = vst.msk [vmem:[#allocation2 + $0xb0] sm:$0xff] %vm493_vm3, %v2868_v10  ;;  %v3256_v17 = vadd.f32 %v3220_v4, %v3113_v16  ;;  %v2869_v18 = vadd.f32 %v4974_v30, %v2833_v51  ;;  %v5004_v19 = vpop.f32.mrb[126].mxu1  ;;  %v2750_v50 = vpop.f32.mrb[127].mxu0  ;;  %v3224_v44 = vld [vmem:[#allocation2 + $0x80] sm:$0xff]  ;;  %v2839_v10 = vld [vmem:[#allocation2 + $0xe8] sm:$0xff]  ;;  %v2844_v16 = vld [vmem:[#allocation2 + $0x110] sm:$0xff] }
 0x1e4   : > { %3294 = vst.msk [vmem:[#allocation2 + $0x70] sm:$0xff] %vm493_vm3, %v3258_v42  ;;  %2902 = vst.msk [vmem:[#allocation2 + $0xa0] sm:$0xff] %vm493_vm3, %v2866_v15  ;;  %v3259_v27 = vadd.f32 %v5004_v19, %v3223_v21  ;;  %v2867_v28 = vadd.f32 %v2831_v24, %v2750_v50  ;;  %v3116_v29 = vpop.f32.mrb[127].mxu1  ;;  %v3227_v37 = vld [vmem:[#allocation2 + $0x98] sm:$0xff] }
 0x1e5   : > { %3292 = vst.msk [vmem:[#allocation2 + $0x60] sm:$0xff] %vm493_vm3, %v3256_v17  ;;  %2905 = vst.msk [vmem:[#allocation2 + $0xb8] sm:$0xff] %vm493_vm3, %v2869_v18  ;;  %v3257_v31 = vadd.f32 %v3221_v60, %v3116_v29  ;;  %v3225_v5 = vld [vmem:[#allocation2 + $0x88] sm:$0xff]  ;;  %v2842_v18 = vld [vmem:[#allocation2 + $0x100] sm:$0xff] }
 0x1e6   : > { %3295 = vst.msk [vmem:[#allocation2 + $0x78] sm:$0xff] %vm493_vm3, %v3259_v27  ;;  %2903 = vst.msk [vmem:[#allocation2 + $0xa8] sm:$0xff] %vm493_vm3, %v2867_v28  ;;  %v2845_v28 = vld [vmem:[#allocation2 + $0x118] sm:$0xff] }
 0x1e7   : > { %3293 = vst.msk [vmem:[#allocation2 + $0x68] sm:$0xff] %vm493_vm3, %v3257_v31 }
 0x1e8   : > { %v4977_v26 = vpop.f32.mrb[128].mxu0 }
 0x1e9   : > { %v2872_v33 = vadd.f32 %v4977_v26, %v2836_v22  ;;  %v5007_v36 = vpop.f32.mrb[128].mxu1  ;;  %v2763_v40 = vpop.f32.mrb[129].mxu0 }
 0x1ea   : > { %v3262_v32 = vadd.f32 %v5007_v36, %v3226_v38  ;;  %v2870_v23 = vadd.f32 %v2834_v34, %v2763_v40  ;;  %v3129_v43 = vpop.f32.mrb[129].mxu1  ;;  %v4978_v45 = vpop.f32.mrb[130].mxu0  ;;  %v3230_v41 = vld [vmem:[#allocation2 + $0xb0] sm:$0xff] }
 0x1eb   : > { %2908 = vst.msk [vmem:[#allocation2 + $0xd0] sm:$0xff] %vm493_vm3, %v2872_v33  ;;  %v3260_v25 = vadd.f32 %v3224_v44, %v3129_v43  ;;  %v2873_v47 = vadd.f32 %v4978_v45, %v2837_v46  ;;  %v5008_v49 = vpop.f32.mrb[130].mxu1  ;;  %v2766_v62 = vpop.f32.mrb[131].mxu0  ;;  %v3228_v1 = vld [vmem:[#allocation2 + $0xa0] sm:$0xff]  ;;  %v2843_v33 = vld [vmem:[#allocation2 + $0x108] sm:$0xff]  ;;  %v3608_v43 = vld [vmem:[#allocation2 + $0x10] sm:$0xff] }
 0x1ec   : > { %3298 = vst.msk [vmem:[#allocation2 + $0x90] sm:$0xff] %vm493_vm3, %v3262_v32  ;;  %2906 = vst.msk [vmem:[#allocation2 + $0xc0] sm:$0xff] %vm493_vm3, %v2870_v23  ;;  %v3263_v52 = vadd.f32 %v5008_v49, %v3227_v37  ;;  %v2871_v53 = vadd.f32 %v2835_v2, %v2766_v62  ;;  %v3132_v54 = vpop.f32.mrb[131].mxu1  ;;  %v3231_v9 = vld [vmem:[#allocation2 + $0xb8] sm:$0xff] }
 0x1ed   : > { %3296 = vst.msk [vmem:[#allocation2 + $0x80] sm:$0xff] %vm493_vm3, %v3260_v25  ;;  %2909 = vst.msk [vmem:[#allocation2 + $0xd8] sm:$0xff] %vm493_vm3, %v2873_v47  ;;  %v3261_v35 = vadd.f32 %v3225_v5, %v3132_v54  ;;  %v3229_v20 = vld [vmem:[#allocation2 + $0xa8] sm:$0xff]  ;;  %v3606_v47 = vld [vmem:[#allocation2] sm:$0xff] }
 0x1ee   : > { %3299 = vst.msk [vmem:[#allocation2 + $0x98] sm:$0xff] %vm493_vm3, %v3263_v52  ;;  %2907 = vst.msk [vmem:[#allocation2 + $0xc8] sm:$0xff] %vm493_vm3, %v2871_v53  ;;  %v3609_v53 = vld [vmem:[#allocation2 + $0x18] sm:$0xff] }
 0x1ef   : > { %3297 = vst.msk [vmem:[#allocation2 + $0x88] sm:$0xff] %vm493_vm3, %v3261_v35 }
 0x1f0   : > { %v4981_v55 = vpop.f32.mrb[132].mxu0 }
 0x1f1   : > { %v2876_v57 = vadd.f32 %v4981_v55, %v2840_v56  ;;  %v5011_v58 = vpop.f32.mrb[132].mxu1  ;;  %v2779_v59 = vpop.f32.mrb[133].mxu0 }
 0x1f2   : > { %v3266_v63 = vadd.f32 %v5011_v58, %v3230_v41  ;;  %v2874_v39 = vadd.f32 %v2838_v61, %v2779_v59  ;;  %v3145_v0 = vpop.f32.mrb[133].mxu1  ;;  %v4982_v3 = vpop.f32.mrb[134].mxu0  ;;  %v3234_v51 = vld [vmem:[#allocation2 + $0xd0] sm:$0xff] }
 0x1f3   : > { %2912 = vst.msk [vmem:[#allocation2 + $0xf0] sm:$0xff] %vm493_vm3, %v2876_v57  ;;  %v3264_v7 = vadd.f32 %v3228_v1, %v3145_v0  ;;  %v2877_v48 = vadd.f32 %v4982_v3, %v2841_v6  ;;  %v5012_v8 = vpop.f32.mrb[134].mxu1  ;;  %v2782_v12 = vpop.f32.mrb[135].mxu0  ;;  %v3232_v24 = vld [vmem:[#allocation2 + $0xc0] sm:$0xff]  ;;  %v3607_v57 = vld [vmem:[#allocation2 + $0x8] sm:$0xff]  ;;  %v3612_v0 = vld [vmem:[#allocation2 + $0x30] sm:$0xff] }
 0x1f4   : > { %3302 = vst.msk [vmem:[#allocation2 + $0xb0] sm:$0xff] %vm493_vm3, %v3266_v63  ;;  %2910 = vst.msk [vmem:[#allocation2 + $0xe0] sm:$0xff] %vm493_vm3, %v2874_v39  ;;  %v3267_v11 = vadd.f32 %v5012_v8, %v3231_v9  ;;  %v2875_v13 = vadd.f32 %v2839_v10, %v2782_v12  ;;  %v3148_v14 = vpop.f32.mrb[135].mxu1  ;;  %v3235_v26 = vld [vmem:[#allocation2 + $0xd8] sm:$0xff] }
 0x1f5   : > { %3300 = vst.msk [vmem:[#allocation2 + $0xa0] sm:$0xff] %vm493_vm3, %v3264_v7  ;;  %2913 = vst.msk [vmem:[#allocation2 + $0xf8] sm:$0xff] %vm493_vm3, %v2877_v48  ;;  %v3265_v42 = vadd.f32 %v3229_v20, %v3148_v14  ;;  %v3233_v34 = vld [vmem:[#allocation2 + $0xc8] sm:$0xff]  ;;  %v3610_v48 = vld [vmem:[#allocation2 + $0x20] sm:$0xff] }
 0x1f6   : > { %3303 = vst.msk [vmem:[#allocation2 + $0xb8] sm:$0xff] %vm493_vm3, %v3267_v11  ;;  %2911 = vst.msk [vmem:[#allocation2 + $0xe8] sm:$0xff] %vm493_vm3, %v2875_v13  ;;  %v3613_v13 = vld [vmem:[#allocation2 + $0x38] sm:$0xff] }
 0x1f7   : > { %3301 = vst.msk [vmem:[#allocation2 + $0xa8] sm:$0xff] %vm493_vm3, %v3265_v42 }
 0x1f8   : > { %v4985_v15 = vpop.f32.mrb[136].mxu0 }
 0x1f9   : > { %v2880_v4 = vadd.f32 %v4985_v15, %v2844_v16  ;;  %v5015_v30 = vpop.f32.mrb[136].mxu1  ;;  %v2795_v17 = vpop.f32.mrb[137].mxu0 }
 0x1fa   : > { %v3270_v19 = vadd.f32 %v5015_v30, %v3234_v51  ;;  %v2878_v21 = vadd.f32 %v2842_v18, %v2795_v17  ;;  %v3161_v50 = vpop.f32.mrb[137].mxu1  ;;  %v4986_v27 = vpop.f32.mrb[138].mxu0  ;;  %v3238_v45 = vld [vmem:[#allocation2 + $0xf0] sm:$0xff] }
 0x1fb   : > { %2916 = vst.msk [vmem:[#allocation2 + $0x110] sm:$0xff] %vm493_vm3, %v2880_v4  ;;  %v3268_v29 = vadd.f32 %v3232_v24, %v3161_v50  ;;  %v2881_v60 = vadd.f32 %v4986_v27, %v2845_v28  ;;  %v5016_v31 = vpop.f32.mrb[138].mxu1  ;;  %v2798_v22 = vpop.f32.mrb[139].mxu0  ;;  %v3236_v62 = vld [vmem:[#allocation2 + $0xe0] sm:$0xff]  ;;  %v3611_v4 = vld [vmem:[#allocation2 + $0x28] sm:$0xff]  ;;  %v3616_v50 = vld [vmem:[#allocation2 + $0x50] sm:$0xff] }
 0x1fc   : > { %3306 = vst.msk [vmem:[#allocation2 + $0xd0] sm:$0xff] %vm493_vm3, %v3270_v19  ;;  %2914 = vst.msk [vmem:[#allocation2 + $0x100] sm:$0xff] %vm493_vm3, %v2878_v21  ;;  %v3271_v36 = vadd.f32 %v5016_v31, %v3235_v26  ;;  %v2879_v38 = vadd.f32 %v2843_v33, %v2798_v22  ;;  %v3164_v40 = vpop.f32.mrb[139].mxu1  ;;  %v3239_v35 = vld [vmem:[#allocation2 + $0xf8] sm:$0xff]  ;;  %v3614_v28 = vld [vmem:[#allocation2 + $0x40] sm:$0xff] }
 0x1fd   : > { %3304 = vst.msk [vmem:[#allocation2 + $0xc0] sm:$0xff] %vm493_vm3, %v3268_v29  ;;  %2917 = vst.msk [vmem:[#allocation2 + $0x118] sm:$0xff] %vm493_vm3, %v2881_v60  ;;  %v3269_v32 = vadd.f32 %v3233_v34, %v3164_v40  ;;  %v3237_v59 = vld [vmem:[#allocation2 + $0xe8] sm:$0xff]  ;;  %v3617_v31 = vld [vmem:[#allocation2 + $0x58] sm:$0xff] }
 0x1fe   : > { %3307 = vst.msk [vmem:[#allocation2 + $0xd8] sm:$0xff] %vm493_vm3, %v3271_v36  ;;  %2915 = vst.msk [vmem:[#allocation2 + $0x108] sm:$0xff] %vm493_vm3, %v2879_v38  ;;  %v3615_v33 = vld [vmem:[#allocation2 + $0x48] sm:$0xff]  ;;  %v3620_v40 = vld [vmem:[#allocation2 + $0x70] sm:$0xff] }
 0x1ff   : > { %3305 = vst.msk [vmem:[#allocation2 + $0xc8] sm:$0xff] %vm493_vm3, %v3269_v32 }
 0x200   : > { %v5029_v23 = vpop.f32.mrb[140].mxu0 }
 0x201   : > { %v5019_v44 = vpop.f32.mrb[140].mxu1  ;;  %v3644_v46 = vadd.f32 %v5029_v23, %v3608_v43  ;;  %v3463_v25 = vpop.f32.mrb[141].mxu0  ;;  %v3618_v23 = vld [vmem:[#allocation2 + $0x60] sm:$0xff] }
 0x202   : > { %v3274_v49 = vadd.f32 %v5019_v44, %v3238_v45  ;;  %v3177_v37 = vpop.f32.mrb[141].mxu1  ;;  %v3642_v2 = vadd.f32 %v3606_v47, %v3463_v25  ;;  %v5030_v52 = vpop.f32.mrb[142].mxu0  ;;  %v3242_v3 = vld [vmem:[#allocation2 + $0x110] sm:$0xff]  ;;  %v3621_v45 = vld [vmem:[#allocation2 + $0x78] sm:$0xff]  ;;  %v3619_v47 = vld [vmem:[#allocation2 + $0x68] sm:$0xff] }
 0x203   : > { %3680 = vst.msk [vmem:[#allocation2 + $0x10] sm:$0xff] %vm493_vm3, %v3644_v46  ;;  %v3272_v54 = vadd.f32 %v3236_v62, %v3177_v37  ;;  %v5020_v5 = vpop.f32.mrb[142].mxu1  ;;  %v3645_v55 = vadd.f32 %v5030_v52, %v3609_v53  ;;  %v3466_v56 = vpop.f32.mrb[143].mxu0  ;;  %v3240_v12 = vld [vmem:[#allocation2 + $0x100] sm:$0xff]  ;;  %v3624_v62 = vld [vmem:[#allocation2 + $0x90] sm:$0xff] }
 0x204   : > { %3310 = vst.msk [vmem:[#allocation2 + $0xf0] sm:$0xff] %vm493_vm3, %v3274_v49  ;;  %3678 = vst.msk [vmem:[#allocation2] sm:$0xff] %vm493_vm3, %v3642_v2  ;;  %v3275_v58 = vadd.f32 %v5020_v5, %v3239_v35  ;;  %v3180_v41 = vpop.f32.mrb[143].mxu1  ;;  %v3643_v61 = vadd.f32 %v3607_v57, %v3466_v56  ;;  %v3243_v42 = vld [vmem:[#allocation2 + $0x118] sm:$0xff]  ;;  %v3622_v53 = vld [vmem:[#allocation2 + $0x80] sm:$0xff] }
 0x205   : > { %3308 = vst.msk [vmem:[#allocation2 + $0xe0] sm:$0xff] %vm493_vm3, %v3272_v54  ;;  %3681 = vst.msk [vmem:[#allocation2 + $0x18] sm:$0xff] %vm493_vm3, %v3645_v55  ;;  %v3273_v63 = vadd.f32 %v3237_v59, %v3180_v41  ;;  %v3241_v17 = vld [vmem:[#allocation2 + $0x108] sm:$0xff]  ;;  %v3625_v35 = vld [vmem:[#allocation2 + $0x98] sm:$0xff] }
 0x206   : > { %3311 = vst.msk [vmem:[#allocation2 + $0xf8] sm:$0xff] %vm493_vm3, %v3275_v58  ;;  %3679 = vst.msk [vmem:[#allocation2 + $0x8] sm:$0xff] %vm493_vm3, %v3643_v61  ;;  %v3623_v57 = vld [vmem:[#allocation2 + $0x88] sm:$0xff]  ;;  %v3628_v59 = vld [vmem:[#allocation2 + $0xb0] sm:$0xff] }
 0x207   : > { %3309 = vst.msk [vmem:[#allocation2 + $0xe8] sm:$0xff] %vm493_vm3, %v3273_v63 }
 0x208   : > { %v5033_v39 = vpop.f32.mrb[144].mxu0 }
 0x209   : > { %v5023_v1 = vpop.f32.mrb[144].mxu1  ;;  %v3648_v6 = vadd.f32 %v5033_v39, %v3612_v0  ;;  %v3479_v7 = vpop.f32.mrb[145].mxu0  ;;  %v3626_v39 = vld [vmem:[#allocation2 + $0xa0] sm:$0xff] }
 0x20a   : > { %v3278_v8 = vadd.f32 %v5023_v1, %v3242_v3  ;;  %v3193_v9 = vpop.f32.mrb[145].mxu1  ;;  %v3646_v10 = vadd.f32 %v3610_v48, %v3479_v7  ;;  %v5034_v11 = vpop.f32.mrb[146].mxu0  ;;  %v3629_v3 = vld [vmem:[#allocation2 + $0xb8] sm:$0xff]  ;;  %v3627_v48 = vld [vmem:[#allocation2 + $0xa8] sm:$0xff] }
 0x20b   : > { %3684 = vst.msk [vmem:[#allocation2 + $0x30] sm:$0xff] %vm493_vm3, %v3648_v6  ;;  %v3276_v14 = vadd.f32 %v3240_v12, %v3193_v9  ;;  %v5024_v20 = vpop.f32.mrb[146].mxu1  ;;  %v3649_v15 = vadd.f32 %v5034_v11, %v3613_v13  ;;  %v3482_v16 = vpop.f32.mrb[147].mxu0 }
 0x20c   : > { %3314 = vst.msk [vmem:[#allocation2 + $0x110] sm:$0xff] %vm493_vm3, %v3278_v8  ;;  %3682 = vst.msk [vmem:[#allocation2 + $0x20] sm:$0xff] %vm493_vm3, %v3646_v10  ;;  %v3279_v30 = vadd.f32 %v5024_v20, %v3243_v42  ;;  %v3196_v51 = vpop.f32.mrb[147].mxu1  ;;  %v3647_v18 = vadd.f32 %v3611_v4, %v3482_v16  ;;  %v3816_v9 = vld [vmem:[#allocation2 + $0x12] sm:$0xff]  ;;  %v3714_v20 = vld [vmem:[#allocation2] sm:$0xff] }
 0x20d   : > { %3312 = vst.msk [vmem:[#allocation2 + $0x100] sm:$0xff] %vm493_vm3, %v3276_v14  ;;  %3685 = vst.msk [vmem:[#allocation2 + $0x38] sm:$0xff] %vm493_vm3, %v3649_v15  ;;  %v3277_v19 = vadd.f32 %v3241_v17, %v3196_v51  ;;  %v3850_v12 = vld [vmem:[#allocation2 + $0x13] sm:$0xff]  ;;  %v3715_v10 = vld [vmem:[#allocation2 + $0x8] sm:$0xff] }
 0x20e   : > { %3315 = vst.msk [vmem:[#allocation2 + $0x118] sm:$0xff] %vm493_vm3, %v3279_v30  ;;  %3683 = vst.msk [vmem:[#allocation2 + $0x28] sm:$0xff] %vm493_vm3, %v3647_v18  ;;  %v3632_v14 = vld [vmem:[#allocation2 + $0xd0] sm:$0xff]  ;;  %v3748_v42 = vld [vmem:[#allocation2 + $0x1] sm:$0xff] }
 0x20f   : > { %3313 = vst.msk [vmem:[#allocation2 + $0x108] sm:$0xff] %vm493_vm3, %v3277_v19  ;;  %v3749_v15 = vld [vmem:[#allocation2 + $0x9] sm:$0xff]  ;;  %v3630_v4 = vld [vmem:[#allocation2 + $0xc0] sm:$0xff]  ;;  %v3633_v19 = vld [vmem:[#allocation2 + $0xd8] sm:$0xff] }
 0x210   : > { %v5037_v21 = vpop.f32.mrb[148].mxu0 }
 0x211   : > { %v3652_v24 = vadd.f32 %v5037_v21, %v3616_v50  ;;  %v3495_v27 = vpop.f32.mrb[149].mxu0 }
 0x212   : > { %v3650_v29 = vadd.f32 %v3614_v28, %v3495_v27  ;;  %v5038_v60 = vpop.f32.mrb[150].mxu0 }
 0x213   : > { %3688 = vst.msk [vmem:[#allocation2 + $0x50] sm:$0xff] %vm493_vm3, %v3652_v24  ;;  %v3653_v26 = vadd.f32 %v5038_v60, %v3617_v31  ;;  %v3498_v22 = vpop.f32.mrb[151].mxu0  ;;  %v3817_v11 = vld [vmem:[#allocation2 + $0x1a] sm:$0xff]  ;;  %v3631_v60 = vld [vmem:[#allocation2 + $0xc8] sm:$0xff] }
 0x214   : > { %3686 = vst.msk [vmem:[#allocation2 + $0x40] sm:$0xff] %vm493_vm3, %v3650_v29  ;;  %v3651_v36 = vadd.f32 %v3615_v33, %v3498_v22  ;;  %v3851_v13 = vld [vmem:[#allocation2 + $0x1b] sm:$0xff]  ;;  %v3782_v33 = vmax.f32 %v3714_v20, %v3748_v42  ;;  %v6068_v42 = vld [vmem:[#allocation2 + $0x31] sm:$0xff] }
 0x215   : > { %3689 = vst.msk [vmem:[#allocation2 + $0x58] sm:$0xff] %vm493_vm3, %v3653_v26  ;;  %v6040_v16 = vld [vmem:[#allocation2 + $0x22] sm:$0xff]  ;;  %v3885_v21 = vmax.f32 %v3817_v11, %v3851_v13  ;;  %v6042_v50 = vld [vmem:[#allocation2 + $0x2a] sm:$0xff] }
 0x216   : > { %3687 = vst.msk [vmem:[#allocation2 + $0x48] sm:$0xff] %vm493_vm3, %v3651_v36  ;;  %v3852_v24 = vld [vmem:[#allocation2 + $0x23] sm:$0xff]  ;;  %v3853_v27 = vld [vmem:[#allocation2 + $0x2b] sm:$0xff]  ;;  %v3884_v36 = vmax.f32 %v3816_v9, %v3850_v12 }
 0x217   : > { %v6066_v20 = vld [vmem:[#allocation2 + $0x20] sm:$0xff] }
 0x218   : > { %v5041_v38 = vpop.f32.mrb[152].mxu0 }
 0x219   : > { %v3656_v34 = vadd.f32 %v5041_v38, %v3620_v40  ;;  %v3511_v32 = vpop.f32.mrb[153].mxu0 }
 0x21a   : > { %v3654_v43 = vadd.f32 %v3618_v23, %v3511_v32  ;;  %v5042_v44 = vpop.f32.mrb[154].mxu0  ;;  %v3783_v23 = vmax.f32 %v3715_v10, %v3749_v15  ;;  %v3634_v15 = vld [vmem:[#allocation2 + $0xe0] sm:$0xff] }
 0x21b   : > { %3692 = vst.msk [vmem:[#allocation2 + $0x70] sm:$0xff] %vm493_vm3, %v3656_v34  ;;  %v3657_v46 = vadd.f32 %v5042_v44, %v3621_v45  ;;  %v3514_v25 = vpop.f32.mrb[155].mxu0  ;;  %v3717_v44 = vld [vmem:[#allocation2 + $0x18] sm:$0xff] }
 0x21c   : > { %3690 = vst.msk [vmem:[#allocation2 + $0x60] sm:$0xff] %vm493_vm3, %v3654_v43  ;;  %v3655_v49 = vadd.f32 %v3619_v47, %v3514_v25  ;;  %v3716_v43 = vld [vmem:[#allocation2 + $0x10] sm:$0xff] }
 0x21d   : > { %3693 = vst.msk [vmem:[#allocation2 + $0x78] sm:$0xff] %vm493_vm3, %v3657_v46  ;;  %v3750_v45 = vld [vmem:[#allocation2 + $0x11] sm:$0xff]  ;;  %v3751_v46 = vld [vmem:[#allocation2 + $0x19] sm:$0xff] }
 0x21e   : > { %3691 = vst.msk [vmem:[#allocation2 + $0x68] sm:$0xff] %vm493_vm3, %v3655_v49 }
 0x220   : > { %v5045_v37 = vpop.f32.mrb[156].mxu0 }
 0x221   : > { %v3660_v2 = vadd.f32 %v5045_v37, %v3624_v62  ;;  %v3527_v52 = vpop.f32.mrb[157].mxu0 }
 0x222   : > { %v3658_v54 = vadd.f32 %v3622_v53, %v3527_v52  ;;  %v5046_v5 = vpop.f32.mrb[158].mxu0  ;;  %v3887_v52 = vmax.f32 %v6042_v50, %v3853_v27  ;;  %v6047_v53 = vld [vmem:[#allocation2 + $0x3a] sm:$0xff] }
 0x223   : > { %3696 = vst.msk [vmem:[#allocation2 + $0x90] sm:$0xff] %vm493_vm3, %v3660_v2  ;;  %v3661_v55 = vadd.f32 %v5046_v5, %v3625_v35  ;;  %v3530_v56 = vpop.f32.mrb[159].mxu0  ;;  %v3886_v2 = vmax.f32 %v6040_v16, %v3852_v24  ;;  %v3637_v50 = vld [vmem:[#allocation2 + $0xf8] sm:$0xff] }
 0x224   : > { %3694 = vst.msk [vmem:[#allocation2 + $0x80] sm:$0xff] %vm493_vm3, %v3658_v54  ;;  %v3659_v58 = vadd.f32 %v3623_v57, %v3530_v56 }
 0x225   : > { %3697 = vst.msk [vmem:[#allocation2 + $0x98] sm:$0xff] %vm493_vm3, %v3661_v55  ;;  %v6050_v55 = vmax.f32 %v3783_v23, %v3885_v21 }
 0x226   : > { %3695 = vst.msk [vmem:[#allocation2 + $0x88] sm:$0xff] %vm493_vm3, %v3659_v58  ;;  %v6052_v58 = vld [vmem:[#allocation2 + $0x21] sm:$0xff] }
 0x228   : > { %v5049_v41 = vpop.f32.mrb[160].mxu0 }
 0x229   : > { %v3664_v61 = vadd.f32 %v5049_v41, %v3628_v59  ;;  %v3543_v63 = vpop.f32.mrb[161].mxu0  ;;  %v6054_v41 = vld [vmem:[#allocation2 + $0x32] sm:$0xff] }
 0x22a   : > { %v3662_v0 = vadd.f32 %v3626_v39, %v3543_v63  ;;  %v5050_v1 = vpop.f32.mrb[162].mxu0  ;;  %v3732_v56 = vld [vmem:[#allocation2 + $0x90] sm:$0xff]  ;;  %v3918_v63 = vmax.f32 %v3782_v33, %v3884_v36 }
 0x22b   : > { %3700 = vst.msk [vmem:[#allocation2 + $0xb0] sm:$0xff] %vm493_vm3, %v3664_v61  ;;  %v3665_v6 = vadd.f32 %v5050_v1, %v3629_v3  ;;  %v3546_v7 = vpop.f32.mrb[163].mxu0  ;;  %v3730_v31 = vld [vmem:[#allocation2 + $0x80] sm:$0xff]  ;;  %v6056_v59 = vld [vmem:[#allocation2 + $0x33] sm:$0xff]  ;;  %v3784_v3 = vmax.f32 %v3716_v43, %v3750_v45  ;;  %v3786_v43 = vmax.f32 %v6066_v20, %v6052_v58  ;;  %v6133_v20 = vld [vmem:[#allocation2 + $0x48] sm:$0xff] }
 0x22c   : > { %3698 = vst.msk [vmem:[#allocation2 + $0xa0] sm:$0xff] %vm493_vm3, %v3662_v0  ;;  %v3663_v8 = vadd.f32 %v3627_v48, %v3546_v7  ;;  %v3832_v51 = vld [vmem:[#allocation2 + $0x92] sm:$0xff]  ;;  %v6058_v61 = vld [vmem:[#allocation2 + $0x3b] sm:$0xff]  ;;  %v6061_v7 = vld [vmem:[#allocation2 + $0x28] sm:$0xff]  ;;  %v5081_v27 = vpack.c.bf16 %v6050_v55, %v3918_v63 }
 0x22d   : > { %3701 = vst.msk [vmem:[#allocation2 + $0xb8] sm:$0xff] %vm493_vm3, %v3665_v6  ;;  %v3764_v30 = vld [vmem:[#allocation2 + $0x81] sm:$0xff]  ;;  %v3866_v17 = vld [vmem:[#allocation2 + $0x93] sm:$0xff]  ;;  %v3765_v22 = vld [vmem:[#allocation2 + $0x89] sm:$0xff]  ;;  %v3785_v6 = vmax.f32 %v3717_v44, %v3751_v46  ;;  %v3888_v44 = vmax.f32 %v6054_v41, %v6056_v59 }
 0x22e   : > { %3699 = vst.msk [vmem:[#allocation2 + $0xa8] sm:$0xff] %vm493_vm3, %v3663_v8  ;;  %v3731_v26 = vld [vmem:[#allocation2 + $0x88] sm:$0xff]  ;;  %v3798_v34 = vmax.f32 %v3730_v31, %v3764_v30  ;;  %v3900_v32 = vmax.f32 %v3832_v51, %v3866_v17  ;;  %v3766_v62 = vld [vmem:[#allocation2 + $0x91] sm:$0xff]  ;;  %v6070_v30 = vmax.f32 %v3784_v3, %v3886_v2  ;;  %v6085_v31 = vld [vmem:[#allocation2 + $0x39] sm:$0xff] }
 0x22f   : > { %v3799_v5 = vmax.f32 %v3731_v26, %v3765_v22  ;;  %v6063_v48 = vld [vmem:[#allocation2 + $0x29] sm:$0xff]  ;;  %v3733_v10 = vld [vmem:[#allocation2 + $0x98] sm:$0xff]  ;;  %v3800_v11 = vmax.f32 %v3732_v56, %v3766_v62  ;;  %v6072_v51 = vmax.f32 %v3785_v6, %v3887_v52  ;;  %v6106_v52 = vld [vmem:[#allocation2 + $0x41] sm:$0xff] }
 0x230   : > { %v5053_v18 = vpop.f32.mrb[164].mxu0  ;;  %v3636_v8 = vld [vmem:[#allocation2 + $0xf0] sm:$0xff]  ;;  %v3934_v9 = vmax.f32 %v3798_v34, %v3900_v32  ;;  %v6087_v26 = vld [vmem:[#allocation2 + $0x42] sm:$0xff] }
 0x231   : > { %v3668_v28 = vadd.f32 %v5053_v18, %v3632_v14  ;;  %v3559_v29 = vpop.f32.mrb[165].mxu0  ;;  %v6089_v22 = vld [vmem:[#allocation2 + $0x4a] sm:$0xff]  ;;  %v5085_v56 = vpack.c.bf16 %v6072_v51, %v6070_v30 }
 0x232   : > { %v3666_v38 = vadd.f32 %v3630_v4, %v3559_v29  ;;  %v5054_v40 = vpop.f32.mrb[166].mxu0  ;;  %v3889_v29 = vmax.f32 %v6047_v53, %v6058_v61  ;;  %v6102_v62 = vld [vmem:[#allocation2 + $0x43] sm:$0xff]  ;;  %v6104_v2 = vld [vmem:[#allocation2 + $0x4b] sm:$0xff]  ;;  %v6117_v61 = vld [vmem:[#allocation2 + $0x5a] sm:$0xff] }
 0x233   : > { %3704 = vst.msk [vmem:[#allocation2 + $0xd0] sm:$0xff] %vm493_vm3, %v3668_v28  ;;  %v3669_v25 = vadd.f32 %v5054_v40, %v3633_v19  ;;  %v3562_v47 = vpop.f32.mrb[167].mxu0  ;;  %v3833_v49 = vld [vmem:[#allocation2 + $0x9a] sm:$0xff]  ;;  %v6108_v53 = vld [vmem:[#allocation2 + $0x52] sm:$0xff] }
 0x234   : > { %v3867_v37 = vld [vmem:[#allocation2 + $0x9b] sm:$0xff]  ;;  %3702 = vst.msk [vmem:[#allocation2 + $0xc0] sm:$0xff] %vm493_vm3, %v3666_v38  ;;  %v3667_v54 = vadd.f32 %v3631_v60, %v3562_v47  ;;  %v6076_v18 = vld [vmem:[#allocation2 + $0xb2] sm:$0xff]  ;;  %v3635_v38 = vld [vmem:[#allocation2 + $0xe8] sm:$0xff] }
 0x235   : > { %v3901_v35 = vmax.f32 %v3833_v49, %v3867_v37  ;;  %v3767_v57 = vld [vmem:[#allocation2 + $0x99] sm:$0xff]  ;;  %3705 = vst.msk [vmem:[#allocation2 + $0xd8] sm:$0xff] %vm493_vm3, %v3669_v25  ;;  %v3834_v39 = vld [vmem:[#allocation2 + $0xa2] sm:$0xff]  ;;  %v3835_v0 = vld [vmem:[#allocation2 + $0xaa] sm:$0xff]  ;;  %v3787_v49 = vmax.f32 %v6061_v7, %v6063_v48 }
 0x236   : > { %v3868_v1 = vld [vmem:[#allocation2 + $0xa3] sm:$0xff]  ;;  %3703 = vst.msk [vmem:[#allocation2 + $0xc8] sm:$0xff] %vm493_vm3, %v3667_v54  ;;  %v3869_v13 = vld [vmem:[#allocation2 + $0xab] sm:$0xff]  ;;  %v3801_v16 = vmax.f32 %v3733_v10, %v3767_v57  ;;  %v6078_v19 = vld [vmem:[#allocation2 + $0xb3] sm:$0xff] }
 0x237   : > { %v3935_v12 = vmax.f32 %v3799_v5, %v3901_v35  ;;  %v3902_v14 = vmax.f32 %v3834_v39, %v3868_v1  ;;  %v3903_v4 = vmax.f32 %v3835_v0, %v3869_v13  ;;  %v6074_v17 = vld [vmem:[#allocation2 + $0xa1] sm:$0xff]  ;;  %v6083_v60 = vld [vmem:[#allocation2 + $0x30] sm:$0xff]  ;;  %v3904_v47 = vmax.f32 %v6076_v18, %v6078_v19  ;;  %v6100_v37 = vld [vmem:[#allocation2 + $0x38] sm:$0xff] }
 0x238   : > { %v5057_v21 = vpop.f32.mrb[168].mxu0  ;;  %v3734_v34 = vld [vmem:[#allocation2 + $0xa0] sm:$0xff]  ;;  %v3735_v32 = vld [vmem:[#allocation2 + $0xa8] sm:$0xff]  ;;  %v6110_v54 = vld [vmem:[#allocation2 + $0x53] sm:$0xff]  ;;  %v3788_v59 = vmax.f32 %v6083_v60, %v6068_v42  ;;  %v6120_v1 = vmax.f32 %v3787_v49, %v3889_v29  ;;  %v3890_v13 = vmax.f32 %v6087_v26, %v6102_v62 }
 0x239   : > { %v5079_v24 = vpack.c.bf16 %v3935_v12, %v3934_v9  ;;  %v3936_v28 = vmax.f32 %v3800_v11, %v3902_v14  ;;  %v3672_v33 = vadd.f32 %v5057_v21, %v3636_v8  ;;  %v3575_v36 = vpop.f32.mrb[169].mxu0  ;;  %v3937_v40 = vmax.f32 %v3801_v16, %v3903_v4  ;;  %v3769_v23 = vld [vmem:[#allocation2 + $0xa9] sm:$0xff]  ;;  %v3770_v41 = vld [vmem:[#allocation2 + $0xb1] sm:$0xff]  ;;  %v6122_v7 = vld [vmem:[#allocation2 + $0x40] sm:$0xff] }
 0x23a   : > { %v3670_v45 = vadd.f32 %v3634_v15, %v3575_v36  ;;  %v5058_v46 = vpop.f32.mrb[170].mxu0  ;;  %v3802_v25 = vmax.f32 %v3734_v34, %v6074_v17  ;;  %v3803_v39 = vmax.f32 %v3735_v32, %v3769_v23  ;;  %v3736_v3 = vld [vmem:[#allocation2 + $0xb0] sm:$0xff]  ;;  %v6124_v48 = vld [vmem:[#allocation2 + $0x5b] sm:$0xff]  ;;  %v3922_v8 = vmax.f32 %v3786_v43, %v3888_v44 }
 0x23b   : > { %5080 = vmatprep.subr.bf16.mxu1 %v5079_v24  ;;  %3708 = vst.msk [vmem:[#allocation2 + $0xf0] sm:$0xff] %vm493_vm3, %v3672_v33  ;;  %v3673_v5 = vadd.f32 %v5058_v46, %v3637_v50  ;;  %v3578_v35 = vpop.f32.mrb[171].mxu0  ;;  %v5083_v55 = vpack.c.bf16 %v3937_v40, %v3936_v28  ;;  %v3837_v57 = vld [vmem:[#allocation2 + $0xba] sm:$0xff]  ;;  %v3789_v11 = vmax.f32 %v6100_v37, %v6085_v31  ;;  %v6135_v42 = vld [vmem:[#allocation2 + $0x49] sm:$0xff]  ;;  %v6138_v19 = vld [vmem:[#allocation2 + $0x51] sm:$0xff] }
 0x23c   : > { %5082 = vmatpush3.bf16.msra.mxu1 %v5081_v27  ;;  %v3871_v58 = vld [vmem:[#allocation2 + $0xbb] sm:$0xff]  ;;  %3706 = vst.msk [vmem:[#allocation2 + $0xe0] sm:$0xff] %vm493_vm3, %v3670_v45  ;;  %v3671_v63 = vadd.f32 %v3635_v38, %v3578_v35  ;;  %v3891_v14 = vmax.f32 %v6089_v22, %v6104_v2  ;;  %v3640_v15 = vld [vmem:[#allocation2 + $0x110] sm:$0xff]  ;;  %v3938_v16 = vmax.f32 %v3802_v25, %v3904_v47  ;;  %v3639_v46 = vld [vmem:[#allocation2 + $0x108] sm:$0xff] }
 0x23d   : > { %v3905_v0 = vmax.f32 %v3837_v57, %v3871_v58  ;;  %v3771_v6 = vld [vmem:[#allocation2 + $0xb9] sm:$0xff]  ;;  %3709 = vst.msk [vmem:[#allocation2 + $0xf8] sm:$0xff] %vm493_vm3, %v3673_v5  ;;  %5084 = vmatprep.subr.bf16.mxu1 %v5083_v55  ;;  %v3838_v9 = vld [vmem:[#allocation2 + $0xc2] sm:$0xff]  ;;  %v3839_v12 = vld [vmem:[#allocation2 + $0xca] sm:$0xff]  ;;  %v3804_v51 = vmax.f32 %v3736_v3, %v3770_v41  ;;  %v3790_v60 = vmax.f32 %v6122_v7, %v6106_v52 }
 0x23e   : > { %v3872_v10 = vld [vmem:[#allocation2 + $0xc3] sm:$0xff]  ;;  %3707 = vst.msk [vmem:[#allocation2 + $0xe8] sm:$0xff] %vm493_vm3, %v3671_v63  ;;  %v3737_v30 = vld [vmem:[#allocation2 + $0xb8] sm:$0xff]  ;;  %v3873_v17 = vld [vmem:[#allocation2 + $0xcb] sm:$0xff]  ;;  %v3892_v31 = vmax.f32 %v6108_v53, %v6110_v54  ;;  %v5089_v36 = vpack.c.bf16 %v6120_v1, %v3922_v8  ;;  %v3893_v40 = vmax.f32 %v6117_v61, %v6124_v48  ;;  %v3924_v47 = vmax.f32 %v3788_v59, %v3890_v13 }
 0x23f   : > { %v3939_v4 = vmax.f32 %v3803_v39, %v3905_v0  ;;  %v3906_v18 = vmax.f32 %v3838_v9, %v3872_v10  ;;  %v3638_v21 = vld [vmem:[#allocation2 + $0x100] sm:$0xff]  ;;  %v3805_v50 = vmax.f32 %v3737_v30, %v3771_v6  ;;  %v3907_v24 = vmax.f32 %v3839_v12, %v3873_v17  ;;  %v6142_v28 = vld [vmem:[#allocation2 + $0xd2] sm:$0xff]  ;;  %v6159_v43 = vld [vmem:[#allocation2 + $0x6a] sm:$0xff] }
 0x240   : > { %5086 = vmatpush3.bf16.msra.mxu1 %v5085_v56  ;;  %v6140_v27 = vld [vmem:[#allocation2 + $0xc1] sm:$0xff]  ;;  %v6144_v29 = vld [vmem:[#allocation2 + $0xd3] sm:$0xff]  ;;  %v5061_v26 = vpop.f32.mrb[172].mxu0  ;;  %v3925_v49 = vmax.f32 %v3789_v11, %v3891_v14  ;;  %v3773_v2 = vld [vmem:[#allocation2 + $0xc9] sm:$0xff]  ;;  %v3791_v35 = vmax.f32 %v6133_v20, %v6135_v42  ;;  %v3926_v3 = vmax.f32 %v3790_v60, %v3892_v31 }
 0x241   : > { %v3641_v22 = vld [vmem:[#allocation2 + $0x118] sm:$0xff]  ;;  %v5087_v33 = vpack.c.bf16 %v3939_v4, %v3938_v16  ;;  %v3940_v38 = vmax.f32 %v3804_v51, %v3906_v18  ;;  %v6153_v34 = vld [vmem:[#allocation2 + $0x50] sm:$0xff]  ;;  %v6157_v23 = vld [vmem:[#allocation2 + $0x62] sm:$0xff]  ;;  %v3676_v44 = vadd.f32 %v5061_v26, %v3640_v15  ;;  %v3591_v45 = vpop.f32.mrb[173].mxu0  ;;  %v3941_v25 = vmax.f32 %v3805_v50, %v3907_v24 }
 0x242   : > { %v6155_v32 = vld [vmem:[#allocation2 + $0x59] sm:$0xff]  ;;  %v3739_v62 = vld [vmem:[#allocation2 + $0xc8] sm:$0xff]  ;;  %v3674_v52 = vadd.f32 %v3638_v21, %v3591_v45  ;;  %v5062_v53 = vpop.f32.mrb[174].mxu0  ;;  %v3908_v5 = vmax.f32 %v6142_v28, %v6144_v29  ;;  %v3774_v6 = vld [vmem:[#allocation2 + $0xd1] sm:$0xff]  ;;  %v3792_v7 = vmax.f32 %v6153_v34, %v6138_v19  ;;  %v3927_v10 = vmax.f32 %v3791_v35, %v3893_v40 }
 0x243   : > { %v3738_v37 = vld [vmem:[#allocation2 + $0xc0] sm:$0xff]  ;;  %5088 = vmatprep.subr.bf16.mxu1 %v5087_v33  ;;  %v6166_v55 = vld [vmem:[#allocation2 + $0x58] sm:$0xff]  ;;  %v3861_v57 = vld [vmem:[#allocation2 + $0x6b] sm:$0xff]  ;;  %3712 = vst.msk [vmem:[#allocation2 + $0x110] sm:$0xff] %vm493_vm3, %v3676_v44  ;;  %v3677_v61 = vadd.f32 %v5062_v53, %v3641_v22  ;;  %v3594_v63 = vpop.f32.mrb[175].mxu0  ;;  %v5091_v39 = vpack.c.bf16 %v3941_v25, %v3940_v38  ;;  %v3807_v9 = vmax.f32 %v3739_v62, %v3773_v2 }
 0x244   : > { %v3806_v54 = vmax.f32 %v3738_v37, %v6140_v27  ;;  %v3860_v56 = vld [vmem:[#allocation2 + $0x63] sm:$0xff]  ;;  %v6168_v58 = vld [vmem:[#allocation2 + $0x72] sm:$0xff]  ;;  %v6170_v41 = vld [vmem:[#allocation2 + $0x7a] sm:$0xff]  ;;  %5090 = vmatpush3.bf16.msra.mxu1 %v5089_v36  ;;  %3710 = vst.msk [vmem:[#allocation2 + $0x100] sm:$0xff] %vm493_vm3, %v3674_v52  ;;  %v3675_v8 = vadd.f32 %v3639_v46, %v3594_v63  ;;  %v5093_v42 = vpack.c.bf16 %v3925_v49, %v3924_v47 }
 0x245   : > { %v6172_v59 = vld [vmem:[#allocation2 + $0x73] sm:$0xff]  ;;  %v3875_v1 = vld [vmem:[#allocation2 + $0xdb] sm:$0xff]  ;;  %v3727_v14 = vld [vmem:[#allocation2 + $0x68] sm:$0xff]  ;;  %3713 = vst.msk [vmem:[#allocation2 + $0x118] sm:$0xff] %vm493_vm3, %v3677_v61  ;;  %5092 = vmatprep.subr.bf16.mxu1 %v5091_v39  ;;  %v3793_v30 = vmax.f32 %v6166_v55, %v6155_v32  ;;  %v3894_v51 = vmax.f32 %v6157_v23, %v3860_v56  ;;  %v3895_v17 = vmax.f32 %v6159_v43, %v3861_v57 }
 0x246   : > { %v3841_v0 = vld [vmem:[#allocation2 + $0xda] sm:$0xff]  ;;  %v3740_v11 = vld [vmem:[#allocation2 + $0xd0] sm:$0xff]  ;;  %v3842_v15 = vld [vmem:[#allocation2 + $0xe2] sm:$0xff]  ;;  %3711 = vst.msk [vmem:[#allocation2 + $0x108] sm:$0xff] %vm493_vm3, %v3675_v8  ;;  %v3942_v19 = vmax.f32 %v3806_v54, %v3908_v5  ;;  %v3896_v36 = vmax.f32 %v6168_v58, %v6172_v59  ;;  %v5097_v32 = vpack.c.bf16 %v3927_v10, %v3926_v3 }
 0x247   : > { %v6177_v48 = vld [vmem:[#allocation2 + $0x61] sm:$0xff]  ;;  %v3909_v12 = vmax.f32 %v3841_v0, %v3875_v1  ;;  %v3775_v13 = vld [vmem:[#allocation2 + $0xd9] sm:$0xff]  ;;  %v3843_v16 = vld [vmem:[#allocation2 + $0xea] sm:$0xff]  ;;  %v3808_v24 = vmax.f32 %v3740_v11, %v3774_v6  ;;  %v3928_v47 = vmax.f32 %v3792_v7, %v3894_v51  ;;  %v3929_v49 = vmax.f32 %v3793_v30, %v3895_v17 }
 0x248   : > { %v3863_v20 = vld [vmem:[#allocation2 + $0x7b] sm:$0xff]  ;;  %v3876_v4 = vld [vmem:[#allocation2 + $0xe3] sm:$0xff]  ;;  %v3877_v27 = vld [vmem:[#allocation2 + $0xeb] sm:$0xff]  ;;  %5094 = vmatpush3.bf16.msra.mxu1 %v5093_v42 }
 0x249   : > { %v3726_v18 = vld [vmem:[#allocation2 + $0x60] sm:$0xff]  ;;  %v3943_v21 = vmax.f32 %v3807_v9, %v3909_v12  ;;  %v3741_v50 = vld [vmem:[#allocation2 + $0xd8] sm:$0xff]  ;;  %v3910_v28 = vmax.f32 %v3842_v15, %v3876_v4  ;;  %v3761_v29 = vld [vmem:[#allocation2 + $0x69] sm:$0xff]  ;;  %v3911_v31 = vmax.f32 %v3843_v16, %v3877_v27  ;;  %v3897_v38 = vmax.f32 %v6170_v41, %v3863_v20 }
 0x24a   : > { %v3809_v60 = vmax.f32 %v3741_v50, %v3775_v13  ;;  %v3776_v26 = vld [vmem:[#allocation2 + $0xe1] sm:$0xff]  ;;  %v3844_v22 = vld [vmem:[#allocation2 + $0xf2] sm:$0xff]  ;;  %v3794_v43 = vmax.f32 %v3726_v18, %v6177_v48  ;;  %v3831_v46 = vld [vmem:[#allocation2 + $0x8a] sm:$0xff]  ;;  %v3795_v52 = vmax.f32 %v3727_v14, %v3761_v29  ;;  %v5101_v12 = vpack.c.bf16 %v3929_v49, %v3928_v47 }
 0x24b   : > { %v3878_v33 = vld [vmem:[#allocation2 + $0xf3] sm:$0xff]  ;;  %v5095_v34 = vpack.c.bf16 %v3943_v21, %v3942_v19  ;;  %v3944_v23 = vmax.f32 %v3808_v24, %v3910_v28  ;;  %v3830_v45 = vld [vmem:[#allocation2 + $0x82] sm:$0xff]  ;;  %v3865_v57 = vld [vmem:[#allocation2 + $0x8b] sm:$0xff] }
 0x24c   : > { %v6189_v40 = vld [vmem:[#allocation2 + $0x71] sm:$0xff]  ;;  %v6192_v44 = vld [vmem:[#allocation2 + $0x79] sm:$0xff]  ;;  %v3945_v25 = vmax.f32 %v3809_v60, %v3911_v31  ;;  %v3743_v62 = vld [vmem:[#allocation2 + $0xe8] sm:$0xff]  ;;  %v3912_v5 = vmax.f32 %v3844_v22, %v3878_v33  ;;  %v3931_v61 = vmax.f32 %v3795_v52, %v3897_v38  ;;  %v3930_v3 = vmax.f32 %v3794_v43, %v3896_v36 }
 0x24d   : > { %v3742_v37 = vld [vmem:[#allocation2 + $0xe0] sm:$0xff]  ;;  %v3777_v2 = vld [vmem:[#allocation2 + $0xe9] sm:$0xff]  ;;  %5096 = vmatprep.subr.bf16.mxu1 %v5095_v34  ;;  %v3778_v35 = vld [vmem:[#allocation2 + $0xf1] sm:$0xff]  ;;  %v3899_v42 = vmax.f32 %v3831_v46, %v3865_v57 }
 0x24e   : > { %v3728_v53 = vld [vmem:[#allocation2 + $0x70] sm:$0xff]  ;;  %v3810_v54 = vmax.f32 %v3742_v37, %v3776_v26  ;;  %v3729_v55 = vld [vmem:[#allocation2 + $0x78] sm:$0xff]  ;;  %v3864_v56 = vld [vmem:[#allocation2 + $0x83] sm:$0xff]  ;;  %5098 = vmatpush3.bf16.msra.mxu1 %v5097_v32  ;;  %v5099_v58 = vpack.c.bf16 %v3945_v25, %v3944_v23  ;;  %v3811_v0 = vmax.f32 %v3743_v62, %v3777_v2  ;;  %v5105_v19 = vpack.c.bf16 %v3931_v61, %v3930_v3 }
 0x24f   : > { %v3845_v41 = vld [vmem:[#allocation2 + $0xfa] sm:$0xff]  ;;  %v3744_v63 = vld [vmem:[#allocation2 + $0xf0] sm:$0xff]  ;;  %v3796_v7 = vmax.f32 %v3728_v53, %v6189_v40  ;;  %v3846_v10 = vld [vmem:[#allocation2 + $0x102] sm:$0xff]  ;;  %v3797_v14 = vmax.f32 %v3729_v55, %v6192_v44  ;;  %v3898_v20 = vmax.f32 %v3830_v45, %v3864_v56 }
 0x250   : > { %v3879_v59 = vld [vmem:[#allocation2 + $0xfb] sm:$0xff]  ;;  %v3848_v8 = vld [vmem:[#allocation2 + $0x112] sm:$0xff]  ;;  %5100 = vmatprep.subr.bf16.mxu1 %v5099_v58  ;;  %v3847_v11 = vld [vmem:[#allocation2 + $0x10a] sm:$0xff]  ;;  %v3946_v15 = vmax.f32 %v3810_v54, %v3912_v5  ;;  %v3812_v4 = vmax.f32 %v3744_v63, %v3778_v35 }
 0x251   : > { %v3779_v39 = vld [vmem:[#allocation2 + $0xf9] sm:$0xff]  ;;  %v3913_v1 = vmax.f32 %v3845_v41, %v3879_v59  ;;  %v3880_v13 = vld [vmem:[#allocation2 + $0x103] sm:$0xff]  ;;  %v3881_v30 = vld [vmem:[#allocation2 + $0x10b] sm:$0xff]  ;;  %v3932_v36 = vmax.f32 %v3796_v7, %v3898_v20  ;;  %v3933_v38 = vmax.f32 %v3797_v14, %v3899_v42 }
 0x252   : > { %v3745_v6 = vld [vmem:[#allocation2 + $0xf8] sm:$0xff]  ;;  %v3746_v48 = vld [vmem:[#allocation2 + $0x100] sm:$0xff]  ;;  %v3914_v51 = vmax.f32 %v3846_v10, %v3880_v13  ;;  %v3747_v17 = vld [vmem:[#allocation2 + $0x108] sm:$0x1f]  ;;  %5102 = vmatpush3.bf16.msra.mxu1 %v5101_v12  ;;  %v3915_v50 = vmax.f32 %v3847_v11, %v3881_v30 }
 0x253   : > { %v3849_v9 = vld [vmem:[#allocation2 + $0x11a] sm:$0x1f]  ;;  %v3947_v16 = vmax.f32 %v3811_v0, %v3913_v1  ;;  %v3780_v18 = vld [vmem:[#allocation2 + $0x101] sm:$0xff]  ;;  %v3813_v21 = vmax.f32 %v3745_v6, %v3779_v39  ;;  %v3781_v24 = vld [vmem:[#allocation2 + $0x109] sm:$0x1f]  ;;  %v5109_v43 = vpack.c.bf16 %v3933_v38, %v3932_v36 }
 0x254   : > { %v3814_v27 = vmax.f32 %v3746_v48, %v3780_v18  ;;  %v3882_v28 = vld [vmem:[#allocation2 + $0x113] sm:$0xff]  ;;  %v3883_v29 = vld [vmem:[#allocation2 + $0x11b] sm:$0x1f]  ;;  %v3948_v31 = vmax.f32 %v3812_v4, %v3914_v51  ;;  %v3815_v26 = vmax.f32 %v3747_v17, %v3781_v24  ;;  %v3952_v45 = vld [vmem:[%s6304_s3] sm:$0xff] }
 0x255   : > { %v5103_v60 = vpack.c.bf16 %v3947_v16, %v3946_v15  ;;  %v3916_v22 = vmax.f32 %v3848_v8, %v3882_v28  ;;  %v3949_v33 = vmax.f32 %v3813_v21, %v3915_v50  ;;  %v3917_v40 = vmax.f32 %v3849_v9, %v3883_v29  ;;  %v3956_v46 = vld [vmem:[%s6304_s3 + $0x20] sm:$0xff]  ;;  %v3955_v25 = vld [vmem:[%s6304_s3 + $0x18] sm:$0xff]  ;;  %v3958_v49 = vld [vmem:[%s6304_s3 + $0x30] sm:$0xff] }
 0x256   : > { %v3959_v47 = vld [vmem:[%s6304_s3 + $0x38] sm:$0xff]  ;;  %v3962_v37 = vld [vmem:[%s6304_s3 + $0x50] sm:$0xff]  ;;  %v3961_v62 = vld [vmem:[%s6304_s3 + $0x48] sm:$0xff] }
 0x257   : > { %5104 = vmatprep.subr.bf16.mxu1 %v5103_v60  ;;  %v3950_v34 = vmax.f32 %v3814_v27, %v3916_v22  ;;  %v5107_v32 = vpack.c.bf16 %v3949_v33, %v3948_v31  ;;  %v3951_v23 = vmax.f32 %v3815_v26, %v3917_v40  ;;  %v3965_v2 = vld [vmem:[%s6304_s3 + $0x68] sm:$0xff]  ;;  %v3964_v52 = vld [vmem:[%s6304_s3 + $0x60] sm:$0xff]  ;;  %v3967_v54 = vld [vmem:[%s6304_s3 + $0x78] sm:$0xff] }
 0x258   : > { %5106 = vmatpush3.bf16.msra.mxu1 %v5105_v19  ;;  %v3968_v53 = vld [vmem:[%s6304_s3 + $0x80] sm:$0xff]  ;;  %v3971_v5 = vld [vmem:[%s6304_s3 + $0x98] sm:$0xff]  ;;  %v3970_v35 = vld [vmem:[%s6304_s3 + $0x90] sm:$0xff] }
 0x259   : > { %5108 = vmatprep.subr.bf16.mxu1 %v5107_v32  ;;  %v5111_v44 = vpack.c.bf16 %v3951_v23, %v3950_v34  ;;  %v3974_v55 = vld [vmem:[%s6304_s3 + $0xb0] sm:$0xff]  ;;  %v3973_v56 = vld [vmem:[%s6304_s3 + $0xa8] sm:$0xff]  ;;  %v3960_v41 = vld [vmem:[%s6304_s3 + $0x40] sm:$0xff] }
 0x25a   : > { %v3954_v57 = vld [vmem:[%s6304_s3 + $0x10] sm:$0xff]  ;;  %v3957_v58 = vld [vmem:[%s6304_s3 + $0x28] sm:$0xff]  ;;  %v3963_v59 = vld [vmem:[%s6304_s3 + $0x58] sm:$0xff] }
 0x25b   : > { %v3966_v61 = vld [vmem:[%s6304_s3 + $0x70] sm:$0xff]  ;;  %v3969_v63 = vld [vmem:[%s6304_s3 + $0x88] sm:$0xff]  ;;  %v3972_v39 = vld [vmem:[%s6304_s3 + $0xa0] sm:$0xff] }
 0x25c   : > { %5110 = vmatpush3.bf16.msra.mxu1 %v5109_v43  ;;  %v3975_v0 = vld [vmem:[%s6304_s3 + $0xb8] sm:$0xff]  ;;  %v4471_v50 = vld [vmem:[%s6303_s2] ss:$0 sm:$0xff] }
 0x25d   : > { %5113 = vmatprep.subr.msk.bf16.mxu1 %vm5112_vm6, %v5111_v44 }
 0x25f   : > { %4077 = vmatmul.mubr.f32.vlgmr.msra.gmra.mrb[148].mxu1 %v3952_v45 }
 0x260   : > { %5116 = vmatpush3.bf16.msk.msra.mxu1 %vm5112_vm6, %v5111_v44  ;;  %4081 = vmatprep.mubr.f32.mxu1 %v3956_v46 }
 0x263   : > { %4082 = vmatmul.mubr.f32.gmra.mrb[150].mxu1 %v3955_v25 }
 0x264   : > { %4086 = vmatprep.mubr.f32.mxu1 %v3959_v47 }
 0x267   : > { %4087 = vmatmul.mubr.f32.gmra.mrb[152].mxu1 %v3958_v49 }
 0x268   : > { %4091 = vmatprep.mubr.f32.mxu1 %v3962_v37 }
 0x26b   : > { %4092 = vmatmul.mubr.f32.gmra.mrb[154].mxu1 %v3961_v62 }
 0x26c   : > { %4096 = vmatprep.mubr.f32.mxu1 %v3965_v2 }
 0x26f   : > { %4097 = vmatmul.mubr.f32.gmra.mrb[156].mxu1 %v3964_v52 }
 0x270   : > { %4101 = vmatprep.mubr.f32.mxu1 %v3968_v53 }
 0x273   : > { %4102 = vmatmul.mubr.f32.gmra.mrb[158].mxu1 %v3967_v54 }
 0x274   : > { %4106 = vmatprep.mubr.f32.mxu1 %v3971_v5 }
 0x277   : > { %4107 = vmatmul.mubr.f32.gmra.mrb[160].mxu1 %v3970_v35 }
 0x278   : > { %4111 = vmatprep.mubr.f32.mxu1 %v3974_v55 }
 0x27b   : > { %4112 = vmatmul.mubr.f32.gmra.mrb[162].mxu1 %v3973_v56 }
 0x27c   : > { %5067 = vmatprep.mubr.msk.f32.mxu1 %vm3983_vm7, %v3954_v57 }
 0x27f   : > { %5068 = vmatmul.mubr.msk.f32.vlgmr.msra.gmra.mrb[164].mxu1 %vm3983_vm7, %v3957_v58 }
 0x280   : > { %5070 = vmatprep.mubr.msk.f32.mxu1 %vm3983_vm7, %v3960_v41 }
 0x283   : > { %5071 = vmatmul.mubr.msk.f32.gmra.mrb[166].mxu1 %vm3983_vm7, %v3963_v59 }
 0x284   : > { %5073 = vmatprep.mubr.msk.f32.mxu1 %vm3983_vm7, %v3966_v61 }
 0x287   : > { %5074 = vmatmul.mubr.msk.f32.gmra.mrb[168].mxu1 %vm3983_vm7, %v3969_v63 }
 0x288   : > { %5076 = vmatprep.mubr.msk.f32.mxu1 %vm3983_vm7, %v3972_v39 }
 0x28b   : > { %5077 = vmatmul.mubr.msk.f32.gmra.mrb[170].mxu1 %vm3983_vm7, %v3975_v0 }
 0x332   : > { %v4687_v1 = vpop.f32.mrb[148].mxu1 }
 0x333   : > { %v4688_v3 = vpop.f32.mrb[149].mxu1 }
 0x334   : > { %v4689_v6 = vadd.f32 %v4688_v3, %v4687_v1 }
 0x336   : > { %v4690_v7 = vpop.f32.mrb[150].mxu1  ;;  %v4079_v29 = vadd.f32 %v4689_v6, %v4471_v50 }
 0x337   : > { %v4691_v48 = vpop.f32.mrb[151].mxu1 }
 0x338   : > { %v4692_v8 = vadd.f32 %v4691_v48, %v4690_v7 }
 0x33a   : > { %v4693_v9 = vpop.f32.mrb[152].mxu1  ;;  %v4084_v27 = vadd.f32 %v4692_v8, %v4471_v50 }
 0x33b   : > { %v4694_v12 = vpop.f32.mrb[153].mxu1 }
 0x33c   : > { %v4695_v10 = vadd.f32 %v4694_v12, %v4693_v9 }
 0x33e   : > { %v4696_v11 = vpop.f32.mrb[154].mxu1  ;;  %v4089_v40 = vadd.f32 %v4695_v10, %v4471_v50 }
 0x33f   : > { %v4697_v13 = vpop.f32.mrb[155].mxu1 }
 0x340   : > { %v4698_v14 = vadd.f32 %v4697_v13, %v4696_v11 }
 0x342   : > { %v4699_v20 = vpop.f32.mrb[156].mxu1  ;;  %v4094_v33 = vadd.f32 %v4698_v14, %v4471_v50 }
 0x343   : > { %v4700_v42 = vpop.f32.mrb[157].mxu1 }
 0x344   : > { %v4701_v15 = vadd.f32 %v4700_v42, %v4699_v20 }
 0x346   : > { %v4702_v16 = vpop.f32.mrb[158].mxu1  ;;  %v4099_v25 = vadd.f32 %v4701_v15, %v4471_v50 }
 0x347   : > { %v4703_v4 = vpop.f32.mrb[159].mxu1 }
 0x348   : > { %v4704_v30 = vadd.f32 %v4703_v4, %v4702_v16 }
 0x34a   : > { %v4705_v51 = vpop.f32.mrb[160].mxu1  ;;  %v4104_v44 = vadd.f32 %v4704_v30, %v4471_v50 }
 0x34b   : > { %v4706_v17 = vpop.f32.mrb[161].mxu1 }
 0x34c   : > { %v4707_v18 = vadd.f32 %v4706_v17, %v4705_v51 }
 0x34e   : > { %v4708_v19 = vpop.f32.mrb[162].mxu1  ;;  %v4109_v54 = vadd.f32 %v4707_v18, %v4471_v50 }
 0x34f   : > { %v4709_v21 = vpop.f32.mrb[163].mxu1 }
 0x350   : > { %v4710_v24 = vadd.f32 %v4709_v21, %v4708_v19 }
 0x352   : > { %v5069_v28 = vpop.f32.mrb[164].mxu1  ;;  %v4114_v2 = vadd.f32 %v4710_v24, %v4471_v50 }
 0x353   : > { %v4189_v60 = vadd.f32 %v5069_v28, %v4084_v27  ;;  %v4183_v31 = vpop.f32.mrb[165].mxu1 }
 0x354   : > { %v4184_v26 = vadd.f32 %v4183_v31, %v4079_v29 }
 0x355   : > { %v4223_v22 = vmax.f32 %v4189_v60, 0.0 }
 0x356   : > { %v4222_v36 = vmax.f32 %v4184_v26, 0.0  ;;  %v5072_v38 = vpop.f32.mrb[166].mxu1 }
 0x357   : > { %4231 = vst.msk [vmem:[%s6280_s20 + $0x8] sm:$0xff] %vm493_vm3, %v4223_v22  ;;  %v4199_v34 = vadd.f32 %v5072_v38, %v4094_v33  ;;  %v4193_v32 = vpop.f32.mrb[167].mxu1 }
 0x358   : > { %4230 = vst.msk [vmem:[%s6280_s20] sm:$0xff] %vm493_vm3, %v4222_v36  ;;  %v4194_v23 = vadd.f32 %v4193_v32, %v4089_v40 }
 0x359   : > { %v4225_v43 = vmax.f32 %v4199_v34, 0.0 }
 0x35a   : > { %v4224_v45 = vmax.f32 %v4194_v23, 0.0  ;;  %v5075_v46 = vpop.f32.mrb[168].mxu1 }
 0x35b   : > { %4233 = vst.msk [vmem:[%s6280_s20 + $0x18] sm:$0xff] %vm493_vm3, %v4225_v43  ;;  %v4209_v47 = vadd.f32 %v5075_v46, %v4104_v44  ;;  %v4203_v49 = vpop.f32.mrb[169].mxu1 }
 0x35c   : > { %4232 = vst.msk [vmem:[%s6280_s20 + $0x10] sm:$0xff] %vm493_vm3, %v4224_v45  ;;  %v4204_v37 = vadd.f32 %v4203_v49, %v4099_v25 }
 0x35d   : > { %v4227_v62 = vmax.f32 %v4209_v47, 0.0 }
 0x35e   : > { %v4226_v52 = vmax.f32 %v4204_v37, 0.0  ;;  %v5078_v53 = vpop.f32.mrb[170].mxu1 }
 0x35f   : > { %4235 = vst.msk [vmem:[%s6280_s20 + $0x28] sm:$0xff] %vm493_vm3, %v4227_v62  ;;  %v4219_v5 = vadd.f32 %v5078_v53, %v4114_v2  ;;  %v4213_v35 = vpop.f32.mrb[171].mxu1 }
 0x360   : > { %4234 = vst.msk [vmem:[%s6280_s20 + $0x20] sm:$0xff] %vm493_vm3, %v4226_v52  ;;  %v4214_v55 = vadd.f32 %v4213_v35, %v4109_v54 }
 0x361   : > { %v4229_v56 = vmax.f32 %v4219_v5, 0.0 }
 0x362   : > { %v4228_v57 = vmax.f32 %v4214_v55, 0.0 }
 0x363   : > { %4237 = vst.msk [vmem:[%s6280_s20 + $0x38] sm:$0xff] %vm493_vm3, %v4229_v56 }
 0x364   : > { %4236 = vst.msk [vmem:[%s6280_s20 + $0x30] sm:$0xff] %vm493_vm3, %v4228_v57 }
 0x365 PF: > { %s14_s15 = sadd.s32 1, %s5136_s15  }
 0x366   : > { %p11_p4 = scmp.ge.s32.totalorder %s14_s15, 4  }
 0x368   :  { %13 = sbr.rel (!%p11_p4) target bundleno = 1 (0x1), region = 74 }

</bundles_post_ra>
